<compile_context>
chip_gen: v6e
topology: v6e:2x2x1
jax: 0.10.0
libtpu: 0.0.40
codegen_flags: <defaults>
</compile_context>

<pallas_src>
import jax
import jax.numpy as jnp
from jax.experimental import pallas as pl
from jax.experimental.pallas import tpu as pltpu


_BF16 = jnp.bfloat16
_MiB = 1024 * 1024


def _vmem_capacity_bytes():
    """Physical VMEM per TensorCore (128 MiB on v5e/v6e, 64 MiB on v7x)."""
    try:
        info = pltpu.get_tpu_info()
        for name in ("vmem_capacity_bytes", "vmem_size_bytes", "vmem_bytes"):
            cap = getattr(info, name, None)
            if cap:
                return int(cap)
    except Exception:
        pass
    return 64 * _MiB   # conservative default (v7x-sized)


# --------------------------------------------------------------------------- #
# Kernels
# --------------------------------------------------------------------------- #
def _fused_gcn_kernel(x_ref, adj_ref, w1_ref, w2_ref, w3_ref, z_ref):
    adj = adj_ref[...]                                     # bf16, loaded once, reused 3x
    # gnn_1: adj @ (x @ W1)   (no activation; GNNLayer.forward never applies tanh)
    h = jnp.dot(x_ref[...], w1_ref[...], preferred_element_type=jnp.float32)
    h = jnp.dot(adj, h.astype(_BF16), preferred_element_type=jnp.float32)
    # gnn_2: adj @ (h @ W2)
    h = jnp.dot(h.astype(_BF16), w2_ref[...], preferred_element_type=jnp.float32)
    h = jnp.dot(adj, h.astype(_BF16), preferred_element_type=jnp.float32)
    # gnn_3: adj @ (h @ W3)
    z = jnp.dot(h.astype(_BF16), w3_ref[...], preferred_element_type=jnp.float32)
    z = jnp.dot(adj, z.astype(_BF16), preferred_element_type=jnp.float32)
    z_ref[...] = z.astype(z_ref.dtype)


def _gcn_layer_kernel(adj_ref, h_ref, w_ref, out_ref, acc_ref):
    # out[i] = (sum_k adj[i, k] @ h[k]) @ W, accumulated in an f32 VMEM scratch.
    @pl.when(pl.program_id(1) == 0)
    def _():
        acc_ref[...] = jnp.zeros_like(acc_ref)

    acc_ref[...] += jnp.dot(adj_ref[...], h_ref[...],
                            preferred_element_type=jnp.float32)

    @pl.when(pl.program_id(1) == pl.num_programs(1) - 1)
    def _():
        out = jnp.dot(acc_ref[...].astype(_BF16), w_ref[...],
                      preferred_element_type=jnp.float32)
        out_ref[...] = out.astype(out_ref.dtype)


def _gram_sigmoid_kernel(zi_ref, zj_ref, out_ref):
    # In-kernel bf16 cast of the z tiles avoids a separate XLA cast pass.
    zi = zi_ref[...].astype(_BF16)
    zj = zj_ref[...].astype(_BF16)
    # Contract the LAST dims of both operands: no transposed copy of z.
    logits = jax.lax.dot_general(zi, zj, (((1,), (1,)), ((), ())),
                                 preferred_element_type=jnp.float32)
    # sigmoid(x) = 1 / (1 + exp(-x)) via the approximate EUP reciprocal.
    out_ref[...] = pl.reciprocal(1.0 + jnp.exp(-logits),
                                 approx=True).astype(out_ref.dtype)


# --------------------------------------------------------------------------- #
# Tile selection / helpers
# --------------------------------------------------------------------------- #
def _round_up(x, m):
    return ((x + m - 1) // m) * m


def _pick_gcn_tiles(n_pad, in_w, out_w, out_bytes, budget):
    for tm in (512, 256, 128):
        if n_pad % tm:
            continue
        for tk in (512, 256, 128):
            if n_pad % tk:
                continue
            need = (2 * tm * tk * 2            # adj tile, bf16, double-buffered
                    + 2 * tk * in_w * 2        # h K-slab, bf16, double-buffered
                    + 2 * in_w * out_w * 2     # weight (2 buffers)
                    + 2 * tm * out_w * out_bytes
                    + tm * in_w * 4)           # f32 accumulator scratch
            if need <= budget:
                return tm, tk
    return 128, 128                            # n_pad is a multiple of 128


def _pick_gram_tiles(n_pad, e3, in_bytes, out_bytes, budget):
    for tn in (1024, 512, 256, 128):           # lane-dense output last dim
        if n_pad % tn:
            continue
        for tm in (512, 256, 128):
            if n_pad % tm:
                continue
            need = (2 * tm * e3 * in_bytes
                    + 2 * tn * e3 * in_bytes
                    + 2 * tm * tn * out_bytes
                    + tm * tn * 4)             # f32 logits temporary
            if need <= budget:
                return tm, tn
    return 128, 128


def _fused_vmem_estimate(n, n_input, e1, e2, e3, z_bytes):
    bf16, f32 = 2, 4
    mx = max(n_input, e1, e2, e3)
    return int(n * n * bf16                                    # adj (bf16)
               + n * n_input * bf16                            # x
               + (n_input * e1 + e1 * e2 + e2 * e3) * bf16     # weights
               + n * e3 * z_bytes                              # z output
               + 2 * n * mx * f32)                             # f32 intermediates


# --------------------------------------------------------------------------- #
# pallas_call wrappers
# --------------------------------------------------------------------------- #
def _fused_gcn(xb, adjb, w1b, w2b, w3b, z_dtype, *, vmem_limit):
    n, n_input = xb.shape
    e1, e2, e3 = w1b.shape[1], w2b.shape[1], w3b.shape[1]
    z_bytes = jnp.dtype(z_dtype).itemsize
    full = lambda a: pl.BlockSpec(a.shape, lambda: (0,) * a.ndim)
    cost = pl.CostEstimate(
        flops=2 * n * (n_input * e1 + n * e1 + e1 * e2 + n * e2 + e2 * e3 + n * e3),
        transcendentals=0,
        bytes_accessed=(n * n_input + n * n + n_input * e1 + e1 * e2 + e2 * e3) * 2
                       + n * e3 * z_bytes,
    )
    return pl.pallas_call(
        _fused_gcn_kernel,
        out_shape=jax.ShapeDtypeStruct((n, e3), z_dtype),
        grid_spec=pltpu.PrefetchScalarGridSpec(
            num_scalar_prefetch=0,
            grid=(),
            in_specs=[full(xb), full(adjb), full(w1b), full(w2b), full(w3b)],
            out_specs=pl.BlockSpec((n, e3), lambda: (0, 0)),
        ),
        compiler_params=pltpu.CompilerParams(vmem_limit_bytes=vmem_limit),
        cost_estimate=cost,
    )(xb, adjb, w1b, w2b, w3b)


def _gcn_layer(adj_b, h_b, w_b, out_dtype, *, vmem_limit, tile_budget):
    """out = adj @ (h @ W) with adj K-tiled (tm, tk) blocks and an f32 accumulator."""
    n = adj_b.shape[0]
    in_w, out_w = w_b.shape
    out_bytes = jnp.dtype(out_dtype).itemsize
    tm, tk = _pick_gcn_tiles(n, in_w, out_w, out_bytes, tile_budget)
    cost = pl.CostEstimate(
        flops=2 * n * (n * in_w + in_w * out_w),
        transcendentals=0,
        bytes_accessed=(n * n + n * in_w + in_w * out_w) * 2 + n * out_w * out_bytes,
    )
    return pl.pallas_call(
        _gcn_layer_kernel,
        out_shape=jax.ShapeDtypeStruct((n, out_w), out_dtype),
        grid_spec=pltpu.PrefetchScalarGridSpec(
            num_scalar_prefetch=0,
            grid=(n // tm, n // tk),
            in_specs=[
                pl.BlockSpec((tm, tk), lambda i, k: (i, k)),       # adj tile
                pl.BlockSpec((tk, in_w), lambda i, k: (k, 0)),     # h K-slab
                pl.BlockSpec((in_w, out_w), lambda i, k: (0, 0)),  # full weight
            ],
            out_specs=pl.BlockSpec((tm, out_w), lambda i, k: (i, 0)),
            scratch_shapes=[pltpu.VMEM((tm, in_w), jnp.float32)],
        ),
        compiler_params=pltpu.CompilerParams(
            dimension_semantics=("parallel", "arbitrary"),
            vmem_limit_bytes=vmem_limit,
        ),
        cost_estimate=cost,
    )(adj_b, h_b, w_b)


def _gram_sigmoid(z, out_dtype, *, vmem_limit, tile_budget):
    """sigmoid(z @ z.T) in lane-dense (TM, TN) output tiles, both grid axes parallel."""
    n, e3 = z.shape
    in_bytes = jnp.dtype(z.dtype).itemsize
    out_bytes = jnp.dtype(out_dtype).itemsize
    tm, tn = _pick_gram_tiles(n, e3, in_bytes, out_bytes, tile_budget)
    cost = pl.CostEstimate(
        flops=2 * n * n * e3,
        transcendentals=2 * n * n,     # exp + reciprocal
        bytes_accessed=2 * n * e3 * in_bytes + n * n * out_bytes,
    )
    # NOTE: sigmoid(z z^T) is symmetric; an i<=j triangular grid with a mirrored
    # (XLU-transposed) store would halve MXU/EUP work, but needs a manual DMA for
    # the second tile, so it is deliberately not done here.
    return pl.pallas_call(
        _gram_sigmoid_kernel,
        out_shape=jax.ShapeDtypeStruct((n, n), out_dtype),
        grid_spec=pltpu.PrefetchScalarGridSpec(
            num_scalar_prefetch=0,
            grid=(n // tm, n // tn),
            in_specs=[
                pl.BlockSpec((tm, e3), lambda i, j: (i, 0)),
                pl.BlockSpec((tn, e3), lambda i, j: (j, 0)),
            ],
            out_specs=pl.BlockSpec((tm, tn), lambda i, j: (i, j)),
        ),
        compiler_params=pltpu.CompilerParams(
            dimension_semantics=("parallel", "parallel"),
            vmem_limit_bytes=vmem_limit,
        ),
        cost_estimate=cost,
    )(z, z)


# --------------------------------------------------------------------------- #
# Public entry point
# --------------------------------------------------------------------------- #
def sgae_encoder(x, adj, w1, w2, w3, *, z_dtype=jnp.float32,
                 zadj_dtype=jnp.bfloat16, force_tiled=False):
    """SGAE encoder forward pass on TPU via Pallas. Returns (z_sgae, z_sgae_adj).

    z_sgae_adj is emitted in bfloat16 by default (the (N, N) stage is HBM
    writeback-bound); pass zadj_dtype=jnp.float32 for a full-precision output.
    """
    n, n_input = x.shape
    e1, e2, e3 = w1.shape[1], w2.shape[1], w3.shape[1]
    z_bytes = jnp.dtype(z_dtype).itemsize

    # Generation-aware VMEM budgets (128 MiB on v5e/v6e, 64 MiB on v7x).
    cap = _vmem_capacity_bytes()
    fused_limit = min(cap - 16 * _MiB, 100 * _MiB)   # ~48 MiB on v7x, 100 MiB on v5e/v6e
    fused_budget = fused_limit - 8 * _MiB            # slack for Mosaic internal scratch
    tiled_limit = min(cap // 2, 64 * _MiB)           # 32 MiB on v7x, 64 MiB on v5e/v6e
    tile_budget = tiled_limit // 2                   # headroom for pipelining overhead

    # Cast MXU operands to bf16 once (f32 accumulation happens inside the kernels).
    xb = x.astype(_BF16)
    adjb = adj.astype(_BF16)
    w1b, w2b, w3b = (w.astype(_BF16) for w in (w1, w2, w3))

    n_pad = _round_up(n, 128)

    use_fused = (not force_tiled) and (
        _fused_vmem_estimate(n, n_input, e1, e2, e3, z_bytes) <= fused_budget)

    if use_fused:
        # Single VMEM-resident invocation for the 3 GCN layers (adj read once).
        z = _fused_gcn(xb, adjb, w1b, w2b, w3b, z_dtype, vmem_limit=fused_limit)
        z_pad = z if n_pad == n else jnp.pad(z, ((0, n_pad - n), (0, 0)))
    else:
        # Per-layer kernels: adj K-tiled with f32 accumulator, bf16 intermediates.
        xp = xb if n_pad == n else jnp.pad(xb, ((0, n_pad - n), (0, 0)))
        ap = adjb if n_pad == n else jnp.pad(adjb, ((0, n_pad - n), (0, n_pad - n)))
        h = _gcn_layer(ap, xp, w1b, _BF16,
                       vmem_limit=tiled_limit, tile_budget=tile_budget)
        h = _gcn_layer(ap, h, w2b, _BF16,
                       vmem_limit=tiled_limit, tile_budget=tile_budget)
        z_pad = _gcn_layer(ap, h, w3b, z_dtype,
                           vmem_limit=tiled_limit, tile_budget=tile_budget)
        z = z_pad if n_pad == n else z_pad[:n]

    # (N, N) sigmoid Gram: always tiled so the dominant writeback is pipelined.
    zadj_pad = _gram_sigmoid(z_pad, zadj_dtype,
                             vmem_limit=tiled_limit, tile_budget=tile_budget)
    zadj = zadj_pad if n_pad == n else zadj_pad[:n, :n]
    return z, zadj


# --------------------------------------------------------------------------- #
# Self-test
# --------------------------------------------------------------------------- #
def xavier_uniform(key, fan_in, fan_out):
    bound = (6.0 / (fan_in + fan_out)) ** 0.5
    return jax.random.uniform(key, (fan_in, fan_out),
                              minval=-bound, maxval=bound, dtype=jnp.float32)


def _make_inputs(key, n, n_input, e1, e2, e3):
    k_x, k_a, k_w1, k_w2, k_w3 = jax.random.split(key, 5)
    x = jax.random.normal(k_x, (n, n_input), dtype=jnp.float32)
    # Dense row-normalized "adjacency" (torch.spmm's sparse adj, densified).
    a_raw = jax.random.uniform(k_a, (n, n), dtype=jnp.float32)
    a_sym = 0.5 * (a_raw + a_raw.T) + jnp.eye(n, dtype=jnp.float32)
    adj = a_sym / jnp.sum(a_sym, axis=1, keepdims=True)
    w1 = xavier_uniform(k_w1, n_input, e1)
    w2 = xavier_uniform(k_w2, e1, e2)
    w3 = xavier_uniform(k_w3, e2, e3)
    return x, adj, w1, w2, w3


def _reference(x, adj, w1, w2, w3):
    z = adj @ (adj @ (adj @ (x @ w1) @ w2) @ w3)
    return z, jax.nn.sigmoid(z @ z.T)


def _check(z, zadj, z_exp, zadj_exp):
    # bf16 MXU operands (f32 accumulation) + bf16 zadj output -> loosened tolerances.
    assert jnp.allclose(z, z_exp, atol=3e-2, rtol=5e-2), \
        float(jnp.max(jnp.abs(z - z_exp)))
    assert jnp.allclose(zadj.astype(jnp.float32), zadj_exp, atol=2e-2, rtol=2e-2), \
        float(jnp.max(jnp.abs(zadj.astype(jnp.float32) - zadj_exp)))


if __name__ == "__main__":
    # SGAE_encoder(gae_n_enc_1=128, gae_n_enc_2=64, gae_n_enc_3=32, n_input=64)
    n_input, e1, e2, e3 = 64, 128, 64, 32
    key = jax.random.PRNGKey(0)
    k_small, k_big, k_ragged = jax.random.split(key, 3)

    # 1) Small graph -> fused single-invocation GCN kernel + tiled gram/sigmoid.
    xs, adjs, w1s, w2s, w3s = _make_inputs(k_small, 512, n_input, e1, e2, e3)
    z_f, zadj_f = jax.block_until_ready(sgae_encoder(xs, adjs, w1s, w2s, w3s))
    _check(z_f, zadj_f, *_reference(xs, adjs, w1s, w2s, w3s))

    # 2) Larger graph, tiled path forced -> exercises K-tiled GCN layers
    #    (f32 accumulator, init/finalize via pl.when) and multi-tile gram grid.
    xl, adjl, w1l, w2l, w3l = _make_inputs(k_big, 1024, n_input, e1, e2, e3)
    z_t, zadj_t = jax.block_until_ready(
        sgae_encoder(xl, adjl, w1l, w2l, w3l, force_tiled=True))
    _check(z_t, zadj_t, *_reference(xl, adjl, w1l, w2l, w3l))

    # 3) Ragged N -> exercises the pad-to-128 path with zero-padded adj/x.
    xr, adjr, w1r, w2r, w3r = _make_inputs(k_ragged, 200, n_input, e1, e2, e3)
    z_r, zadj_r = jax.block_until_ready(
        sgae_encoder(xr, adjr, w1r, w2r, w3r, force_tiled=True))
    _check(z_r, zadj_r, *_reference(xr, adjr, w1r, w2r, w3r))

    print("KERNEL_OK")
</pallas_src>

<mosaic_0001>
module attributes {stable_mosaic.version = 11 : i64} {
  func.func @_fused_gcn_kernel(%arg0: memref<512x64xbf16, #tpu.memory_space<vmem>>, %arg1: memref<512x512xbf16, #tpu.memory_space<vmem>>, %arg2: memref<64x128xbf16, #tpu.memory_space<vmem>>, %arg3: memref<128x64xbf16, #tpu.memory_space<vmem>>, %arg4: memref<64x32xbf16, #tpu.memory_space<vmem>>, %arg5: memref<512x32xf32, #tpu.memory_space<vmem>>) attributes {dimension_semantics = [], scalar_prefetch = 0 : i64, scratch_operands = 0 : i64, tpu.core_type = #tpu.core_type<tc>} {
    %c0 = arith.constant 0 : index
    %c0_0 = arith.constant 0 : index
    %0 = vector.load %arg1[%c0, %c0_0] : memref<512x512xbf16, #tpu.memory_space<vmem>>, vector<512x512xbf16>
    %c0_1 = arith.constant 0 : index
    %c0_2 = arith.constant 0 : index
    %1 = vector.load %arg0[%c0_1, %c0_2] : memref<512x64xbf16, #tpu.memory_space<vmem>>, vector<512x64xbf16>
    %c0_3 = arith.constant 0 : index
    %c0_4 = arith.constant 0 : index
    %2 = vector.load %arg2[%c0_3, %c0_4] : memref<64x128xbf16, #tpu.memory_space<vmem>>, vector<64x128xbf16>
    %cst = arith.constant dense<0.000000e+00> : vector<512x128xf32>
    %3 = tpu.matmul %1, %2, %cst {dimension_numbers = #tpu.dot_dimension_numbers<[1], [0], [0], [1], [0, 0, 1, 1], [], []>} : vector<512x64xbf16>, vector<64x128xbf16>, vector<512x128xf32> -> vector<512x128xf32>
    %4 = arith.truncf %3 : vector<512x128xf32> to vector<512x128xbf16>
    %cst_5 = arith.constant dense<0.000000e+00> : vector<512x128xf32>
    %5 = tpu.matmul %0, %4, %cst_5 {dimension_numbers = #tpu.dot_dimension_numbers<[1], [0], [0], [1], [0, 0, 1, 1], [], []>} : vector<512x512xbf16>, vector<512x128xbf16>, vector<512x128xf32> -> vector<512x128xf32>
    %6 = arith.truncf %5 : vector<512x128xf32> to vector<512x128xbf16>
    %c0_6 = arith.constant 0 : index
    %c0_7 = arith.constant 0 : index
    %7 = vector.load %arg3[%c0_6, %c0_7] : memref<128x64xbf16, #tpu.memory_space<vmem>>, vector<128x64xbf16>
    %cst_8 = arith.constant dense<0.000000e+00> : vector<512x64xf32>
    %8 = tpu.matmul %6, %7, %cst_8 {dimension_numbers = #tpu.dot_dimension_numbers<[1], [0], [0], [1], [0, 0, 1, 1], [], []>} : vector<512x128xbf16>, vector<128x64xbf16>, vector<512x64xf32> -> vector<512x64xf32>
    %9 = arith.truncf %8 : vector<512x64xf32> to vector<512x64xbf16>
    %cst_9 = arith.constant dense<0.000000e+00> : vector<512x64xf32>
    %10 = tpu.matmul %0, %9, %cst_9 {dimension_numbers = #tpu.dot_dimension_numbers<[1], [0], [0], [1], [0, 0, 1, 1], [], []>} : vector<512x512xbf16>, vector<512x64xbf16>, vector<512x64xf32> -> vector<512x64xf32>
    %11 = arith.truncf %10 : vector<512x64xf32> to vector<512x64xbf16>
    %c0_10 = arith.constant 0 : index
    %c0_11 = arith.constant 0 : index
    %12 = vector.load %arg4[%c0_10, %c0_11] : memref<64x32xbf16, #tpu.memory_space<vmem>>, vector<64x32xbf16>
    %cst_12 = arith.constant dense<0.000000e+00> : vector<512x32xf32>
    %13 = tpu.matmul %11, %12, %cst_12 {dimension_numbers = #tpu.dot_dimension_numbers<[1], [0], [0], [1], [0, 0, 1, 1], [], []>} : vector<512x64xbf16>, vector<64x32xbf16>, vector<512x32xf32> -> vector<512x32xf32>
    %14 = arith.truncf %13 : vector<512x32xf32> to vector<512x32xbf16>
    %cst_13 = arith.constant dense<0.000000e+00> : vector<512x32xf32>
    %15 = tpu.matmul %0, %14, %cst_13 {dimension_numbers = #tpu.dot_dimension_numbers<[1], [0], [0], [1], [0, 0, 1, 1], [], []>} : vector<512x512xbf16>, vector<512x32xbf16>, vector<512x32xf32> -> vector<512x32xf32>
    %c0_14 = arith.constant 0 : index
    %c0_15 = arith.constant 0 : index
    %16 = vector.load %arg5[%c0_14, %c0_15] : memref<512x32xf32, #tpu.memory_space<vmem>>, vector<512x32xf32>
    tpu.vector_store %arg5[%c0_14, %c0_15], %15 {strides = array<i32>} : memref<512x32xf32, #tpu.memory_space<vmem>>, vector<512x32xf32>,
    return
  }
}

</mosaic_0001>

<bundles_post_ra>
// kernel: tpu_custom_call.1
= control target key start
LH: loop header
LB: loop body
LE: loop exit
PB: predicated region body
PF: predicated region fallthrough
CT: control target
= control target key end

     0   :  { %10 = vsyncpa [#allocation3], 0  ;;  %s5284_s18 = smov [#allocation2]   ;;  %s6488_s0 = inlined_call_operand.vmem [shape: bf16[512,64], index: 0, kind: input, shape index: {}]   ;;  %s6489_s1 = inlined_call_operand.hbm [shape: bf16[512,512], index: 1, kind: input, shape index: {}]   ;;  %s6490_s2 = inlined_call_operand.vmem [shape: bf16[64,128], index: 2, kind: input, shape index: {}]   ;;  %s6491_s3 = inlined_call_operand.vmem [shape: bf16[128,64], index: 3, kind: input, shape index: {}]   ;;  %s6492_s4 = inlined_call_operand.vmem [shape: bf16[64,32], index: 4, kind: input, shape index: {}]   ;;  %s6493_s5 = inlined_call_operand.vmem [shape: f32[512,32], index: 5, kind: output, shape index: {}]  }
   0x1   :  { %s18_s19 = sshll.u32 %s5284_s18, 4  ;;  %s19_s19 = int_to_ptr.vmem [resolvable:$true] %s18_s19 }
   0x2   :  { %s5270_s20 = scalar_lea.vmem %s19_s19, 16384  ;;  %p5275_p1 = scmp.lt.s32.totalorder %s19_s19, %s19_s19 }
   0x3   :  { %p5271_p0 = scmp.ne.s32.totalorder %s19_s19, %s5270_s20  ;;  %p5276_p2 = scmp.lt.s32.totalorder %s5270_s20, %s5270_s20 }
   0x5   :  { %p5277_p3 = por %p5276_p2, %p5275_p1 }
   0x7   :  { %p5278_p4 = pnand %p5277_p3, %p5271_p0 }
   0x9   :  { %5281 = shalt.err (!%p5278_p4)
}
   0xa   :  { %s5285_s21 = smov 256   ;;  %s5286_s22 = smov 16  }
   0xb   :  { %24 = dma.hbm_to_vmem [thread:$0]  %s6489_s1, 16384, %s19_s19, [#allocation3], %s5285_s21, %s5285_s21, %s5286_s22  }
   0xc   :  { %5282 = dma.done.wait [#allocation3], 16384  }
   0xd   :  { %5283 = vsyncadd [#allocation3], 4294950912  ;;  %v4767_v0 = vld [vmem:[%s6490_s2 + $0x18] sm:$0xff]   ;;  %v4768_v1 = vld [vmem:[%s6490_s2 + $0x10] sm:$0xff]   ;;  %vm419_vm0 = vcmask 523264   ;;  %v5287_v36 = vmov 0  }
   0xe   :  { %4531 = vmatprep.subr.bf16.mxu0 %v4767_v0  ;;  %4755 = vmatprep.subr.bf16.mxu1 %v4767_v0  ;;  %v4769_v2 = vld [vmem:[%s6490_s2 + $0x8] sm:$0xff]   ;;  %v4771_v3 = vld [vmem:[%s6488_s0] sm:$0xff]   ;;  %v4775_v8 = vld [vmem:[%s6488_s0 + $0x10] sm:$0xff]   ;;  %vm4109_vm1 = vcmask 261120  }
   0xf   :  { %4532 = vmatpush3.bf16.msra.mxu0 %v4767_v0  ;;  %4759 = vmatpush3.bf16.msra.mxu1 %v4767_v0  ;;  %v4772_v4 = vld [vmem:[%s6488_s0 + $0x80] sm:$0xff]   ;;  %v4773_v6 = vld [vmem:[%s6488_s0 + $0x8] sm:$0xff]   ;;  %v4776_v9 = vld [vmem:[%s6488_s0 + $0x90] sm:$0xff]  }
  0x10   :  { %4533 = vmatprep.subr.bf16.mxu0 %v4768_v1  ;;  %4756 = vmatprep.subr.bf16.mxu1 %v4768_v1  ;;  %v4770_v5 = vld [vmem:[%s6490_s2] sm:$0xff]   ;;  %v4774_v7 = vld [vmem:[%s6488_s0 + $0x88] sm:$0xff]   ;;  %v4777_v10 = vld [vmem:[%s6488_s0 + $0x18] sm:$0xff]  }
  0x11   :  { %4539 = vmatprep.mubr.msk.bf16.mxu0 %vm419_vm0, %v4771_v3  ;;  %4571 = vmatprep.mubr.msk.bf16.mxu1 %vm419_vm0, %v4772_v4  ;;  %v4778_v11 = vld [vmem:[%s6488_s0 + $0x98] sm:$0xff]   ;;  %v4779_v12 = vld [vmem:[%s6488_s0 + $0x20] sm:$0xff]   ;;  %v4781_v14 = vld [vmem:[%s6488_s0 + $0x28] sm:$0xff]  }
  0x12   :  { %v4780_v13 = vld [vmem:[%s6488_s0 + $0xa0] sm:$0xff]   ;;  %v4782_v15 = vld [vmem:[%s6488_s0 + $0xa8] sm:$0xff]   ;;  %v4783_v16 = vld [vmem:[%s6488_s0 + $0x30] sm:$0xff]  }
  0x13   :  { %4534 = vmatpush3.bf16.msra.mxu0 %v4768_v1  ;;  %4760 = vmatpush3.bf16.msra.mxu1 %v4768_v1  ;;  %v4784_v17 = vld [vmem:[%s6488_s0 + $0xb0] sm:$0xff]   ;;  %v4785_v18 = vld [vmem:[%s6488_s0 + $0x38] sm:$0xff]   ;;  %v4787_v20 = vld [vmem:[%s6488_s0 + $0x40] sm:$0xff]  }
  0x14   :  { %4535 = vmatprep.subr.bf16.mxu0 %v4769_v2  ;;  %4757 = vmatprep.subr.bf16.mxu1 %v4769_v2  ;;  %v4786_v19 = vld [vmem:[%s6488_s0 + $0xb8] sm:$0xff]   ;;  %v4788_v21 = vld [vmem:[%s6488_s0 + $0xc0] sm:$0xff]   ;;  %v4789_v22 = vld [vmem:[%s6488_s0 + $0x48] sm:$0xff]  }
  0x15   :  { %v4790_v23 = vld [vmem:[%s6488_s0 + $0xc8] sm:$0xff]   ;;  %v4791_v24 = vld [vmem:[%s6488_s0 + $0x50] sm:$0xff]   ;;  %v4793_v26 = vld [vmem:[%s6488_s0 + $0x58] sm:$0xff]  }
  0x16   :  { %v4792_v25 = vld [vmem:[%s6488_s0 + $0xd0] sm:$0xff]   ;;  %v4794_v27 = vld [vmem:[%s6488_s0 + $0xd8] sm:$0xff]   ;;  %v4795_v28 = vld [vmem:[%s6488_s0 + $0x60] sm:$0xff]  }
  0x17   :  { %4536 = vmatpush3.bf16.msra.mxu0 %v4769_v2  ;;  %4761 = vmatpush3.bf16.msra.mxu1 %v4769_v2  ;;  %v4796_v29 = vld [vmem:[%s6488_s0 + $0xe0] sm:$0xff]   ;;  %v4797_v30 = vld [vmem:[%s6488_s0 + $0x68] sm:$0xff]   ;;  %v4799_v32 = vld [vmem:[%s6488_s0 + $0x70] sm:$0xff]  }
  0x18   :  { %4537 = vmatprep.subr.bf16.mxu0 %v4770_v5  ;;  %4758 = vmatprep.subr.bf16.mxu1 %v4770_v5  ;;  %v4798_v31 = vld [vmem:[%s6488_s0 + $0xe8] sm:$0xff]   ;;  %v4800_v33 = vld [vmem:[%s6488_s0 + $0xf0] sm:$0xff]   ;;  %v4801_v34 = vld [vmem:[%s6488_s0 + $0x78] sm:$0xff]  }
  0x19   :  { %v4802_v35 = vld [vmem:[%s6488_s0 + $0xf8] sm:$0xff]   ;;  %v5463_v37 = vld [vmem:[#allocation2 + $0x4] ss:$16 sps:$4 sm:$0xff]  }
  0x1a   :  { %v4808_v38 = vld [vmem:[#allocation2 + $0xc] ss:$16 sps:$4 sm:$0xff]  }
  0x1b   :  { %4538 = vmatpush3.bf16.msra.mxu0 %v4770_v5  ;;  %4762 = vmatpush3.bf16.msra.mxu1 %v4770_v5 }
  0x1c   :  { %1477 = vmatprep.subr.bf16.mxu1 %v5287_v36  ;;  %1766 = vmatprep.subr.bf16.mxu0 %v5287_v36 }
  0x1e   :  { %4540 = vmatmul.mubr.msk.bf16.vlgmr.msra.gmra.mxu0 %vm419_vm0, %v4773_v6  ;;  %4572 = vmatmul.mubr.msk.bf16.vlgmr.msra.gmra.mxu1 %vm419_vm0, %v4774_v7 }
  0x1f   :  { %4543 = vmatprep.mubr.msk.bf16.mxu0 %vm419_vm0, %v4775_v8  ;;  %4575 = vmatprep.mubr.msk.bf16.mxu1 %vm419_vm0, %v4776_v9 }
  0x26   :  { %4544 = vmatmul.mubr.msk.bf16.gmra.mxu0 %vm419_vm0, %v4777_v10  ;;  %4576 = vmatmul.mubr.msk.bf16.gmra.mxu1 %vm419_vm0, %v4778_v11 }
  0x27   :  { %4547 = vmatprep.mubr.msk.bf16.mxu0 %vm419_vm0, %v4779_v12  ;;  %4579 = vmatprep.mubr.msk.bf16.mxu1 %vm419_vm0, %v4780_v13 }
  0x2e   :  { %4548 = vmatmul.mubr.msk.bf16.gmra.mxu0 %vm419_vm0, %v4781_v14  ;;  %4580 = vmatmul.mubr.msk.bf16.gmra.mxu1 %vm419_vm0, %v4782_v15 }
  0x2f   :  { %4551 = vmatprep.mubr.msk.bf16.mxu0 %vm419_vm0, %v4783_v16  ;;  %4583 = vmatprep.mubr.msk.bf16.mxu1 %vm419_vm0, %v4784_v17 }
  0x36   :  { %4552 = vmatmul.mubr.msk.bf16.gmra.mxu0 %vm419_vm0, %v4785_v18  ;;  %4584 = vmatmul.mubr.msk.bf16.gmra.mxu1 %vm419_vm0, %v4786_v19 }
  0x37   :  { %4555 = vmatprep.mubr.msk.bf16.mxu0 %vm419_vm0, %v4787_v20  ;;  %4587 = vmatprep.mubr.msk.bf16.mxu1 %vm419_vm0, %v4788_v21 }
  0x3e   :  { %4556 = vmatmul.mubr.msk.bf16.gmra.mxu0 %vm419_vm0, %v4789_v22  ;;  %4588 = vmatmul.mubr.msk.bf16.gmra.mxu1 %vm419_vm0, %v4790_v23 }
  0x3f   :  { %4559 = vmatprep.mubr.msk.bf16.mxu0 %vm419_vm0, %v4791_v24  ;;  %4591 = vmatprep.mubr.msk.bf16.mxu1 %vm419_vm0, %v4792_v25 }
  0x46   :  { %4560 = vmatmul.mubr.msk.bf16.gmra.mxu0 %vm419_vm0, %v4793_v26  ;;  %4592 = vmatmul.mubr.msk.bf16.gmra.mxu1 %vm419_vm0, %v4794_v27 }
  0x47   :  { %4563 = vmatprep.mubr.msk.bf16.mxu0 %vm419_vm0, %v4795_v28  ;;  %4595 = vmatprep.mubr.msk.bf16.mxu1 %vm419_vm0, %v4796_v29 }
  0x4e   :  { %4564 = vmatmul.mubr.msk.bf16.gmra.mxu0 %vm419_vm0, %v4797_v30  ;;  %4596 = vmatmul.mubr.msk.bf16.gmra.mxu1 %vm419_vm0, %v4798_v31 }
  0x4f   :  { %4567 = vmatprep.mubr.msk.bf16.mxu0 %vm419_vm0, %v4799_v32  ;;  %4599 = vmatprep.mubr.msk.bf16.mxu1 %vm419_vm0, %v4800_v33 }
  0x56   :  { %4568 = vmatmul.mubr.msk.bf16.gmra.mxu0 %vm419_vm0, %v4801_v34  ;;  %4600 = vmatmul.mubr.msk.bf16.gmra.mxu1 %vm419_vm0, %v4802_v35 }
  0x57   :  { %1509 = vmatprep.mubr.bf16.mxu1 %v5463_v37  ;;  %1798 = vmatprep.mubr.bf16.mxu0 %v4808_v38 }
  0xde   :  { %v5466_v39 = vpop.f32.mrf.mxu0  ;;  %v5468_v40 = vpop.f32.mrf.mxu1 }
  0xe0   :  { %v5470_v41 = vpop.f32.mrf.mxu0  ;;  %v5472_v42 = vpop.f32.mrf.mxu1 }
  0xe2   :  { %v5474_v43 = vpop.f32.mrf.mxu0  ;;  %v5476_v44 = vpop.f32.mrf.mxu1 }
  0xe4   :  { %v5478_v45 = vpop.f32.mrf.mxu0  ;;  %v5480_v46 = vpop.f32.mrf.mxu1 }
  0xe6   :  { %v5482_v47 = vpop.f32.mrf.mxu0  ;;  %v5484_v48 = vpop.f32.mrf.mxu1 }
  0xe8   :  { %v5486_v49 = vpop.f32.mrf.mxu0  ;;  %v5488_v50 = vpop.f32.mrf.mxu1 }
  0xea   :  { %v4546_v51 = vpop.f32.mrf.mxu0  ;;  %v4578_v52 = vpop.f32.mrf.mxu1 }
  0xeb   :  { %v808_v29 = vpack.c.bf16 %v4546_v51, %v5482_v47  ;;  %v824_v30 = vpack.c.bf16 %v4578_v52, %v5484_v48 }
  0xec   :  { %v5490_v53 = vpop.f32.mrf.mxu0  ;;  %v5492_v54 = vpop.f32.mrf.mxu1 }
  0xed   :  { %v807_v35 = vpack.c.bf16 %v5490_v53, %v5486_v49  ;;  %v823_v38 = vpack.c.bf16 %v5492_v54, %v5488_v50 }
  0xee   :  { %v4549_v55 = vpop.f32.mrf.mxu0  ;;  %v4581_v56 = vpop.f32.mrf.mxu1 }
  0xf0   :  { %v582_v57 = vpop.f32.mrf.mxu0  ;;  %v710_v58 = vpop.f32.mrf.mxu1 }
  0xf2   :  { %v4550_v59 = vpop.f32.mrf.mxu0  ;;  %v4582_v60 = vpop.f32.mrf.mxu1 }
  0xf3   :  { %v810_v17 = vpack.c.bf16 %v4550_v59, %v4549_v55  ;;  %v826_v18 = vpack.c.bf16 %v4582_v60, %v4581_v56  ;;  %v806_v55 = vpack.c.bf16 %v5474_v43, %v5466_v39  ;;  %v822_v56 = vpack.c.bf16 %v5476_v44, %v5468_v40 }
  0xf4   :  { %v585_v61 = vpop.f32.mrf.mxu0  ;;  %v713_v62 = vpop.f32.mrf.mxu1 }
  0xf5   :  { %v809_v23 = vpack.c.bf16 %v585_v61, %v582_v57  ;;  %v825_v24 = vpack.c.bf16 %v713_v62, %v710_v58  ;;  %v805_v57 = vpack.c.bf16 %v5478_v45, %v5470_v41  ;;  %v821_v58 = vpack.c.bf16 %v5480_v46, %v5472_v42 }
  0xf6   :  { %v4553_v63 = vpop.f32.mrf.mxu0  ;;  %v4585_v0 = vpop.f32.mrf.mxu1 }
  0xf8   :  { %v598_v1 = vpop.f32.mrf.mxu0  ;;  %v726_v2 = vpop.f32.mrf.mxu1 }
  0xfa   :  { %v4554_v3 = vpop.f32.mrf.mxu0  ;;  %v4586_v4 = vpop.f32.mrf.mxu1 }
  0xfb   :  { %v812_v5 = vpack.c.bf16 %v4554_v3, %v4553_v63  ;;  %v828_v6 = vpack.c.bf16 %v4586_v4, %v4585_v0 }
  0xfc   :  { %v601_v7 = vpop.f32.mrf.mxu0  ;;  %v729_v8 = vpop.f32.mrf.mxu1 }
  0xfd   :  { %1478 = vmatpush1.bf16.msra.mxu1 %v812_v5  ;;  %1767 = vmatpush1.bf16.msra.mxu0 %v828_v6  ;;  %v811_v11 = vpack.c.bf16 %v601_v7, %v598_v1  ;;  %v827_v12 = vpack.c.bf16 %v729_v8, %v726_v2 }
  0xfe   :  { %v5494_v9 = vpop.f32.mrf.mxu0  ;;  %v5496_v10 = vpop.f32.mrf.mxu1  ;;  %1479 = vmatprep.subr.bf16.mxu1 %v5287_v36  ;;  %1768 = vmatprep.subr.bf16.mxu0 %v5287_v36 }
 0x100   :  { %v5500_v13 = vpop.f32.mrf.mxu0  ;;  %v5502_v14 = vpop.f32.mrf.mxu1 }
 0x101   :  { %1480 = vmatpush1.bf16.msra.mxu1 %v811_v11  ;;  %1769 = vmatpush1.bf16.msra.mxu0 %v827_v12  ;;  %v4803_v11 = vld [vmem:[#allocation2] ss:$16 sps:$4 sm:$0xff]   ;;  %v4806_v12 = vld [vmem:[#allocation2 + $0x8] ss:$16 sps:$4 sm:$0xff]  }
 0x102   :  { %v5504_v15 = vpop.f32.mrf.mxu0  ;;  %v5506_v16 = vpop.f32.mrf.mxu1  ;;  %1481 = vmatprep.subr.bf16.mxu1 %v5287_v36  ;;  %1770 = vmatprep.subr.bf16.mxu0 %v5287_v36 }
 0x103   :  { %v814_v5 = vpack.c.bf16 %v5504_v15, %v5494_v9  ;;  %v830_v6 = vpack.c.bf16 %v5506_v16, %v5496_v10  ;;  %v4809_v9 = vld [vmem:[#allocation2 + $0x24] ss:$16 sps:$4 sm:$0xff]   ;;  %v4811_v15 = vld [vmem:[#allocation2 + $0x2c] ss:$16 sps:$4 sm:$0xff]  }
 0x104   :  { %v5510_v19 = vpop.f32.mrf.mxu0  ;;  %v5512_v20 = vpop.f32.mrf.mxu1  ;;  %v4905_v10 = vld [vmem:[%s6491_s3 + $0x38] sm:$0xff]   ;;  %v4815_v16 = vld [vmem:[#allocation2 + $0x44] ss:$16 sps:$4 sm:$0xff]  }
 0x105   :  { %1482 = vmatpush1.bf16.msra.mxu1 %v810_v17  ;;  %1771 = vmatpush1.bf16.msra.mxu0 %v826_v18  ;;  %v813_v7 = vpack.c.bf16 %v5510_v19, %v5500_v13  ;;  %v829_v8 = vpack.c.bf16 %v5512_v20, %v5502_v14  ;;  %v4813_v13 = vld [vmem:[#allocation2 + $0x20] ss:$16 sps:$4 sm:$0xff]   ;;  %v4814_v14 = vld [vmem:[#allocation2 + $0x28] ss:$16 sps:$4 sm:$0xff]   ;;  %v4817_v17 = vld [vmem:[#allocation2 + $0x4c] ss:$16 sps:$4 sm:$0xff]  }
 0x106   :  { %v5514_v21 = vpop.f32.mrf.mxu0  ;;  %v5516_v22 = vpop.f32.mrf.mxu1  ;;  %1483 = vmatprep.subr.bf16.mxu1 %v5287_v36  ;;  %1772 = vmatprep.subr.bf16.mxu0 %v5287_v36  ;;  %v4819_v18 = vld [vmem:[#allocation2 + $0x40] ss:$16 sps:$4 sm:$0xff]   ;;  %v4820_v19 = vld [vmem:[#allocation2 + $0x48] ss:$16 sps:$4 sm:$0xff]   ;;  %v4821_v20 = vld [vmem:[#allocation2 + $0x64] ss:$16 sps:$4 sm:$0xff]  }
 0x108   :  { %v5520_v25 = vpop.f32.mrf.mxu0  ;;  %v5522_v26 = vpop.f32.mrf.mxu1 }
 0x109   :  { %1484 = vmatpush1.bf16.msra.mxu1 %v809_v23  ;;  %1773 = vmatpush1.bf16.msra.mxu0 %v825_v24  ;;  %v4826_v23 = vld [vmem:[#allocation2 + $0x68] ss:$16 sps:$4 sm:$0xff]   ;;  %v4827_v24 = vld [vmem:[#allocation2 + $0x84] ss:$16 sps:$4 sm:$0xff]  }
 0x10a   :  { %v5524_v27 = vpop.f32.mrf.mxu0  ;;  %v5526_v28 = vpop.f32.mrf.mxu1  ;;  %1485 = vmatprep.subr.bf16.mxu1 %v5287_v36  ;;  %1774 = vmatprep.subr.bf16.mxu0 %v5287_v36 }
 0x10b   :  { %v816_v1 = vpack.c.bf16 %v5524_v27, %v5514_v21  ;;  %v832_v2 = vpack.c.bf16 %v5526_v28, %v5516_v22  ;;  %v4823_v21 = vld [vmem:[#allocation2 + $0x6c] ss:$16 sps:$4 sm:$0xff]   ;;  %v4825_v22 = vld [vmem:[#allocation2 + $0x60] ss:$16 sps:$4 sm:$0xff]   ;;  %v4832_v27 = vld [vmem:[#allocation2 + $0x88] ss:$16 sps:$4 sm:$0xff]  }
 0x10c   :  { %v5532_v31 = vpop.f32.mrf.mxu0  ;;  %v5534_v32 = vpop.f32.mrf.mxu1  ;;  %v4833_v28 = vld [vmem:[#allocation2 + $0xa4] ss:$16 sps:$4 sm:$0xff]  }
 0x10d   :  { %1486 = vmatpush1.bf16.msra.mxu1 %v808_v29  ;;  %1775 = vmatpush1.bf16.msra.mxu0 %v824_v30  ;;  %v815_v3 = vpack.c.bf16 %v5532_v31, %v5520_v25  ;;  %v831_v4 = vpack.c.bf16 %v5534_v32, %v5522_v26  ;;  %v4829_v25 = vld [vmem:[#allocation2 + $0x8c] ss:$16 sps:$4 sm:$0xff]   ;;  %v4831_v26 = vld [vmem:[#allocation2 + $0x80] ss:$16 sps:$4 sm:$0xff]   ;;  %v4838_v32 = vld [vmem:[#allocation2 + $0xa8] ss:$16 sps:$4 sm:$0xff]  }
 0x10e   :  { %v4565_v33 = vpop.f32.mrf.mxu0  ;;  %v4597_v34 = vpop.f32.mrf.mxu1  ;;  %1487 = vmatprep.subr.bf16.mxu1 %v5287_v36  ;;  %1776 = vmatprep.subr.bf16.mxu0 %v5287_v36  ;;  %v4835_v29 = vld [vmem:[#allocation2 + $0xac] ss:$16 sps:$4 sm:$0xff]   ;;  %v4930_v30 = vld [vmem:[%s6491_s3 + $0x30] sm:$0xff]  }
 0x10f   :  { %v4837_v31 = vld [vmem:[#allocation2 + $0xa0] ss:$16 sps:$4 sm:$0xff]  }
 0x110   :  { %v646_v47 = vpop.f32.mrf.mxu0  ;;  %v774_v48 = vpop.f32.mrf.mxu1 }
 0x111   :  { %1488 = vmatpush1.bf16.msra.mxu1 %v807_v35  ;;  %1777 = vmatpush1.bf16.msra.mxu0 %v823_v38  ;;  %v4843_v35 = vld [vmem:[#allocation2 + $0xc0] ss:$16 sps:$4 sm:$0xff]   ;;  %v4844_v38 = vld [vmem:[#allocation2 + $0xc8] ss:$16 sps:$4 sm:$0xff]  }
 0x112   :  { %v4566_v51 = vpop.f32.mrf.mxu0  ;;  %v4598_v52 = vpop.f32.mrf.mxu1  ;;  %1489 = vmatprep.subr.bf16.mxu1 %v5287_v36  ;;  %1778 = vmatprep.subr.bf16.mxu0 %v5287_v36 }
 0x113   :  { %v818_v45 = vpack.c.bf16 %v4566_v51, %v4565_v33  ;;  %v834_v46 = vpack.c.bf16 %v4598_v52, %v4597_v34  ;;  %v4839_v33 = vld [vmem:[#allocation2 + $0xc4] ss:$16 sps:$4 sm:$0xff]   ;;  %v4841_v34 = vld [vmem:[#allocation2 + $0xcc] ss:$16 sps:$4 sm:$0xff]   ;;  %v4849_v51 = vld [vmem:[#allocation2 + $0xe0] ss:$16 sps:$4 sm:$0xff]  }
 0x114   :  { %v649_v49 = vpop.f32.mrf.mxu0  ;;  %v777_v53 = vpop.f32.mrf.mxu1  ;;  %v4850_v52 = vld [vmem:[#allocation2 + $0xe8] ss:$16 sps:$4 sm:$0xff]  }
 0x115   :  { %1490 = vmatpush1.bf16.msra.mxu1 %v806_v55  ;;  %1779 = vmatpush1.bf16.msra.mxu0 %v822_v56  ;;  %v817_v63 = vpack.c.bf16 %v649_v49, %v646_v47  ;;  %v833_v0 = vpack.c.bf16 %v777_v53, %v774_v48  ;;  %v4845_v47 = vld [vmem:[#allocation2 + $0xe4] ss:$16 sps:$4 sm:$0xff]   ;;  %v4847_v48 = vld [vmem:[#allocation2 + $0xec] ss:$16 sps:$4 sm:$0xff]   ;;  %v4855_v49 = vld [vmem:[#allocation2 + $0x100] ss:$16 sps:$4 sm:$0xff]  }
 0x116   :  { %v4569_v50 = vpop.f32.mrf.mxu0  ;;  %v4601_v54 = vpop.f32.mrf.mxu1  ;;  %1491 = vmatprep.subr.bf16.mxu1 %v5287_v36  ;;  %1780 = vmatprep.subr.bf16.mxu0 %v5287_v36  ;;  %v4851_v55 = vld [vmem:[#allocation2 + $0x104] ss:$16 sps:$4 sm:$0xff]   ;;  %v4853_v56 = vld [vmem:[#allocation2 + $0x10c] ss:$16 sps:$4 sm:$0xff]   ;;  %v4856_v53 = vld [vmem:[#allocation2 + $0x108] ss:$16 sps:$4 sm:$0xff]  }
 0x118   :  { %v662_v39 = vpop.f32.mrf.mxu0  ;;  %v790_v43 = vpop.f32.mrf.mxu1 }
 0x119   :  { %1492 = vmatpush1.bf16.msra.mxu1 %v805_v57  ;;  %1781 = vmatpush1.bf16.msra.mxu0 %v821_v58  ;;  %v4955_v57 = vld [vmem:[%s6491_s3 + $0x28] sm:$0xff]   ;;  %v4861_v58 = vld [vmem:[#allocation2 + $0x120] ss:$16 sps:$4 sm:$0xff]  }
 0x11a   :  { %v4570_v40 = vpop.f32.mrf.mxu0  ;;  %v4602_v44 = vpop.f32.mrf.mxu1  ;;  %1493 = vmatprep.subr.bf16.mxu1 %v5287_v36  ;;  %1782 = vmatprep.subr.bf16.mxu0 %v5287_v36 }
 0x11b   :  { %v820_v59 = vpack.c.bf16 %v4570_v40, %v4569_v50  ;;  %v836_v60 = vpack.c.bf16 %v4602_v44, %v4601_v54  ;;  %v4857_v50 = vld [vmem:[#allocation2 + $0x124] ss:$16 sps:$4 sm:$0xff]   ;;  %v4859_v54 = vld [vmem:[#allocation2 + $0x12c] ss:$16 sps:$4 sm:$0xff]   ;;  %v4867_v44 = vld [vmem:[#allocation2 + $0x140] ss:$16 sps:$4 sm:$0xff]  }
 0x11c   :  { %v665_v61 = vpop.f32.mrf.mxu0  ;;  %v793_v62 = vpop.f32.mrf.mxu1  ;;  %v4865_v40 = vld [vmem:[#allocation2 + $0x14c] ss:$16 sps:$4 sm:$0xff]  }
 0x11d   :  { %1494 = vmatpush2.bf16.msra.mxu1 %v820_v59  ;;  %1783 = vmatpush2.bf16.msra.mxu0 %v836_v60  ;;  %v819_v41 = vpack.c.bf16 %v665_v61, %v662_v39  ;;  %v835_v42 = vpack.c.bf16 %v793_v62, %v790_v43  ;;  %v4862_v39 = vld [vmem:[#allocation2 + $0x128] ss:$16 sps:$4 sm:$0xff]   ;;  %v4863_v43 = vld [vmem:[#allocation2 + $0x144] ss:$16 sps:$4 sm:$0xff]   ;;  %v4871_v61 = vld [vmem:[#allocation2 + $0x16c] ss:$16 sps:$4 sm:$0xff]  }
 0x11e   :  { %1495 = vmatprep.subr.bf16.mxu1 %v5287_v36  ;;  %1784 = vmatprep.subr.bf16.mxu0 %v5287_v36  ;;  %v4868_v59 = vld [vmem:[#allocation2 + $0x148] ss:$16 sps:$4 sm:$0xff]   ;;  %v4869_v60 = vld [vmem:[#allocation2 + $0x164] ss:$16 sps:$4 sm:$0xff]   ;;  %v4873_v62 = vld [vmem:[#allocation2 + $0x160] ss:$16 sps:$4 sm:$0xff]  }
 0x121   :  { %1496 = vmatpush2.bf16.msra.mxu1 %v819_v41  ;;  %1785 = vmatpush2.bf16.msra.mxu0 %v835_v42  ;;  %v4874_v41 = vld [vmem:[#allocation2 + $0x168] ss:$16 sps:$4 sm:$0xff]   ;;  %v4875_v42 = vld [vmem:[#allocation2 + $0x184] ss:$16 sps:$4 sm:$0xff]  }
 0x122   :  { %1497 = vmatprep.subr.bf16.mxu1 %v5287_v36  ;;  %1786 = vmatprep.subr.bf16.mxu0 %v5287_v36 }
 0x125   :  { %1498 = vmatpush2.bf16.msra.mxu1 %v818_v45  ;;  %1787 = vmatpush2.bf16.msra.mxu0 %v834_v46  ;;  %v4877_v45 = vld [vmem:[#allocation2 + $0x18c] ss:$16 sps:$4 sm:$0xff]   ;;  %v4879_v46 = vld [vmem:[#allocation2 + $0x180] ss:$16 sps:$4 sm:$0xff]  }
 0x126   :  { %1499 = vmatprep.subr.bf16.mxu1 %v5287_v36  ;;  %1788 = vmatprep.subr.bf16.mxu0 %v5287_v36 }
 0x129   :  { %1500 = vmatpush2.bf16.msra.mxu1 %v817_v63  ;;  %1789 = vmatpush2.bf16.msra.mxu0 %v833_v0  ;;  %v4880_v63 = vld [vmem:[#allocation2 + $0x188] ss:$16 sps:$4 sm:$0xff]   ;;  %v4881_v0 = vld [vmem:[#allocation2 + $0x1a4] ss:$16 sps:$4 sm:$0xff]  }
 0x12a   :  { %1501 = vmatprep.subr.bf16.mxu1 %v5287_v36  ;;  %1790 = vmatprep.subr.bf16.mxu0 %v5287_v36 }
 0x12d   :  { %1502 = vmatpush2.bf16.msra.mxu1 %v816_v1  ;;  %1791 = vmatpush2.bf16.msra.mxu0 %v832_v2  ;;  %v4883_v1 = vld [vmem:[#allocation2 + $0x1ac] ss:$16 sps:$4 sm:$0xff]   ;;  %v4980_v2 = vld [vmem:[%s6491_s3 + $0x20] sm:$0xff]  }
 0x12e   :  { %1503 = vmatprep.subr.bf16.mxu1 %v5287_v36  ;;  %1792 = vmatprep.subr.bf16.mxu0 %v5287_v36 }
 0x131   :  { %1504 = vmatpush2.bf16.msra.mxu1 %v815_v3  ;;  %1793 = vmatpush2.bf16.msra.mxu0 %v831_v4  ;;  %v4885_v3 = vld [vmem:[#allocation2 + $0x1a0] ss:$16 sps:$4 sm:$0xff]   ;;  %v4886_v4 = vld [vmem:[#allocation2 + $0x1a8] ss:$16 sps:$4 sm:$0xff]  }
 0x132   :  { %1505 = vmatprep.subr.bf16.mxu1 %v5287_v36  ;;  %1794 = vmatprep.subr.bf16.mxu0 %v5287_v36 }
 0x135   :  { %1506 = vmatpush2.bf16.msra.mxu1 %v814_v5  ;;  %1795 = vmatpush2.bf16.msra.mxu0 %v830_v6  ;;  %v4887_v5 = vld [vmem:[#allocation2 + $0x1c4] ss:$16 sps:$4 sm:$0xff]   ;;  %v4889_v6 = vld [vmem:[#allocation2 + $0x1cc] ss:$16 sps:$4 sm:$0xff]  }
 0x136   :  { %1507 = vmatprep.subr.bf16.mxu1 %v5287_v36  ;;  %1796 = vmatprep.subr.bf16.mxu0 %v5287_v36 }
 0x139   :  { %1508 = vmatpush2.bf16.msra.mxu1 %v813_v7  ;;  %1797 = vmatpush2.bf16.msra.mxu0 %v829_v8  ;;  %v4891_v7 = vld [vmem:[#allocation2 + $0x1c0] ss:$16 sps:$4 sm:$0xff]   ;;  %v4892_v8 = vld [vmem:[#allocation2 + $0x1c8] ss:$16 sps:$4 sm:$0xff]  }
 0x13a   :  { %2472 = vmatprep.subr.bf16.mxu0 %v5287_v36  ;;  %4603 = vmatprep.subr.bf16.mxu1 %v4905_v10 }
 0x13c   :  { %1510 = vmatmul.mubr.bf16.vlgmr.msra.gmra.mxu1 %v4803_v11  ;;  %1799 = vmatmul.mubr.bf16.vlgmr.msra.gmra.mxu0 %v4806_v12  ;;  %v4893_v11 = vld [vmem:[#allocation2 + $0x1e4] ss:$16 sps:$4 sm:$0xff]   ;;  %v4895_v12 = vld [vmem:[#allocation2 + $0x1ec] ss:$16 sps:$4 sm:$0xff]  }
 0x13d   :  { %1517 = vmatprep.mubr.bf16.mxu1 %v4809_v9  ;;  %1806 = vmatprep.mubr.bf16.mxu0 %v4811_v15  ;;  %v4993_v9 = vld [vmem:[%s6491_s3 + $0x18] sm:$0xff]   ;;  %v4994_v15 = vld [vmem:[%s6491_s3 + $0x10] sm:$0xff]  }
 0x13e   :  { %4604 = vmatpush3.bf16.msra.mxu1 %v4905_v10  ;;  %v4897_v10 = vld [vmem:[#allocation2 + $0x1e0] ss:$16 sps:$4 sm:$0xff]  }
 0x13f   :  { %4605 = vmatprep.subr.bf16.mxu1 %v4930_v30 }
 0x142   :  { %4606 = vmatpush3.bf16.msra.mxu1 %v4930_v30  ;;  %v4920_v30 = vld [vmem:[#allocation2 + $0x26c] ss:$16 sps:$4 sm:$0xff]  }
 0x143   :  { %4607 = vmatprep.subr.bf16.mxu1 %v4955_v57 }
 0x144   :  { %1518 = vmatmul.mubr.bf16.gmra.mxu1 %v4813_v13  ;;  %1807 = vmatmul.mubr.bf16.gmra.mxu0 %v4814_v14  ;;  %v4898_v13 = vld [vmem:[#allocation2 + $0x1e8] ss:$16 sps:$4 sm:$0xff]   ;;  %v4899_v14 = vld [vmem:[#allocation2 + $0x204] ss:$16 sps:$4 sm:$0xff]  }
 0x145   :  { %1525 = vmatprep.mubr.bf16.mxu1 %v4815_v16  ;;  %1814 = vmatprep.mubr.bf16.mxu0 %v4817_v17  ;;  %v4901_v16 = vld [vmem:[#allocation2 + $0x20c] ss:$16 sps:$4 sm:$0xff]  }
 0x146   :  { %4608 = vmatpush3.bf16.msra.mxu1 %v4955_v57  ;;  %v5001_v17 = vld [vmem:[%s6491_s3 + $0x8] sm:$0xff]   ;;  %v4943_v57 = vld [vmem:[#allocation2 + $0x2e0] ss:$16 sps:$4 sm:$0xff]  }
 0x147   :  { %4609 = vmatprep.subr.bf16.mxu1 %v4980_v2 }
 0x14a   :  { %4610 = vmatpush3.bf16.msra.mxu1 %v4980_v2  ;;  %v4967_v2 = vld [vmem:[#allocation2 + $0x34c] ss:$16 sps:$4 sm:$0xff]  }
 0x14b   :  { %4611 = vmatprep.subr.bf16.mxu1 %v4993_v9 }
 0x14c   :  { %1526 = vmatmul.mubr.bf16.gmra.mxu1 %v4819_v18  ;;  %1815 = vmatmul.mubr.bf16.gmra.mxu0 %v4820_v19  ;;  %v5002_v18 = vld [vmem:[%s6491_s3] sm:$0xff]  }
 0x14d   :  { %1533 = vmatprep.mubr.bf16.mxu1 %v4821_v20  ;;  %1822 = vmatprep.mubr.bf16.mxu0 %v4823_v21  ;;  %v4903_v19 = vld [vmem:[#allocation2 + $0x200] ss:$16 sps:$4 sm:$0xff]   ;;  %v4904_v20 = vld [vmem:[#allocation2 + $0x208] ss:$16 sps:$4 sm:$0xff]   ;;  %v4906_v21 = vld [vmem:[#allocation2 + $0x224] ss:$16 sps:$4 sm:$0xff]  }
 0x14e   :  { %4612 = vmatpush3.bf16.msra.mxu1 %v4993_v9  ;;  %v4962_v9 = vld [vmem:[#allocation2 + $0x340] ss:$16 sps:$4 sm:$0xff]  }
 0x14f   :  { %4613 = vmatprep.subr.bf16.mxu1 %v4994_v15 }
 0x152   :  { %4614 = vmatpush3.bf16.msra.mxu1 %v4994_v15  ;;  %v4965_v15 = vld [vmem:[#allocation2 + $0x348] ss:$16 sps:$4 sm:$0xff]  }
 0x153   :  { %4615 = vmatprep.subr.bf16.mxu1 %v5001_v17 }
 0x154   :  { %1534 = vmatmul.mubr.bf16.gmra.mxu1 %v4825_v22  ;;  %1823 = vmatmul.mubr.bf16.gmra.mxu0 %v4826_v23  ;;  %v4908_v22 = vld [vmem:[#allocation2 + $0x22c] ss:$16 sps:$4 sm:$0xff]   ;;  %v4910_v23 = vld [vmem:[#allocation2 + $0x220] ss:$16 sps:$4 sm:$0xff]  }
 0x155   :  { %1541 = vmatprep.mubr.bf16.mxu1 %v4827_v24  ;;  %1830 = vmatprep.mubr.bf16.mxu0 %v4829_v25  ;;  %v4911_v24 = vld [vmem:[#allocation2 + $0x228] ss:$16 sps:$4 sm:$0xff]   ;;  %v4912_v25 = vld [vmem:[#allocation2 + $0x244] ss:$16 sps:$4 sm:$0xff]  }
 0x156   :  { %4616 = vmatpush3.bf16.msra.mxu1 %v5001_v17 }
 0x157   :  { %4617 = vmatprep.subr.bf16.mxu1 %v5002_v18 }
 0x15a   :  { %4618 = vmatpush3.bf16.msra.mxu1 %v5002_v18 }
 0x15b   :  { %2761 = vmatprep.subr.bf16.mxu1 %v5287_v36 }
 0x15c   :  { %1542 = vmatmul.mubr.bf16.gmra.mxu1 %v4831_v26  ;;  %1831 = vmatmul.mubr.bf16.gmra.mxu0 %v4832_v27  ;;  %v4914_v26 = vld [vmem:[#allocation2 + $0x24c] ss:$16 sps:$4 sm:$0xff]   ;;  %v4916_v27 = vld [vmem:[#allocation2 + $0x240] ss:$16 sps:$4 sm:$0xff]  }
 0x15d   :  { %1549 = vmatprep.mubr.bf16.mxu1 %v4833_v28  ;;  %1838 = vmatprep.mubr.bf16.mxu0 %v4835_v29  ;;  %v4917_v28 = vld [vmem:[#allocation2 + $0x248] ss:$16 sps:$4 sm:$0xff]   ;;  %v4918_v29 = vld [vmem:[#allocation2 + $0x264] ss:$16 sps:$4 sm:$0xff]  }
 0x164   :  { %1550 = vmatmul.mubr.bf16.gmra.mxu1 %v4837_v31  ;;  %1839 = vmatmul.mubr.bf16.gmra.mxu0 %v4838_v32  ;;  %v4922_v31 = vld [vmem:[#allocation2 + $0x260] ss:$16 sps:$4 sm:$0xff]   ;;  %v4923_v32 = vld [vmem:[#allocation2 + $0x268] ss:$16 sps:$4 sm:$0xff]  }
 0x165   :  { %1557 = vmatprep.mubr.bf16.mxu1 %v4839_v33  ;;  %1846 = vmatprep.mubr.bf16.mxu0 %v4841_v34  ;;  %v4926_v33 = vld [vmem:[#allocation2 + $0x284] ss:$16 sps:$4 sm:$0xff]   ;;  %v4929_v34 = vld [vmem:[#allocation2 + $0x28c] ss:$16 sps:$4 sm:$0xff]  }
 0x16c   :  { %1558 = vmatmul.mubr.bf16.gmra.mxu1 %v4843_v35  ;;  %1847 = vmatmul.mubr.bf16.gmra.mxu0 %v4844_v38  ;;  %v4924_v35 = vld [vmem:[#allocation2 + $0x280] ss:$16 sps:$4 sm:$0xff]   ;;  %v4927_v38 = vld [vmem:[#allocation2 + $0x288] ss:$16 sps:$4 sm:$0xff]  }
 0x16d   :  { %1565 = vmatprep.mubr.bf16.mxu1 %v4845_v47  ;;  %1854 = vmatprep.mubr.bf16.mxu0 %v4847_v48  ;;  %v4933_v47 = vld [vmem:[#allocation2 + $0x2a4] ss:$16 sps:$4 sm:$0xff]   ;;  %v4936_v48 = vld [vmem:[#allocation2 + $0x2ac] ss:$16 sps:$4 sm:$0xff]  }
 0x174   :  { %1566 = vmatmul.mubr.bf16.gmra.mxu1 %v4849_v51  ;;  %1855 = vmatmul.mubr.bf16.gmra.mxu0 %v4850_v52  ;;  %v4931_v51 = vld [vmem:[#allocation2 + $0x2a0] ss:$16 sps:$4 sm:$0xff]   ;;  %v4934_v52 = vld [vmem:[#allocation2 + $0x2a8] ss:$16 sps:$4 sm:$0xff]  }
 0x175   :  { %1573 = vmatprep.mubr.bf16.mxu1 %v4851_v55  ;;  %1862 = vmatprep.mubr.bf16.mxu0 %v4853_v56  ;;  %v4939_v55 = vld [vmem:[#allocation2 + $0x2c4] ss:$16 sps:$4 sm:$0xff]   ;;  %v4942_v56 = vld [vmem:[#allocation2 + $0x2cc] ss:$16 sps:$4 sm:$0xff]  }
 0x17c   :  { %1574 = vmatmul.mubr.bf16.gmra.mxu1 %v4855_v49  ;;  %1863 = vmatmul.mubr.bf16.gmra.mxu0 %v4856_v53  ;;  %v4937_v49 = vld [vmem:[#allocation2 + $0x2c0] ss:$16 sps:$4 sm:$0xff]   ;;  %v4940_v53 = vld [vmem:[#allocation2 + $0x2c8] ss:$16 sps:$4 sm:$0xff]  }
 0x17d   :  { %1581 = vmatprep.mubr.bf16.mxu1 %v4857_v50  ;;  %1870 = vmatprep.mubr.bf16.mxu0 %v4859_v54  ;;  %v4945_v50 = vld [vmem:[#allocation2 + $0x2e4] ss:$16 sps:$4 sm:$0xff]   ;;  %v4948_v54 = vld [vmem:[#allocation2 + $0x2ec] ss:$16 sps:$4 sm:$0xff]  }
 0x184   :  { %1582 = vmatmul.mubr.bf16.gmra.mxu1 %v4861_v58  ;;  %1871 = vmatmul.mubr.bf16.gmra.mxu0 %v4862_v39  ;;  %v4946_v58 = vld [vmem:[#allocation2 + $0x2e8] ss:$16 sps:$4 sm:$0xff]   ;;  %v4951_v39 = vld [vmem:[#allocation2 + $0x304] ss:$16 sps:$4 sm:$0xff]  }
 0x185   :  { %1589 = vmatprep.mubr.bf16.mxu1 %v4863_v43  ;;  %1878 = vmatprep.mubr.bf16.mxu0 %v4865_v40  ;;  %v4954_v43 = vld [vmem:[#allocation2 + $0x30c] ss:$16 sps:$4 sm:$0xff]   ;;  %v4949_v40 = vld [vmem:[#allocation2 + $0x300] ss:$16 sps:$4 sm:$0xff]  }
 0x18c   :  { %1590 = vmatmul.mubr.bf16.gmra.mxu1 %v4867_v44  ;;  %1879 = vmatmul.mubr.bf16.gmra.mxu0 %v4868_v59  ;;  %v4952_v44 = vld [vmem:[#allocation2 + $0x308] ss:$16 sps:$4 sm:$0xff]   ;;  %v4958_v59 = vld [vmem:[#allocation2 + $0x324] ss:$16 sps:$4 sm:$0xff]  }
 0x18d   :  { %1597 = vmatprep.mubr.bf16.mxu1 %v4869_v60  ;;  %1886 = vmatprep.mubr.bf16.mxu0 %v4871_v61  ;;  %v4961_v60 = vld [vmem:[#allocation2 + $0x32c] ss:$16 sps:$4 sm:$0xff]  }
 0x194   :  { %1598 = vmatmul.mubr.bf16.gmra.mxu1 %v4873_v62  ;;  %1887 = vmatmul.mubr.bf16.gmra.mxu0 %v4874_v41 }
 0x195   :  { %1605 = vmatprep.mubr.bf16.mxu1 %v4875_v42  ;;  %1894 = vmatprep.mubr.bf16.mxu0 %v4877_v45 }
 0x19c   :  { %1606 = vmatmul.mubr.bf16.gmra.mxu1 %v4879_v46  ;;  %1895 = vmatmul.mubr.bf16.gmra.mxu0 %v4880_v63  ;;  %v4956_v63 = vld [vmem:[#allocation2 + $0x320] ss:$16 sps:$4 sm:$0xff]  }
 0x19d   :  { %1613 = vmatprep.mubr.bf16.mxu1 %v4881_v0  ;;  %1902 = vmatprep.mubr.bf16.mxu0 %v4883_v1  ;;  %v4959_v0 = vld [vmem:[#allocation2 + $0x328] ss:$16 sps:$4 sm:$0xff]   ;;  %v4964_v1 = vld [vmem:[#allocation2 + $0x344] ss:$16 sps:$4 sm:$0xff]  }
 0x1a4   :  { %1614 = vmatmul.mubr.bf16.gmra.mxu1 %v4885_v3  ;;  %1903 = vmatmul.mubr.bf16.gmra.mxu0 %v4886_v4 }
 0x1a5   :  { %1621 = vmatprep.mubr.bf16.mxu1 %v4887_v5  ;;  %1910 = vmatprep.mubr.bf16.mxu0 %v4889_v6 }
 0x1ac   :  { %1622 = vmatmul.mubr.bf16.gmra.mxu1 %v4891_v7  ;;  %1911 = vmatmul.mubr.bf16.gmra.mxu0 %v4892_v8 }
 0x1ad   :  { %1629 = vmatprep.mubr.bf16.mxu1 %v4893_v11  ;;  %1918 = vmatprep.mubr.bf16.mxu0 %v4895_v12 }
 0x1b4   :  { %1630 = vmatmul.mubr.bf16.gmra.mxu1 %v4897_v10  ;;  %1919 = vmatmul.mubr.bf16.gmra.mxu0 %v4898_v13  ;;  %v4970_v10 = vld [vmem:[#allocation2 + $0x364] ss:$16 sps:$4 sm:$0xff]   ;;  %v4973_v13 = vld [vmem:[#allocation2 + $0x36c] ss:$16 sps:$4 sm:$0xff]  }
 0x1b5   :  { %1637 = vmatprep.mubr.bf16.mxu1 %v4899_v14  ;;  %1926 = vmatprep.mubr.bf16.mxu0 %v4901_v16 }
 0x1bc   :  { %1638 = vmatmul.mubr.bf16.gmra.mxu1 %v4903_v19  ;;  %1927 = vmatmul.mubr.bf16.gmra.mxu0 %v4904_v20 }
 0x1bd   :  { %1645 = vmatprep.mubr.bf16.mxu1 %v4906_v21  ;;  %1934 = vmatprep.mubr.bf16.mxu0 %v4908_v22 }
 0x1c4   :  { %1646 = vmatmul.mubr.bf16.gmra.mxu1 %v4910_v23  ;;  %1935 = vmatmul.mubr.bf16.gmra.mxu0 %v4911_v24  ;;  %v4968_v23 = vld [vmem:[#allocation2 + $0x360] ss:$16 sps:$4 sm:$0xff]   ;;  %v4971_v24 = vld [vmem:[#allocation2 + $0x368] ss:$16 sps:$4 sm:$0xff]  }
 0x1c5   :  { %1653 = vmatprep.mubr.bf16.mxu1 %v4912_v25  ;;  %1942 = vmatprep.mubr.bf16.mxu0 %v4914_v26  ;;  %v4976_v25 = vld [vmem:[#allocation2 + $0x384] ss:$16 sps:$4 sm:$0xff]   ;;  %v4979_v26 = vld [vmem:[#allocation2 + $0x38c] ss:$16 sps:$4 sm:$0xff]  }
 0x1cc   :  { %1654 = vmatmul.mubr.bf16.gmra.mxu1 %v4916_v27  ;;  %1943 = vmatmul.mubr.bf16.gmra.mxu0 %v4917_v28 }
 0x1cd   :  { %1661 = vmatprep.mubr.bf16.mxu1 %v4918_v29  ;;  %1950 = vmatprep.mubr.bf16.mxu0 %v4920_v30 }
 0x1d4   :  { %1662 = vmatmul.mubr.bf16.gmra.mxu1 %v4922_v31  ;;  %1951 = vmatmul.mubr.bf16.gmra.mxu0 %v4923_v32 }
 0x1d5   :  { %1669 = vmatprep.mubr.bf16.mxu1 %v4926_v33  ;;  %1958 = vmatprep.mubr.bf16.mxu0 %v4929_v34 }
 0x1dc   :  { %1670 = vmatmul.mubr.bf16.gmra.mxu1 %v4924_v35  ;;  %1959 = vmatmul.mubr.bf16.gmra.mxu0 %v4927_v38  ;;  %v4974_v35 = vld [vmem:[#allocation2 + $0x380] ss:$16 sps:$4 sm:$0xff]   ;;  %v4977_v38 = vld [vmem:[#allocation2 + $0x388] ss:$16 sps:$4 sm:$0xff]  }
 0x1dd   :  { %1677 = vmatprep.mubr.bf16.mxu1 %v4933_v47  ;;  %1966 = vmatprep.mubr.bf16.mxu0 %v4936_v48  ;;  %v4983_v47 = vld [vmem:[#allocation2 + $0x3a4] ss:$16 sps:$4 sm:$0xff]   ;;  %v4986_v48 = vld [vmem:[#allocation2 + $0x3ac] ss:$16 sps:$4 sm:$0xff]  }
 0x1e4   :  { %1678 = vmatmul.mubr.bf16.gmra.mxu1 %v4931_v51  ;;  %1967 = vmatmul.mubr.bf16.gmra.mxu0 %v4934_v52 }
 0x1e5   :  { %1685 = vmatprep.mubr.bf16.mxu1 %v4939_v55  ;;  %1974 = vmatprep.mubr.bf16.mxu0 %v4942_v56 }
 0x1ec   :  { %1686 = vmatmul.mubr.bf16.gmra.mxu1 %v4937_v49  ;;  %1975 = vmatmul.mubr.bf16.gmra.mxu0 %v4940_v53 }
 0x1ed   :  { %1693 = vmatprep.mubr.bf16.mxu1 %v4945_v50  ;;  %1982 = vmatprep.mubr.bf16.mxu0 %v4948_v54 }
 0x1f4   :  { %1694 = vmatmul.mubr.bf16.gmra.mxu1 %v4943_v57  ;;  %1983 = vmatmul.mubr.bf16.gmra.mxu0 %v4946_v58  ;;  %v4981_v57 = vld [vmem:[#allocation2 + $0x3a0] ss:$16 sps:$4 sm:$0xff]   ;;  %v4984_v58 = vld [vmem:[#allocation2 + $0x3a8] ss:$16 sps:$4 sm:$0xff]  }
 0x1f5   :  { %1701 = vmatprep.mubr.bf16.mxu1 %v4951_v39  ;;  %1990 = vmatprep.mubr.bf16.mxu0 %v4954_v43  ;;  %v4989_v39 = vld [vmem:[#allocation2 + $0x3c4] ss:$16 sps:$4 sm:$0xff]   ;;  %v4992_v43 = vld [vmem:[#allocation2 + $0x3cc] ss:$16 sps:$4 sm:$0xff]  }
 0x1fc   :  { %v5612_v61 = vpop.f32.mrf.mxu1  ;;  %1702 = vmatmul.mubr.bf16.gmra.mxu1 %v4949_v40  ;;  %v5614_v62 = vpop.f32.mrf.mxu0  ;;  %1991 = vmatmul.mubr.bf16.gmra.mxu0 %v4952_v44 }
 0x1fd   :  { %1709 = vmatprep.mubr.bf16.mxu1 %v4958_v59  ;;  %1998 = vmatprep.mubr.bf16.mxu0 %v4961_v60 }
 0x1fe   :  { %v1513_v41 = vpop.f32.mrf.mxu1  ;;  %v1802_v42 = vpop.f32.mrf.mxu0 }
 0x200   :  { %v5616_v45 = vpop.f32.mrf.mxu1  ;;  %v5618_v46 = vpop.f32.mrf.mxu0 }
 0x202   :  { %v1516_v3 = vpop.f32.mrf.mxu1  ;;  %v1805_v4 = vpop.f32.mrf.mxu0 }
 0x203   :  { %v4997_v3 = vld [vmem:[#allocation2 + $0x3e4] ss:$16 sps:$4 sm:$0xff]   ;;  %v5000_v4 = vld [vmem:[#allocation2 + $0x3ec] ss:$16 sps:$4 sm:$0xff]  }
 0x204   :  { %v5620_v5 = vpop.f32.mrf.mxu1  ;;  %1710 = vmatmul.mubr.bf16.gmra.mxu1 %v4956_v63  ;;  %v5622_v6 = vpop.f32.mrf.mxu0  ;;  %1999 = vmatmul.mubr.bf16.gmra.mxu0 %v4959_v0 }
 0x205   :  { %1717 = vmatprep.mubr.bf16.mxu1 %v4964_v1  ;;  %2006 = vmatprep.mubr.bf16.mxu0 %v4967_v2  ;;  %v4987_v1 = vld [vmem:[#allocation2 + $0x3c0] ss:$16 sps:$4 sm:$0xff]   ;;  %v4990_v2 = vld [vmem:[#allocation2 + $0x3c8] ss:$16 sps:$4 sm:$0xff]  }
 0x206   :  { %v1521_v7 = vpop.f32.mrf.mxu1  ;;  %v1810_v8 = vpop.f32.mrf.mxu0 }
 0x208   :  { %v5624_v11 = vpop.f32.mrf.mxu1  ;;  %v5626_v12 = vpop.f32.mrf.mxu0 }
 0x20a   :  { %v1524_v14 = vpop.f32.mrf.mxu1  ;;  %v1813_v16 = vpop.f32.mrf.mxu0 }
 0x20b   :  { %v1804_v14 = vadd.f32 %v5618_v46, %v5616_v45  ;;  %v1812_v45 = vadd.f32 %v5626_v12, %v5624_v11 }
 0x20c   :  { %v5628_v17 = vpop.f32.mrf.mxu1  ;;  %1718 = vmatmul.mubr.bf16.gmra.mxu1 %v4962_v9  ;;  %v5630_v18 = vpop.f32.mrf.mxu0  ;;  %2007 = vmatmul.mubr.bf16.gmra.mxu0 %v4965_v15 }
 0x20d   :  { %1725 = vmatprep.mubr.bf16.mxu1 %v4970_v10  ;;  %2014 = vmatprep.mubr.bf16.mxu0 %v4973_v13 }
 0x20e   :  { %v1529_v19 = vpop.f32.mrf.mxu1  ;;  %v1818_v20 = vpop.f32.mrf.mxu0 }
 0x20f   :  { %v4995_v20 = vld [vmem:[#allocation2 + $0x3e0] ss:$16 sps:$4 sm:$0xff]  }
 0x210   :  { %v5632_v21 = vpop.f32.mrf.mxu1  ;;  %v5634_v22 = vpop.f32.mrf.mxu0 }
 0x212   :  { %v1532_v27 = vpop.f32.mrf.mxu1  ;;  %v1821_v28 = vpop.f32.mrf.mxu0 }
 0x214   :  { %v5636_v29 = vpop.f32.mrf.mxu1  ;;  %1726 = vmatmul.mubr.bf16.gmra.mxu1 %v4968_v23  ;;  %v5638_v30 = vpop.f32.mrf.mxu0  ;;  %2015 = vmatmul.mubr.bf16.gmra.mxu0 %v4971_v24  ;;  %v4998_v23 = vld [vmem:[#allocation2 + $0x3e8] ss:$16 sps:$4 sm:$0xff]   ;;  %v1801_v24 = vadd.f32 %v5614_v62, %v5612_v61  ;;  %v1809_v61 = vadd.f32 %v5622_v6, %v5620_v5 }
 0x215   :  { %1733 = vmatprep.mubr.bf16.mxu1 %v4976_v25  ;;  %2022 = vmatprep.mubr.bf16.mxu0 %v4979_v26  ;;  %v1825_v6 = vadd.f32 %v5638_v30, %v5636_v29 }
 0x216   :  { %v1537_v31 = vpop.f32.mrf.mxu1  ;;  %v1826_v32 = vpop.f32.mrf.mxu0  ;;  %v2055_v27 = vpack.c.bf16 %v1804_v14, %v1801_v24 }
 0x218   :  { %v5640_v33 = vpop.f32.mrf.mxu1  ;;  %v5642_v34 = vpop.f32.mrf.mxu0 }
 0x219   :  { %v1828_v11 = vadd.f32 %v5642_v34, %v5640_v33 }
 0x21a   :  { %v1540_v51 = vpop.f32.mrf.mxu1  ;;  %v1829_v52 = vpop.f32.mrf.mxu0 }
 0x21c   :  { %v5644_v55 = vpop.f32.mrf.mxu1  ;;  %1734 = vmatmul.mubr.bf16.gmra.mxu1 %v4974_v35  ;;  %v5646_v56 = vpop.f32.mrf.mxu0  ;;  %2023 = vmatmul.mubr.bf16.gmra.mxu0 %v4977_v38  ;;  %v1820_v35 = vadd.f32 %v5634_v22, %v5632_v21 }
 0x21d   :  { %1741 = vmatprep.mubr.bf16.mxu1 %v4983_v47  ;;  %2030 = vmatprep.mubr.bf16.mxu0 %v4986_v48  ;;  %v1817_v47 = vadd.f32 %v5630_v18, %v5628_v17  ;;  %v2056_v48 = vpack.c.bf16 %v1812_v45, %v1809_v61  ;;  %v1833_v22 = vadd.f32 %v5646_v56, %v5644_v55 }
 0x21e   :  { %v1545_v49 = vpop.f32.mrf.mxu1  ;;  %v1834_v53 = vpop.f32.mrf.mxu0 }
 0x220   :  { %v5648_v50 = vpop.f32.mrf.mxu1  ;;  %v5650_v54 = vpop.f32.mrf.mxu0 }
 0x221   :  { %v1836_v5 = vadd.f32 %v5650_v54, %v5648_v50 }
 0x222   :  { %v1548_v40 = vpop.f32.mrf.mxu1  ;;  %v1837_v44 = vpop.f32.mrf.mxu0 }
 0x224   :  { %v5652_v59 = vpop.f32.mrf.mxu1  ;;  %1742 = vmatmul.mubr.bf16.gmra.mxu1 %v4981_v57  ;;  %v5654_v60 = vpop.f32.mrf.mxu0  ;;  %2031 = vmatmul.mubr.bf16.gmra.mxu0 %v4984_v58  ;;  %v2058_v57 = vpack.c.bf16 %v1828_v11, %v1825_v6 }
 0x225   :  { %1749 = vmatprep.mubr.bf16.mxu1 %v4989_v39  ;;  %2038 = vmatprep.mubr.bf16.mxu0 %v4992_v43  ;;  %v2059_v43 = vpack.c.bf16 %v1836_v5, %v1833_v22  ;;  %v1841_v29 = vadd.f32 %v5654_v60, %v5652_v59 }
 0x226   :  { %v1553_v41 = vpop.f32.mrf.mxu1  ;;  %v1842_v42 = vpop.f32.mrf.mxu0 }
 0x228   :  { %v5656_v63 = vpop.f32.mrf.mxu1  ;;  %v1843_v0 = vpop.f32.mrf.mxu0 }
 0x229   :  { %v1844_v33 = vadd.f32 %v1843_v0, %v5656_v63 }
 0x22a   :  { %v1556_v7 = vpop.f32.mrf.mxu1  ;;  %v1845_v8 = vpop.f32.mrf.mxu0 }
 0x22b   :  { %v2060_v55 = vpack.c.bf16 %v1844_v33, %v1841_v29 }
 0x22c   :  { %v1559_v9 = vpop.f32.mrf.mxu1  ;;  %1750 = vmatmul.mubr.bf16.gmra.mxu1 %v4987_v1  ;;  %v1848_v15 = vpop.f32.mrf.mxu0  ;;  %2039 = vmatmul.mubr.bf16.gmra.mxu0 %v4990_v2 }
 0x22d   :  { %1757 = vmatprep.mubr.bf16.mxu1 %v4997_v3  ;;  %2046 = vmatprep.mubr.bf16.mxu0 %v5000_v4  ;;  %v1849_v42 = vadd.f32 %v1848_v15, %v1559_v9 }
 0x22e   :  { %v1561_v10 = vpop.f32.mrf.mxu1  ;;  %v1850_v13 = vpop.f32.mrf.mxu0 }
 0x230   :  { %v1562_v16 = vpop.f32.mrf.mxu1  ;;  %v1851_v19 = vpop.f32.mrf.mxu0 }
 0x231   :  { %v1852_v54 = vadd.f32 %v1851_v19, %v1562_v16 }
 0x232   :  { %v1564_v25 = vpop.f32.mrf.mxu1  ;;  %v1853_v26 = vpop.f32.mrf.mxu0 }
 0x233   :  { %v2061_v2 = vpack.c.bf16 %v1852_v54, %v1849_v42 }
 0x234   :  { %v1567_v28 = vpop.f32.mrf.mxu1  ;;  %1758 = vmatmul.mubr.bf16.gmra.mxu1 %v4995_v20  ;;  %v1856_v31 = vpop.f32.mrf.mxu0  ;;  %2047 = vmatmul.mubr.bf16.gmra.mxu0 %v4998_v23 }
 0x235   :  { %4619 = vmatprep.mubr.bf16.mxu1 %v2055_v27  ;;  %2504 = vmatprep.mubr.bf16.mxu0 %v5463_v37  ;;  %v2057_v37 = vpack.c.bf16 %v1820_v35, %v1817_v47  ;;  %v1857_v10 = vadd.f32 %v1856_v31, %v1567_v28 }
 0x236   :  { %v1569_v46 = vpop.f32.mrf.mxu1  ;;  %v1858_v32 = vpop.f32.mrf.mxu0 }
 0x238   :  { %v1570_v62 = vpop.f32.mrf.mxu1  ;;  %v1859_v38 = vpop.f32.mrf.mxu0 }
 0x239   :  { %v1860_v7 = vadd.f32 %v1859_v38, %v1570_v62 }
 0x23a   :  { %v1572_v51 = vpop.f32.mrf.mxu1  ;;  %v1861_v52 = vpop.f32.mrf.mxu0 }
 0x23b   :  { %v2062_v59 = vpack.c.bf16 %v1860_v7, %v1857_v10 }
 0x23c   :  { %v1575_v49 = vpop.f32.mrf.mxu1  ;;  %v1864_v53 = vpop.f32.mrf.mxu0  ;;  %4620 = vmatmul.mubr.bf16.vlgmr.msra.gmra.mxu1 %v2056_v48 }
 0x23d   :  { %4623 = vmatprep.mubr.bf16.mxu1 %v2057_v37  ;;  %v1865_v16 = vadd.f32 %v1864_v53, %v1575_v49 }
 0x23e   :  { %v1577_v12 = vpop.f32.mrf.mxu1  ;;  %v1866_v21 = vpop.f32.mrf.mxu0 }
 0x240   :  { %v1578_v17 = vpop.f32.mrf.mxu1  ;;  %v1867_v18 = vpop.f32.mrf.mxu0 }
 0x241   :  { %v1868_v0 = vadd.f32 %v1867_v18, %v1578_v17 }
 0x242   :  { %v1580_v58 = vpop.f32.mrf.mxu1  ;;  %v1869_v39 = vpop.f32.mrf.mxu0 }
 0x243   :  { %v2063_v9 = vpack.c.bf16 %v1868_v0, %v1865_v16 }
 0x244   :  { %v1583_v40 = vpop.f32.mrf.mxu1  ;;  %v1872_v44 = vpop.f32.mrf.mxu0  ;;  %4624 = vmatmul.mubr.bf16.gmra.mxu1 %v2058_v57 }
 0x245   :  { %4627 = vmatprep.mubr.bf16.mxu1 %v2059_v43  ;;  %v1873_v27 = vadd.f32 %v1872_v44, %v1583_v40 }
 0x246   :  { %v1585_v34 = vpop.f32.mrf.mxu1  ;;  %v1874_v50 = vpop.f32.mrf.mxu0 }
 0x248   :  { %v1586_v30 = vpop.f32.mrf.mxu1  ;;  %v1875_v41 = vpop.f32.mrf.mxu0 }
 0x249   :  { %v1876_v23 = vadd.f32 %v1875_v41, %v1586_v30 }
 0x24a   :  { %v1588_v56 = vpop.f32.mrf.mxu1  ;;  %v1877_v1 = vpop.f32.mrf.mxu0 }
 0x24b   :  { %v2064_v28 = vpack.c.bf16 %v1876_v23, %v1873_v27 }
 0x24c   :  { %v1591_v3 = vpop.f32.mrf.mxu1  ;;  %v1880_v4 = vpop.f32.mrf.mxu0  ;;  %4628 = vmatmul.mubr.bf16.gmra.mxu1 %v2060_v55 }
 0x24d   :  { %4631 = vmatprep.mubr.bf16.mxu1 %v2061_v2  ;;  %v1881_v32 = vadd.f32 %v1880_v4, %v1591_v3 }
 0x24e   :  { %v1593_v8 = vpop.f32.mrf.mxu1  ;;  %v1882_v63 = vpop.f32.mrf.mxu0 }
 0x250   :  { %v1594_v13 = vpop.f32.mrf.mxu1  ;;  %v1883_v14 = vpop.f32.mrf.mxu0 }
 0x251   :  { %v1884_v26 = vadd.f32 %v1883_v14, %v1594_v13 }
 0x252   :  { %v1596_v60 = vpop.f32.mrf.mxu1  ;;  %v1885_v19 = vpop.f32.mrf.mxu0 }
 0x253   :  { %v2065_v61 = vpack.c.bf16 %v1884_v26, %v1881_v32 }
 0x254   :  { %v1599_v15 = vpop.f32.mrf.mxu1  ;;  %v1888_v20 = vpop.f32.mrf.mxu0  ;;  %4632 = vmatmul.mubr.bf16.gmra.mxu1 %v2062_v59 }
 0x255   :  { %4635 = vmatprep.mubr.bf16.mxu1 %v2063_v9  ;;  %v1889_v52 = vadd.f32 %v1888_v20, %v1599_v15 }
 0x256   :  { %v1601_v24 = vpop.f32.mrf.mxu1  ;;  %v1890_v25 = vpop.f32.mrf.mxu0 }
 0x258   :  { %v1602_v45 = vpop.f32.mrf.mxu1  ;;  %v1891_v46 = vpop.f32.mrf.mxu0 }
 0x259   :  { %v1892_v47 = vadd.f32 %v1891_v46, %v1602_v45 }
 0x25a   :  { %v1604_v31 = vpop.f32.mrf.mxu1  ;;  %v1893_v35 = vpop.f32.mrf.mxu0 }
 0x25b   :  { %v2066_v12 = vpack.c.bf16 %v1892_v47, %v1889_v52 }
 0x25c   :  { %v1607_v62 = vpop.f32.mrf.mxu1  ;;  %v1896_v38 = vpop.f32.mrf.mxu0  ;;  %4636 = vmatmul.mubr.bf16.gmra.mxu1 %v2064_v28 }
 0x25d   :  { %4639 = vmatprep.mubr.bf16.mxu1 %v2065_v61  ;;  %v1897_v53 = vadd.f32 %v1896_v38, %v1607_v62 }
 0x25e   :  { %v1609_v48 = vpop.f32.mrf.mxu1  ;;  %v1898_v51 = vpop.f32.mrf.mxu0 }
 0x260   :  { %v1610_v37 = vpop.f32.mrf.mxu1  ;;  %v1899_v49 = vpop.f32.mrf.mxu0 }
 0x261   :  { %v1900_v11 = vadd.f32 %v1899_v49, %v1610_v37 }
 0x262   :  { %v1612_v21 = vpop.f32.mrf.mxu1  ;;  %v1901_v5 = vpop.f32.mrf.mxu0 }
 0x263   :  { %v2067_v6 = vpack.c.bf16 %v1900_v11, %v1897_v53 }
 0x264   :  { %v1615_v17 = vpop.f32.mrf.mxu1  ;;  %v1904_v18 = vpop.f32.mrf.mxu0  ;;  %4640 = vmatmul.mubr.bf16.gmra.mxu1 %v2066_v12 }
 0x265   :  { %4643 = vmatprep.mubr.bf16.mxu1 %v2067_v6  ;;  %v1905_v43 = vadd.f32 %v1904_v18, %v1615_v17 }
 0x266   :  { %v1617_v22 = vpop.f32.mrf.mxu1  ;;  %v1906_v57 = vpop.f32.mrf.mxu0 }
 0x268   :  { %v1618_v58 = vpop.f32.mrf.mxu1  ;;  %v1907_v39 = vpop.f32.mrf.mxu0 }
 0x269   :  { %v1908_v40 = vadd.f32 %v1907_v39, %v1618_v58 }
 0x26a   :  { %v1620_v44 = vpop.f32.mrf.mxu1  ;;  %v1909_v33 = vpop.f32.mrf.mxu0 }
 0x26b   :  { %v2068_v34 = vpack.c.bf16 %v1908_v40, %v1905_v43 }
 0x26c   :  { %v1623_v50 = vpop.f32.mrf.mxu1  ;;  %v1912_v54 = vpop.f32.mrf.mxu0 }
 0x26d   :  { %4644 = vmatmul.mubr.bf16.gmra.mxu1 %v2068_v34  ;;  %v1913_v55 = vadd.f32 %v1912_v54, %v1623_v50 }
 0x26e   :  { %v1625_v29 = vpop.f32.mrf.mxu1  ;;  %v1914_v30 = vpop.f32.mrf.mxu0 }
 0x270   :  { %v1626_v41 = vpop.f32.mrf.mxu1  ;;  %v1915_v42 = vpop.f32.mrf.mxu0 }
 0x271   :  { %v1916_v56 = vadd.f32 %v1915_v42, %v1626_v41 }
 0x272   :  { %v1628_v1 = vpop.f32.mrf.mxu1  ;;  %v1917_v2 = vpop.f32.mrf.mxu0 }
 0x273   :  { %v2069_v3 = vpack.c.bf16 %v1916_v56, %v1913_v55 }
 0x274   :  { %v1631_v4 = vpop.f32.mrf.mxu1  ;;  %v1920_v7 = vpop.f32.mrf.mxu0 }
 0x275   :  { %4647 = vmatprep.mubr.bf16.mxu1 %v2069_v3  ;;  %v1921_v13 = vadd.f32 %v1920_v7, %v1631_v4 }
 0x276   :  { %v1633_v8 = vpop.f32.mrf.mxu1  ;;  %v1922_v63 = vpop.f32.mrf.mxu0 }
 0x278   :  { %v1634_v0 = vpop.f32.mrf.mxu1  ;;  %v1923_v10 = vpop.f32.mrf.mxu0 }
 0x279   :  { %v1924_v14 = vadd.f32 %v1923_v10, %v1634_v0 }
 0x27a   :  { %v1636_v16 = vpop.f32.mrf.mxu1  ;;  %v1925_v59 = vpop.f32.mrf.mxu0 }
 0x27b   :  { %v2070_v60 = vpack.c.bf16 %v1924_v14, %v1921_v13 }
 0x27c   :  { %v1639_v19 = vpop.f32.mrf.mxu1  ;;  %v1928_v9 = vpop.f32.mrf.mxu0 }
 0x27d   :  { %4648 = vmatmul.mubr.bf16.gmra.mxu1 %v2070_v60  ;;  %v1929_v25 = vadd.f32 %v1928_v9, %v1639_v19 }
 0x27e   :  { %v1641_v15 = vpop.f32.mrf.mxu1  ;;  %v1930_v20 = vpop.f32.mrf.mxu0 }
 0x280   :  { %v1642_v23 = vpop.f32.mrf.mxu1  ;;  %v1931_v24 = vpop.f32.mrf.mxu0 }
 0x281   :  { %v1932_v26 = vadd.f32 %v1931_v24, %v1642_v23 }
 0x282   :  { %v1644_v27 = vpop.f32.mrf.mxu1  ;;  %v1933_v45 = vpop.f32.mrf.mxu0 }
 0x283   :  { %v2071_v46 = vpack.c.bf16 %v1932_v26, %v1929_v25 }
 0x284   :  { %v1647_v32 = vpop.f32.mrf.mxu1  ;;  %v1936_v28 = vpop.f32.mrf.mxu0 }
 0x285   :  { %4651 = vmatprep.mubr.bf16.mxu1 %v2071_v46  ;;  %v1937_v38 = vadd.f32 %v1936_v28, %v1647_v32 }
 0x286   :  { %v1649_v31 = vpop.f32.mrf.mxu1  ;;  %v1938_v35 = vpop.f32.mrf.mxu0 }
 0x288   :  { %v1650_v61 = vpop.f32.mrf.mxu1  ;;  %v1939_v62 = vpop.f32.mrf.mxu0 }
 0x289   :  { %v1940_v47 = vadd.f32 %v1939_v62, %v1650_v61 }
 0x28a   :  { %v1652_v48 = vpop.f32.mrf.mxu1  ;;  %v1941_v51 = vpop.f32.mrf.mxu0 }
 0x28b   :  { %v2072_v52 = vpack.c.bf16 %v1940_v47, %v1937_v38 }
 0x28c   :  { %v1655_v37 = vpop.f32.mrf.mxu1  ;;  %v1944_v49 = vpop.f32.mrf.mxu0 }
 0x28d   :  { %4652 = vmatmul.mubr.bf16.gmra.mxu1 %v2072_v52  ;;  %v1945_v5 = vadd.f32 %v1944_v49, %v1655_v37 }
 0x28e   :  { %v1657_v53 = vpop.f32.mrf.mxu1  ;;  %v1946_v11 = vpop.f32.mrf.mxu0 }
 0x290   :  { %v1658_v12 = vpop.f32.mrf.mxu1  ;;  %v1947_v21 = vpop.f32.mrf.mxu0 }
 0x291   :  { %v1948_v6 = vadd.f32 %v1947_v21, %v1658_v12 }
 0x292   :  { %v1660_v17 = vpop.f32.mrf.mxu1  ;;  %v1949_v18 = vpop.f32.mrf.mxu0 }
 0x293   :  { %v2073_v22 = vpack.c.bf16 %v1948_v6, %v1945_v5 }
 0x294   :  { %v1663_v57 = vpop.f32.mrf.mxu1  ;;  %v1952_v58 = vpop.f32.mrf.mxu0 }
 0x295   :  { %4655 = vmatprep.mubr.bf16.mxu1 %v2073_v22  ;;  %v1953_v33 = vadd.f32 %v1952_v58, %v1663_v57 }
 0x296   :  { %v1665_v39 = vpop.f32.mrf.mxu1  ;;  %v1954_v43 = vpop.f32.mrf.mxu0 }
 0x298   :  { %v1666_v40 = vpop.f32.mrf.mxu1  ;;  %v1955_v44 = vpop.f32.mrf.mxu0 }
 0x299   :  { %v1956_v34 = vadd.f32 %v1955_v44, %v1666_v40 }
 0x29a   :  { %v1668_v50 = vpop.f32.mrf.mxu1  ;;  %v1957_v54 = vpop.f32.mrf.mxu0 }
 0x29b   :  { %v2074_v29 = vpack.c.bf16 %v1956_v34, %v1953_v33 }
 0x29c   :  { %v1671_v30 = vpop.f32.mrf.mxu1  ;;  %v1960_v41 = vpop.f32.mrf.mxu0 }
 0x29d   :  { %4656 = vmatmul.mubr.bf16.gmra.mxu1 %v2074_v29  ;;  %v1961_v2 = vadd.f32 %v1960_v41, %v1671_v30 }
 0x29e   :  { %v1673_v42 = vpop.f32.mrf.mxu1  ;;  %v1962_v55 = vpop.f32.mrf.mxu0 }
 0x2a0   :  { %v1674_v56 = vpop.f32.mrf.mxu1  ;;  %v1963_v1 = vpop.f32.mrf.mxu0 }
 0x2a1   :  { %v1964_v3 = vadd.f32 %v1963_v1, %v1674_v56 }
 0x2a2   :  { %v1676_v4 = vpop.f32.mrf.mxu1  ;;  %v1965_v7 = vpop.f32.mrf.mxu0 }
 0x2a3   :  { %v2075_v8 = vpack.c.bf16 %v1964_v3, %v1961_v2 }
 0x2a4   :  { %v1679_v63 = vpop.f32.mrf.mxu1  ;;  %v1968_v0 = vpop.f32.mrf.mxu0 }
 0x2a5   :  { %4659 = vmatprep.mubr.bf16.mxu1 %v2075_v8  ;;  %v1969_v59 = vadd.f32 %v1968_v0, %v1679_v63 }
 0x2a6   :  { %v1681_v10 = vpop.f32.mrf.mxu1  ;;  %v1970_v13 = vpop.f32.mrf.mxu0 }
 0x2a8   :  { %v1682_v14 = vpop.f32.mrf.mxu1  ;;  %v1971_v16 = vpop.f32.mrf.mxu0 }
 0x2a9   :  { %v1972_v60 = vadd.f32 %v1971_v16, %v1682_v14 }
 0x2aa   :  { %v1684_v19 = vpop.f32.mrf.mxu1  ;;  %v1973_v9 = vpop.f32.mrf.mxu0 }
 0x2ab   :  { %v2076_v15 = vpack.c.bf16 %v1972_v60, %v1969_v59 }
 0x2ac   :  { %v1687_v20 = vpop.f32.mrf.mxu1  ;;  %v1976_v23 = vpop.f32.mrf.mxu0 }
 0x2ad   :  { %4660 = vmatmul.mubr.bf16.gmra.mxu1 %v2076_v15  ;;  %v1977_v45 = vadd.f32 %v1976_v23, %v1687_v20 }
 0x2ae   :  { %v1689_v24 = vpop.f32.mrf.mxu1  ;;  %v1978_v25 = vpop.f32.mrf.mxu0 }
 0x2b0   :  { %v1690_v26 = vpop.f32.mrf.mxu1  ;;  %v1979_v27 = vpop.f32.mrf.mxu0 }
 0x2b1   :  { %v1980_v46 = vadd.f32 %v1979_v27, %v1690_v26 }
 0x2b2   :  { %v1692_v32 = vpop.f32.mrf.mxu1  ;;  %v1981_v28 = vpop.f32.mrf.mxu0 }
 0x2b3   :  { %v2077_v31 = vpack.c.bf16 %v1980_v46, %v1977_v45 }
 0x2b4   :  { %v1695_v35 = vpop.f32.mrf.mxu1  ;;  %v1984_v61 = vpop.f32.mrf.mxu0 }
 0x2b5   :  { %4663 = vmatprep.mubr.bf16.mxu1 %v2077_v31  ;;  %v1985_v51 = vadd.f32 %v1984_v61, %v1695_v35 }
 0x2b6   :  { %v1697_v62 = vpop.f32.mrf.mxu1  ;;  %v1986_v38 = vpop.f32.mrf.mxu0 }
 0x2b8   :  { %v1698_v47 = vpop.f32.mrf.mxu1  ;;  %v1987_v48 = vpop.f32.mrf.mxu0 }
 0x2b9   :  { %v1988_v52 = vadd.f32 %v1987_v48, %v1698_v47 }
 0x2ba   :  { %v1700_v37 = vpop.f32.mrf.mxu1  ;;  %v1989_v49 = vpop.f32.mrf.mxu0 }
 0x2bb   :  { %v2078_v53 = vpack.c.bf16 %v1988_v52, %v1985_v51 }
 0x2bc   :  { %v1703_v11 = vpop.f32.mrf.mxu1  ;;  %v1992_v12 = vpop.f32.mrf.mxu0 }
 0x2bd   :  { %4664 = vmatmul.mubr.bf16.gmra.mxu1 %v2078_v53  ;;  %v1993_v18 = vadd.f32 %v1992_v12, %v1703_v11 }
 0x2be   :  { %v1705_v21 = vpop.f32.mrf.mxu1  ;;  %v1994_v5 = vpop.f32.mrf.mxu0 }
 0x2c0   :  { %v1706_v6 = vpop.f32.mrf.mxu1  ;;  %v1995_v17 = vpop.f32.mrf.mxu0 }
 0x2c1   :  { %v1996_v22 = vadd.f32 %v1995_v17, %v1706_v6 }
 0x2c2   :  { %v1708_v57 = vpop.f32.mrf.mxu1  ;;  %v1997_v58 = vpop.f32.mrf.mxu0 }
 0x2c3   :  { %v2079_v39 = vpack.c.bf16 %v1996_v22, %v1993_v18 }
 0x2c4   :  { %v1711_v43 = vpop.f32.mrf.mxu1  ;;  %v2000_v40 = vpop.f32.mrf.mxu0 }
 0x2c5   :  { %4667 = vmatprep.mubr.bf16.mxu1 %v2079_v39  ;;  %v2001_v54 = vadd.f32 %v2000_v40, %v1711_v43 }
 0x2c6   :  { %v1713_v44 = vpop.f32.mrf.mxu1  ;;  %v2002_v33 = vpop.f32.mrf.mxu0 }
 0x2c8   :  { %v1714_v34 = vpop.f32.mrf.mxu1  ;;  %v2003_v50 = vpop.f32.mrf.mxu0 }
 0x2c9   :  { %v2004_v29 = vadd.f32 %v2003_v50, %v1714_v34 }
 0x2ca   :  { %v1716_v30 = vpop.f32.mrf.mxu1  ;;  %v2005_v41 = vpop.f32.mrf.mxu0 }
 0x2cb   :  { %v2080_v42 = vpack.c.bf16 %v2004_v29, %v2001_v54 }
 0x2cc   :  { %v1719_v55 = vpop.f32.mrf.mxu1  ;;  %v2008_v56 = vpop.f32.mrf.mxu0 }
 0x2cd   :  { %4668 = vmatmul.mubr.bf16.gmra.mxu1 %v2080_v42  ;;  %v2009_v7 = vadd.f32 %v2008_v56, %v1719_v55 }
 0x2ce   :  { %v1721_v1 = vpop.f32.mrf.mxu1  ;;  %v2010_v2 = vpop.f32.mrf.mxu0 }
 0x2d0   :  { %v1722_v3 = vpop.f32.mrf.mxu1  ;;  %v2011_v4 = vpop.f32.mrf.mxu0 }
 0x2d1   :  { %v2012_v8 = vadd.f32 %v2011_v4, %v1722_v3  ;;  %v5007_v4 = vld [vmem:[#allocation2 + $0xc] ss:$16 sps:$4 sm:$0xff]  }
 0x2d2   :  { %v1724_v63 = vpop.f32.mrf.mxu1  ;;  %v2013_v0 = vpop.f32.mrf.mxu0 }
 0x2d3   :  { %v2081_v10 = vpack.c.bf16 %v2012_v8, %v2009_v7 }
 0x2d4   :  { %v1727_v13 = vpop.f32.mrf.mxu1  ;;  %v2016_v14 = vpop.f32.mrf.mxu0 }
 0x2d5   :  { %4671 = vmatprep.mubr.bf16.mxu1 %v2081_v10  ;;  %v2017_v9 = vadd.f32 %v2016_v14, %v1727_v13 }
 0x2d6   :  { %v1729_v16 = vpop.f32.mrf.mxu1  ;;  %v2018_v59 = vpop.f32.mrf.mxu0 }
 0x2d8   :  { %v1730_v60 = vpop.f32.mrf.mxu1  ;;  %v2019_v19 = vpop.f32.mrf.mxu0 }
 0x2d9   :  { %v2020_v15 = vadd.f32 %v2019_v19, %v1730_v60 }
 0x2da   :  { %v1732_v20 = vpop.f32.mrf.mxu1  ;;  %v2021_v23 = vpop.f32.mrf.mxu0 }
 0x2db   :  { %v2082_v24 = vpack.c.bf16 %v2020_v15, %v2017_v9 }
 0x2dc   :  { %v1735_v25 = vpop.f32.mrf.mxu1  ;;  %v2024_v26 = vpop.f32.mrf.mxu0 }
 0x2dd   :  { %4672 = vmatmul.mubr.bf16.gmra.mxu1 %v2082_v24  ;;  %v2025_v28 = vadd.f32 %v2024_v26, %v1735_v25 }
 0x2de   :  { %v1737_v27 = vpop.f32.mrf.mxu1  ;;  %v2026_v45 = vpop.f32.mrf.mxu0 }
 0x2e0   :  { %v1738_v46 = vpop.f32.mrf.mxu1  ;;  %v2027_v32 = vpop.f32.mrf.mxu0 }
 0x2e1   :  { %v2028_v31 = vadd.f32 %v2027_v32, %v1738_v46 }
 0x2e2   :  { %v1740_v35 = vpop.f32.mrf.mxu1  ;;  %v2029_v61 = vpop.f32.mrf.mxu0 }
 0x2e3   :  { %v2083_v62 = vpack.c.bf16 %v2028_v31, %v2025_v28 }
 0x2e4   :  { %v1743_v38 = vpop.f32.mrf.mxu1  ;;  %v2032_v47 = vpop.f32.mrf.mxu0 }
 0x2e5   :  { %4675 = vmatprep.mubr.bf16.mxu1 %v2083_v62  ;;  %v2033_v49 = vadd.f32 %v2032_v47, %v1743_v38 }
 0x2e6   :  { %v1745_v48 = vpop.f32.mrf.mxu1  ;;  %v2034_v51 = vpop.f32.mrf.mxu0 }
 0x2e8   :  { %v1746_v52 = vpop.f32.mrf.mxu1  ;;  %v2035_v37 = vpop.f32.mrf.mxu0 }
 0x2e9   :  { %v2036_v53 = vadd.f32 %v2035_v37, %v1746_v52 }
 0x2ea   :  { %v1748_v11 = vpop.f32.mrf.mxu1  ;;  %v2037_v12 = vpop.f32.mrf.mxu0 }
 0x2eb   :  { %v2084_v21 = vpack.c.bf16 %v2036_v53, %v2033_v49 }
 0x2ec   :  { %v1751_v5 = vpop.f32.mrf.mxu1  ;;  %v2040_v6 = vpop.f32.mrf.mxu0 }
 0x2ed   :  { %4676 = vmatmul.mubr.bf16.gmra.mxu1 %v2084_v21  ;;  %v2041_v58 = vadd.f32 %v2040_v6, %v1751_v5 }
 0x2ee   :  { %v1753_v17 = vpop.f32.mrf.mxu1  ;;  %v2042_v18 = vpop.f32.mrf.mxu0 }
 0x2f0   :  { %v1754_v22 = vpop.f32.mrf.mxu1  ;;  %v2043_v57 = vpop.f32.mrf.mxu0 }
 0x2f1   :  { %v2044_v39 = vadd.f32 %v2043_v57, %v1754_v22 }
 0x2f2   :  { %v1756_v43 = vpop.f32.mrf.mxu1  ;;  %v2045_v40 = vpop.f32.mrf.mxu0 }
 0x2f3   :  { %v2085_v44 = vpack.c.bf16 %v2044_v39, %v2041_v58 }
 0x2f4   :  { %v1759_v33 = vpop.f32.mrf.mxu1  ;;  %v2048_v34 = vpop.f32.mrf.mxu0 }
 0x2f5   :  { %4679 = vmatprep.mubr.bf16.mxu1 %v2085_v44  ;;  %v2049_v41 = vadd.f32 %v2048_v34, %v1759_v33 }
 0x2f6   :  { %v1761_v50 = vpop.f32.mrf.mxu1  ;;  %v2050_v54 = vpop.f32.mrf.mxu0 }
 0x2f7   :  { %v5008_v50 = vld [vmem:[#allocation2] ss:$16 sps:$4 sm:$0xff]   ;;  %v5009_v54 = vld [vmem:[#allocation2 + $0x24] ss:$16 sps:$4 sm:$0xff]  }
 0x2f8   :  { %v1762_v29 = vpop.f32.mrf.mxu1  ;;  %v2051_v30 = vpop.f32.mrf.mxu0 }
 0x2f9   :  { %v2052_v42 = vadd.f32 %v2051_v30, %v1762_v29 }
 0x2fa   :  { %v1764_v55 = vpop.f32.mrf.mxu1  ;;  %v2053_v56 = vpop.f32.mrf.mxu0 }
 0x2fb   :  { %v2086_v1 = vpack.c.bf16 %v2052_v42, %v2049_v41  ;;  %v5010_v41 = vld [vmem:[#allocation2 + $0x20] ss:$16 sps:$4 sm:$0xff]   ;;  %v5011_v42 = vld [vmem:[#allocation2 + $0x44] ss:$16 sps:$4 sm:$0xff]  }
 0x2fc   :  { %v4621_v2 = vpop.f32.mrf.mxu1 }
 0x2fd   :  { %4680 = vmatmul.mubr.bf16.gmra.mxu1 %v2086_v1 }
 0x2fe   :  { %v2185_v3 = vpop.f32.mrf.mxu1  ;;  %2793 = vmatprep.mubr.bf16.mxu1 %v5007_v4 }
 0x300   :  { %v4622_v7 = vpop.f32.mrf.mxu1 }
 0x301   :  { %v2441_v48 = vpack.c.bf16 %v4622_v7, %v4621_v2  ;;  %v5012_v2 = vld [vmem:[#allocation2 + $0x40] ss:$16 sps:$4 sm:$0xff]  }
 0x302   :  { %v2188_v8 = vpop.f32.mrf.mxu1 }
 0x303   :  { %v2440_v52 = vpack.c.bf16 %v2188_v8, %v2185_v3  ;;  %v5013_v3 = vld [vmem:[#allocation2 + $0x64] ss:$16 sps:$4 sm:$0xff]   ;;  %v5014_v8 = vld [vmem:[#allocation2 + $0x60] ss:$16 sps:$4 sm:$0xff]  }
 0x304   :  { %v4625_v63 = vpop.f32.mrf.mxu1 }
 0x306   :  { %v2201_v0 = vpop.f32.mrf.mxu1 }
 0x308   :  { %v4626_v10 = vpop.f32.mrf.mxu1 }
 0x309   :  { %v2443_v61 = vpack.c.bf16 %v4626_v10, %v4625_v63  ;;  %v5015_v63 = vld [vmem:[#allocation2 + $0x84] ss:$16 sps:$4 sm:$0xff]  }
 0x30a   :  { %v2204_v13 = vpop.f32.mrf.mxu1 }
 0x30b   :  { %v2442_v38 = vpack.c.bf16 %v2204_v13, %v2201_v0 }
 0x30c   :  { %v4629_v14 = vpop.f32.mrf.mxu1 }
 0x30e   :  { %v2217_v16 = vpop.f32.mrf.mxu1 }
 0x310   :  { %v4630_v59 = vpop.f32.mrf.mxu1 }
 0x311   :  { %v2445_v45 = vpack.c.bf16 %v4630_v59, %v4629_v14  ;;  %v5016_v59 = vld [vmem:[#allocation2 + $0x80] ss:$16 sps:$4 sm:$0xff]  }
 0x312   :  { %v2220_v60 = vpop.f32.mrf.mxu1 }
 0x313   :  { %v2444_v28 = vpack.c.bf16 %v2220_v60, %v2217_v16  ;;  %v5017_v60 = vld [vmem:[#allocation2 + $0xa4] ss:$16 sps:$4 sm:$0xff]  }
 0x314   :  { %v4633_v19 = vpop.f32.mrf.mxu1 }
 0x316   :  { %v2233_v9 = vpop.f32.mrf.mxu1 }
 0x318   :  { %v4634_v15 = vpop.f32.mrf.mxu1 }
 0x319   :  { %v2447_v20 = vpack.c.bf16 %v4634_v15, %v4633_v19  ;;  %v5018_v15 = vld [vmem:[#allocation2 + $0xa0] ss:$16 sps:$4 sm:$0xff]  }
 0x31a   :  { %v2236_v23 = vpop.f32.mrf.mxu1 }
 0x31b   :  { %2473 = vmatpush1.bf16.msra.mxu0 %v2447_v20  ;;  %v2446_v25 = vpack.c.bf16 %v2236_v23, %v2233_v9  ;;  %v5019_v20 = vld [vmem:[#allocation2 + $0xc4] ss:$16 sps:$4 sm:$0xff]  }
 0x31c   :  { %v4637_v24 = vpop.f32.mrf.mxu1  ;;  %2474 = vmatprep.subr.bf16.mxu0 %v5287_v36 }
 0x31e   :  { %v2249_v26 = vpop.f32.mrf.mxu1 }
 0x31f   :  { %2475 = vmatpush1.bf16.msra.mxu0 %v2446_v25 }
 0x320   :  { %v4638_v27 = vpop.f32.mrf.mxu1  ;;  %2476 = vmatprep.subr.bf16.mxu0 %v5287_v36 }
 0x321   :  { %v2449_v43 = vpack.c.bf16 %v4638_v27, %v4637_v24  ;;  %v5021_v27 = vld [vmem:[#allocation2 + $0xe4] ss:$16 sps:$4 sm:$0xff]  }
 0x322   :  { %v2252_v46 = vpop.f32.mrf.mxu1 }
 0x323   :  { %2477 = vmatpush1.bf16.msra.mxu0 %v2445_v45  ;;  %v2448_v44 = vpack.c.bf16 %v2252_v46, %v2249_v26  ;;  %v5020_v26 = vld [vmem:[#allocation2 + $0xc0] ss:$16 sps:$4 sm:$0xff]  }
 0x324   :  { %v4641_v32 = vpop.f32.mrf.mxu1  ;;  %2478 = vmatprep.subr.bf16.mxu0 %v5287_v36 }
 0x326   :  { %v2265_v31 = vpop.f32.mrf.mxu1 }
 0x327   :  { %2479 = vmatpush1.bf16.msra.mxu0 %v2444_v28 }
 0x328   :  { %v4642_v35 = vpop.f32.mrf.mxu1  ;;  %2480 = vmatprep.subr.bf16.mxu0 %v5287_v36 }
 0x329   :  { %v2451_v22 = vpack.c.bf16 %v4642_v35, %v4641_v32  ;;  %v5023_v35 = vld [vmem:[#allocation2 + $0x104] ss:$16 sps:$4 sm:$0xff]  }
 0x32a   :  { %v2268_v62 = vpop.f32.mrf.mxu1 }
 0x32b   :  { %2481 = vmatpush1.bf16.msra.mxu0 %v2443_v61  ;;  %v2450_v58 = vpack.c.bf16 %v2268_v62, %v2265_v31  ;;  %v5022_v31 = vld [vmem:[#allocation2 + $0xe0] ss:$16 sps:$4 sm:$0xff]  }
 0x32c   :  { %2482 = vmatprep.subr.bf16.mxu0 %v5287_v36 }
 0x32d   :  { %v4645_v47 = vpop.f32.mrf.mxu1 }
 0x32f   :  { %2483 = vmatpush1.bf16.msra.mxu0 %v2442_v38  ;;  %v2281_v51 = vpop.f32.mrf.mxu1 }
 0x330   :  { %2484 = vmatprep.subr.bf16.mxu0 %v5287_v36 }
 0x331   :  { %v4646_v37 = vpop.f32.mrf.mxu1 }
 0x332   :  { %v2453_v17 = vpack.c.bf16 %v4646_v37, %v4645_v47  ;;  %v5024_v47 = vld [vmem:[#allocation2 + $0x100] ss:$16 sps:$4 sm:$0xff]  }
 0x333   :  { %2485 = vmatpush1.bf16.msra.mxu0 %v2441_v48  ;;  %v2284_v49 = vpop.f32.mrf.mxu1  ;;  %v5025_v48 = vld [vmem:[#allocation2 + $0x124] ss:$16 sps:$4 sm:$0xff]   ;;  %v5026_v37 = vld [vmem:[#allocation2 + $0x120] ss:$16 sps:$4 sm:$0xff]  }
 0x334   :  { %2486 = vmatprep.subr.bf16.mxu0 %v5287_v36  ;;  %v2452_v18 = vpack.c.bf16 %v2284_v49, %v2281_v51  ;;  %v5027_v49 = vld [vmem:[#allocation2 + $0x144] ss:$16 sps:$4 sm:$0xff]  }
 0x337   :  { %2487 = vmatpush1.bf16.msra.mxu0 %v2440_v52 }
 0x338   :  { %2488 = vmatprep.subr.bf16.mxu0 %v5287_v36 }
 0x33d   :  { %v4649_v53 = vpop.f32.mrf.mxu1 }
 0x33f   :  { %v2297_v11 = vpop.f32.mrf.mxu1 }
 0x341   :  { %v4650_v12 = vpop.f32.mrf.mxu1 }
 0x342   :  { %v2455_v21 = vpack.c.bf16 %v4650_v12, %v4649_v53 }
 0x343   :  { %v2300_v5 = vpop.f32.mrf.mxu1 }
 0x344   :  { %2489 = vmatpush2.bf16.msra.mxu0 %v2455_v21  ;;  %v2454_v6 = vpack.c.bf16 %v2300_v5, %v2297_v11  ;;  %v5028_v21 = vld [vmem:[#allocation2 + $0x140] ss:$16 sps:$4 sm:$0xff]   ;;  %v5029_v5 = vld [vmem:[#allocation2 + $0x164] ss:$16 sps:$4 sm:$0xff]  }
 0x345   :  { %2490 = vmatprep.subr.bf16.mxu0 %v5287_v36 }
 0x348   :  { %2491 = vmatpush2.bf16.msra.mxu0 %v2454_v6 }
 0x349   :  { %2492 = vmatprep.subr.bf16.mxu0 %v5287_v36 }
 0x34c   :  { %2493 = vmatpush2.bf16.msra.mxu0 %v2453_v17 }
 0x34d   :  { %2494 = vmatprep.subr.bf16.mxu0 %v5287_v36  ;;  %v5694_v57 = vpop.f32.mrf.mxu1 }
 0x34f   :  { %v5697_v39 = vpop.f32.mrf.mxu1 }
 0x350   :  { %2495 = vmatpush2.bf16.msra.mxu0 %v2452_v18  ;;  %v5030_v18 = vld [vmem:[#allocation2 + $0x160] ss:$16 sps:$4 sm:$0xff]  }
 0x351   :  { %2496 = vmatprep.subr.bf16.mxu0 %v5287_v36  ;;  %v5700_v40 = vpop.f32.mrf.mxu1 }
 0x352   :  { %v2457_v32 = vpack.c.bf16 %v5700_v40, %v5694_v57 }
 0x353   :  { %v5703_v33 = vpop.f32.mrf.mxu1 }
 0x354   :  { %2497 = vmatpush2.bf16.msra.mxu0 %v2451_v22  ;;  %v2456_v61 = vpack.c.bf16 %v5703_v33, %v5697_v39  ;;  %v5031_v22 = vld [vmem:[#allocation2 + $0x184] ss:$16 sps:$4 sm:$0xff]  }
 0x355   :  { %2498 = vmatprep.subr.bf16.mxu0 %v5287_v36  ;;  %v5033_v33 = vld [vmem:[#allocation2 + $0x1a4] ss:$16 sps:$4 sm:$0xff]  }
 0x358   :  { %2499 = vmatpush2.bf16.msra.mxu0 %v2450_v58 }
 0x359   :  { %2500 = vmatprep.subr.bf16.mxu0 %v5287_v36 }
 0x35c   :  { %2501 = vmatpush2.bf16.msra.mxu0 %v2449_v43 }
 0x35d   :  { %2502 = vmatprep.subr.bf16.mxu0 %v5287_v36  ;;  %v4657_v34 = vpop.f32.mrf.mxu1 }
 0x35f   :  { %v2329_v29 = vpop.f32.mrf.mxu1 }
 0x360   :  { %2503 = vmatpush2.bf16.msra.mxu0 %v2448_v44  ;;  %v5032_v44 = vld [vmem:[#allocation2 + $0x180] ss:$16 sps:$4 sm:$0xff]  }
 0x361   :  { %v4658_v30 = vpop.f32.mrf.mxu1 }
 0x362   :  { %v2459_v24 = vpack.c.bf16 %v4658_v30, %v4657_v34 }
 0x363   :  { %2505 = vmatmul.mubr.bf16.vlgmr.msra.gmra.mxu0 %v5008_v50  ;;  %v2332_v55 = vpop.f32.mrf.mxu1 }
 0x364   :  { %2512 = vmatprep.mubr.bf16.mxu0 %v5009_v54  ;;  %v2458_v45 = vpack.c.bf16 %v2332_v55, %v2329_v29  ;;  %v5034_v54 = vld [vmem:[#allocation2 + $0x1a0] ss:$16 sps:$4 sm:$0xff]   ;;  %v5035_v29 = vld [vmem:[#allocation2 + $0x1c4] ss:$16 sps:$4 sm:$0xff]  }
 0x365   :  { %v5037_v55 = vld [vmem:[#allocation2 + $0x1e4] ss:$16 sps:$4 sm:$0xff]  }
 0x36b   :  { %2513 = vmatmul.mubr.bf16.gmra.mxu0 %v5010_v41 }
 0x36c   :  { %2520 = vmatprep.mubr.bf16.mxu0 %v5011_v42  ;;  %v5036_v42 = vld [vmem:[#allocation2 + $0x1c0] ss:$16 sps:$4 sm:$0xff]  }
 0x36d   :  { %v4661_v56 = vpop.f32.mrf.mxu1 }
 0x36f   :  { %v2345_v1 = vpop.f32.mrf.mxu1 }
 0x371   :  { %v4662_v4 = vpop.f32.mrf.mxu1 }
 0x372   :  { %v2461_v9 = vpack.c.bf16 %v4662_v4, %v4661_v56 }
 0x373   :  { %2521 = vmatmul.mubr.bf16.gmra.mxu0 %v5012_v2  ;;  %v2348_v7 = vpop.f32.mrf.mxu1  ;;  %v5038_v2 = vld [vmem:[#allocation2 + $0x1e0] ss:$16 sps:$4 sm:$0xff]  }
 0x374   :  { %2528 = vmatprep.mubr.bf16.mxu0 %v5013_v3  ;;  %v2460_v23 = vpack.c.bf16 %v2348_v7, %v2345_v1  ;;  %v5039_v3 = vld [vmem:[#allocation2 + $0x204] ss:$16 sps:$4 sm:$0xff]   ;;  %v5040_v7 = vld [vmem:[#allocation2 + $0x8] ss:$16 sps:$4 sm:$0xff]  }
 0x37b   :  { %2529 = vmatmul.mubr.bf16.gmra.mxu0 %v5014_v8  ;;  %v5041_v8 = vld [vmem:[#allocation2 + $0x200] ss:$16 sps:$4 sm:$0xff]  }
 0x37c   :  { %2536 = vmatprep.mubr.bf16.mxu0 %v5015_v63  ;;  %v5003_v63 = vld [vmem:[%s6492_s4 + $0x18] sm:$0xff]  }
 0x37d   :  { %v4665_v0 = vpop.f32.mrf.mxu1  ;;  %4683 = vmatprep.subr.bf16.mxu0 %v5003_v63 }
 0x37e   :  { %4684 = vmatpush3.bf16.msra.mxu0 %v5003_v63 }
 0x37f   :  { %v2361_v10 = vpop.f32.mrf.mxu1 }
 0x381   :  { %v4666_v13 = vpop.f32.mrf.mxu1 }
 0x382   :  { %v2463_v14 = vpack.c.bf16 %v4666_v13, %v4665_v0  ;;  %v5042_v0 = vld [vmem:[#allocation2 + $0x2c] ss:$16 sps:$4 sm:$0xff]   ;;  %v5044_v13 = vld [vmem:[#allocation2 + $0x28] ss:$16 sps:$4 sm:$0xff]  }
 0x383   :  { %v2364_v16 = vpop.f32.mrf.mxu1  ;;  %2537 = vmatmul.mubr.bf16.gmra.mxu0 %v5016_v59  ;;  %v5047_v59 = vld [vmem:[#allocation2 + $0x244] ss:$16 sps:$4 sm:$0xff]  }
 0x384   :  { %2762 = vmatpush1.bf16.msra.mxu1 %v2463_v14  ;;  %2544 = vmatprep.mubr.bf16.mxu0 %v5017_v60  ;;  %v2462_v19 = vpack.c.bf16 %v2364_v16, %v2361_v10  ;;  %v5043_v10 = vld [vmem:[#allocation2 + $0x224] ss:$16 sps:$4 sm:$0xff]   ;;  %v5045_v14 = vld [vmem:[#allocation2 + $0x220] ss:$16 sps:$4 sm:$0xff]   ;;  %v5046_v16 = vld [vmem:[#allocation2 + $0x4c] ss:$16 sps:$4 sm:$0xff]  }
 0x385   :  { %2763 = vmatprep.subr.bf16.mxu1 %v5287_v36  ;;  %v5048_v60 = vld [vmem:[#allocation2 + $0x48] ss:$16 sps:$4 sm:$0xff]  }
 0x388   :  { %2764 = vmatpush1.bf16.msra.mxu1 %v2462_v19  ;;  %v5049_v19 = vld [vmem:[#allocation2 + $0x240] ss:$16 sps:$4 sm:$0xff]  }
 0x389   :  { %2765 = vmatprep.subr.bf16.mxu1 %v5287_v36 }
 0x38b   :  { %2545 = vmatmul.mubr.bf16.gmra.mxu0 %v5018_v15  ;;  %v5051_v15 = vld [vmem:[#allocation2 + $0x264] ss:$16 sps:$4 sm:$0xff]  }
 0x38c   :  { %2766 = vmatpush1.bf16.msra.mxu1 %v2461_v9  ;;  %2552 = vmatprep.mubr.bf16.mxu0 %v5019_v20  ;;  %v5050_v9 = vld [vmem:[#allocation2 + $0x6c] ss:$16 sps:$4 sm:$0xff]   ;;  %v5052_v20 = vld [vmem:[#allocation2 + $0x68] ss:$16 sps:$4 sm:$0xff]  }
 0x38d   :  { %2767 = vmatprep.subr.bf16.mxu1 %v5287_v36  ;;  %v5709_v25 = vpop.f32.mrf.mxu1 }
 0x38f   :  { %v5712_v46 = vpop.f32.mrf.mxu1 }
 0x390   :  { %2768 = vmatpush1.bf16.msra.mxu1 %v2460_v23  ;;  %v5053_v23 = vld [vmem:[#allocation2 + $0x260] ss:$16 sps:$4 sm:$0xff]  }
 0x391   :  { %2769 = vmatprep.subr.bf16.mxu1 %v5287_v36  ;;  %v5717_v28 = vpop.f32.mrf.mxu1 }
 0x392   :  { %v2465_v1 = vpack.c.bf16 %v5717_v28, %v5709_v25  ;;  %v5055_v25 = vld [vmem:[#allocation2 + $0x284] ss:$16 sps:$4 sm:$0xff]   ;;  %v5061_v28 = vld [vmem:[#allocation2 + $0x2a0] ss:$16 sps:$4 sm:$0xff]  }
 0x393   :  { %2553 = vmatmul.mubr.bf16.gmra.mxu0 %v5020_v26  ;;  %v5722_v62 = vpop.f32.mrf.mxu1  ;;  %v5056_v26 = vld [vmem:[#allocation2 + $0x88] ss:$16 sps:$4 sm:$0xff]  }
 0x394   :  { %2770 = vmatpush1.bf16.msra.mxu1 %v2459_v24  ;;  %2560 = vmatprep.mubr.bf16.mxu0 %v5021_v27  ;;  %v2464_v4 = vpack.c.bf16 %v5722_v62, %v5712_v46  ;;  %v5054_v24 = vld [vmem:[#allocation2 + $0x8c] ss:$16 sps:$4 sm:$0xff]   ;;  %v5057_v27 = vld [vmem:[#allocation2 + $0x280] ss:$16 sps:$4 sm:$0xff]   ;;  %v5059_v46 = vld [vmem:[#allocation2 + $0x2a4] ss:$16 sps:$4 sm:$0xff]  }
 0x395   :  { %2771 = vmatprep.subr.bf16.mxu1 %v5287_v36  ;;  %v5065_v62 = vld [vmem:[#allocation2 + $0x2c0] ss:$16 sps:$4 sm:$0xff]  }
 0x398   :  { %2772 = vmatpush1.bf16.msra.mxu1 %v2458_v45  ;;  %v5058_v45 = vld [vmem:[#allocation2 + $0xac] ss:$16 sps:$4 sm:$0xff]  }
 0x399   :  { %2773 = vmatprep.subr.bf16.mxu1 %v5287_v36 }
 0x39b   :  { %2561 = vmatmul.mubr.bf16.gmra.mxu0 %v5022_v31  ;;  %v5062_v31 = vld [vmem:[#allocation2 + $0xcc] ss:$16 sps:$4 sm:$0xff]  }
 0x39c   :  { %2774 = vmatpush1.bf16.msra.mxu1 %v2457_v32  ;;  %2568 = vmatprep.mubr.bf16.mxu0 %v5023_v35  ;;  %v5060_v32 = vld [vmem:[#allocation2 + $0xa8] ss:$16 sps:$4 sm:$0xff]   ;;  %v5063_v35 = vld [vmem:[#allocation2 + $0x2c4] ss:$16 sps:$4 sm:$0xff]  }
 0x39d   :  { %2775 = vmatprep.subr.bf16.mxu1 %v5287_v36  ;;  %v4673_v38 = vpop.f32.mrf.mxu1 }
 0x39f   :  { %v2393_v51 = vpop.f32.mrf.mxu1 }
 0x3a0   :  { %2776 = vmatpush1.bf16.msra.mxu1 %v2456_v61  ;;  %v5064_v61 = vld [vmem:[#allocation2 + $0xc8] ss:$16 sps:$4 sm:$0xff]  }
 0x3a1   :  { %2777 = vmatprep.subr.bf16.mxu1 %v5287_v36  ;;  %v4674_v52 = vpop.f32.mrf.mxu1 }
 0x3a2   :  { %v2467_v41 = vpack.c.bf16 %v4674_v52, %v4673_v38  ;;  %v5066_v38 = vld [vmem:[#allocation2 + $0xec] ss:$16 sps:$4 sm:$0xff]  }
 0x3a3   :  { %2569 = vmatmul.mubr.bf16.gmra.mxu0 %v5024_v47  ;;  %v2396_v53 = vpop.f32.mrf.mxu1  ;;  %v5067_v47 = vld [vmem:[#allocation2 + $0x2e4] ss:$16 sps:$4 sm:$0xff]   ;;  %v5070_v52 = vld [vmem:[#allocation2 + $0x10c] ss:$16 sps:$4 sm:$0xff]  }
 0x3a4   :  { %2576 = vmatprep.mubr.bf16.mxu0 %v5025_v48  ;;  %v2466_v56 = vpack.c.bf16 %v2396_v53, %v2393_v51  ;;  %v5068_v48 = vld [vmem:[#allocation2 + $0xe8] ss:$16 sps:$4 sm:$0xff]   ;;  %v5069_v51 = vld [vmem:[#allocation2 + $0x2e0] ss:$16 sps:$4 sm:$0xff]  }
 0x3a5   :  { %v5073_v53 = vld [vmem:[#allocation2 + $0x300] ss:$16 sps:$4 sm:$0xff]  }
 0x3ab   :  { %2577 = vmatmul.mubr.bf16.gmra.mxu0 %v5026_v37  ;;  %v5071_v37 = vld [vmem:[#allocation2 + $0x304] ss:$16 sps:$4 sm:$0xff]  }
 0x3ac   :  { %2584 = vmatprep.mubr.bf16.mxu0 %v5027_v49  ;;  %v5072_v49 = vld [vmem:[#allocation2 + $0x108] ss:$16 sps:$4 sm:$0xff]  }
 0x3ad   :  { %v4677_v11 = vpop.f32.mrf.mxu1 }
 0x3af   :  { %v2409_v12 = vpop.f32.mrf.mxu1 }
 0x3b1   :  { %v4678_v6 = vpop.f32.mrf.mxu1 }
 0x3b2   :  { %v2469_v50 = vpack.c.bf16 %v4678_v6, %v4677_v11 }
 0x3b3   :  { %2585 = vmatmul.mubr.bf16.gmra.mxu0 %v5028_v21  ;;  %v2412_v17 = vpop.f32.mrf.mxu1  ;;  %v5075_v21 = vld [vmem:[#allocation2 + $0x324] ss:$16 sps:$4 sm:$0xff]  }
 0x3b4   :  { %2592 = vmatprep.mubr.bf16.mxu0 %v5029_v5  ;;  %v2468_v30 = vpack.c.bf16 %v2412_v17, %v2409_v12  ;;  %v5074_v12 = vld [vmem:[#allocation2 + $0x12c] ss:$16 sps:$4 sm:$0xff]   ;;  %v5004_v5 = vld [vmem:[%s6492_s4 + $0x10] sm:$0xff]  }
 0x3b5   :  { %4685 = vmatprep.subr.bf16.mxu0 %v5004_v5 }
 0x3b6   :  { %4686 = vmatpush3.bf16.msra.mxu0 %v5004_v5 }
 0x3bb   :  { %2593 = vmatmul.mubr.bf16.gmra.mxu0 %v5030_v18 }
 0x3bc   :  { %2600 = vmatprep.mubr.bf16.mxu0 %v5031_v22  ;;  %v5005_v22 = vld [vmem:[%s6492_s4 + $0x8] sm:$0xff]  }
 0x3bd   :  { %v4681_v57 = vpop.f32.mrf.mxu1  ;;  %4687 = vmatprep.subr.bf16.mxu0 %v5005_v22 }
 0x3be   :  { %4688 = vmatpush3.bf16.msra.mxu0 %v5005_v22 }
 0x3bf   :  { %v2425_v58 = vpop.f32.mrf.mxu1 }
 0x3c1   :  { %v4682_v39 = vpop.f32.mrf.mxu1 }
 0x3c2   :  { %v2471_v43 = vpack.c.bf16 %v4682_v39, %v4681_v57  ;;  %v5076_v57 = vld [vmem:[#allocation2 + $0x128] ss:$16 sps:$4 sm:$0xff]  }
 0x3c3   :  { %v2428_v40 = vpop.f32.mrf.mxu1  ;;  %2601 = vmatmul.mubr.bf16.gmra.mxu0 %v5032_v44 }
 0x3c4   :  { %2778 = vmatpush2.bf16.msra.mxu1 %v2471_v43  ;;  %2608 = vmatprep.mubr.bf16.mxu0 %v5033_v33  ;;  %v2470_v34 = vpack.c.bf16 %v2428_v40, %v2425_v58  ;;  %v5077_v58 = vld [vmem:[#allocation2 + $0x320] ss:$16 sps:$4 sm:$0xff]   ;;  %v5078_v43 = vld [vmem:[#allocation2 + $0x14c] ss:$16 sps:$4 sm:$0xff]   ;;  %v5079_v40 = vld [vmem:[#allocation2 + $0x344] ss:$16 sps:$4 sm:$0xff]  }
 0x3c5   :  { %2779 = vmatprep.subr.bf16.mxu1 %v5287_v36  ;;  %v5006_v33 = vld [vmem:[%s6492_s4] sm:$0xff]  }
 0x3c6   :  { %4689 = vmatprep.subr.bf16.mxu0 %v5006_v33 }
 0x3c7   :  { %4690 = vmatpush3.bf16.msra.mxu0 %v5006_v33 }
 0x3c8   :  { %2780 = vmatpush2.bf16.msra.mxu1 %v2470_v34  ;;  %3820 = vmatprep.subr.bf16.mxu0 %v5287_v36 }
 0x3c9   :  { %2781 = vmatprep.subr.bf16.mxu1 %v5287_v36 }
 0x3cb   :  { %2609 = vmatmul.mubr.bf16.gmra.mxu0 %v5034_v54  ;;  %v5080_v54 = vld [vmem:[#allocation2 + $0x148] ss:$16 sps:$4 sm:$0xff]  }
 0x3cc   :  { %2782 = vmatpush2.bf16.msra.mxu1 %v2469_v50  ;;  %2616 = vmatprep.mubr.bf16.mxu0 %v5035_v29  ;;  %v5081_v29 = vld [vmem:[#allocation2 + $0x340] ss:$16 sps:$4 sm:$0xff]  }
 0x3cd   :  { %2783 = vmatprep.subr.bf16.mxu1 %v5287_v36 }
 0x3d0   :  { %2784 = vmatpush2.bf16.msra.mxu1 %v2468_v30 }
 0x3d1   :  { %2785 = vmatprep.subr.bf16.mxu1 %v5287_v36 }
 0x3d3   :  { %2617 = vmatmul.mubr.bf16.gmra.mxu0 %v5036_v42  ;;  %v5083_v42 = vld [vmem:[#allocation2 + $0x364] ss:$16 sps:$4 sm:$0xff]  }
 0x3d4   :  { %2786 = vmatpush2.bf16.msra.mxu1 %v2467_v41  ;;  %2624 = vmatprep.mubr.bf16.mxu0 %v5037_v55  ;;  %v5082_v41 = vld [vmem:[#allocation2 + $0x16c] ss:$16 sps:$4 sm:$0xff]  }
 0x3d5   :  { %2787 = vmatprep.subr.bf16.mxu1 %v5287_v36 }
 0x3d8   :  { %2788 = vmatpush2.bf16.msra.mxu1 %v2466_v56 }
 0x3d9   :  { %2789 = vmatprep.subr.bf16.mxu1 %v5287_v36 }
 0x3db   :  { %2625 = vmatmul.mubr.bf16.gmra.mxu0 %v5038_v2  ;;  %v5084_v2 = vld [vmem:[#allocation2 + $0x168] ss:$16 sps:$4 sm:$0xff]  }
 0x3dc   :  { %2790 = vmatpush2.bf16.msra.mxu1 %v2465_v1  ;;  %2632 = vmatprep.mubr.bf16.mxu0 %v5039_v3  ;;  %v5085_v3 = vld [vmem:[#allocation2 + $0x360] ss:$16 sps:$4 sm:$0xff]  }
 0x3dd   :  { %2791 = vmatprep.subr.bf16.mxu1 %v5287_v36 }
 0x3e0   :  { %2792 = vmatpush2.bf16.msra.mxu1 %v2464_v4 }
 0x3e1   :  { %3531 = vmatprep.subr.bf16.mxu1 %v5287_v36 }
 0x3e3   :  { %2794 = vmatmul.mubr.bf16.vlgmr.msra.gmra.mxu1 %v5040_v7  ;;  %2633 = vmatmul.mubr.bf16.gmra.mxu0 %v5041_v8  ;;  %v5086_v7 = vld [vmem:[#allocation2 + $0x18c] ss:$16 sps:$4 sm:$0xff]   ;;  %v5087_v8 = vld [vmem:[#allocation2 + $0x384] ss:$16 sps:$4 sm:$0xff]  }
 0x3e4   :  { %2801 = vmatprep.mubr.bf16.mxu1 %v5042_v0  ;;  %2640 = vmatprep.mubr.bf16.mxu0 %v5043_v10 }
 0x3eb   :  { %2802 = vmatmul.mubr.bf16.gmra.mxu1 %v5044_v13  ;;  %2641 = vmatmul.mubr.bf16.gmra.mxu0 %v5045_v14  ;;  %v5088_v13 = vld [vmem:[#allocation2 + $0x188] ss:$16 sps:$4 sm:$0xff]   ;;  %v5089_v14 = vld [vmem:[#allocation2 + $0x380] ss:$16 sps:$4 sm:$0xff]  }
 0x3ec   :  { %2809 = vmatprep.mubr.bf16.mxu1 %v5046_v16  ;;  %2648 = vmatprep.mubr.bf16.mxu0 %v5047_v59  ;;  %v5090_v59 = vld [vmem:[#allocation2 + $0x1ac] ss:$16 sps:$4 sm:$0xff]  }
 0x3f3   :  { %2810 = vmatmul.mubr.bf16.gmra.mxu1 %v5048_v60  ;;  %2649 = vmatmul.mubr.bf16.gmra.mxu0 %v5049_v19  ;;  %v5091_v60 = vld [vmem:[#allocation2 + $0x3a4] ss:$16 sps:$4 sm:$0xff]  }
 0x3f4   :  { %2817 = vmatprep.mubr.bf16.mxu1 %v5050_v9  ;;  %2656 = vmatprep.mubr.bf16.mxu0 %v5051_v15 }
 0x3fb   :  { %2818 = vmatmul.mubr.bf16.gmra.mxu1 %v5052_v20  ;;  %2657 = vmatmul.mubr.bf16.gmra.mxu0 %v5053_v23  ;;  %v5092_v20 = vld [vmem:[#allocation2 + $0x1a8] ss:$16 sps:$4 sm:$0xff]   ;;  %v5093_v23 = vld [vmem:[#allocation2 + $0x3a0] ss:$16 sps:$4 sm:$0xff]  }
 0x3fc   :  { %2825 = vmatprep.mubr.bf16.mxu1 %v5054_v24  ;;  %2664 = vmatprep.mubr.bf16.mxu0 %v5055_v25  ;;  %v5094_v25 = vld [vmem:[#allocation2 + $0x1cc] ss:$16 sps:$4 sm:$0xff]  }
 0x403   :  { %2826 = vmatmul.mubr.bf16.gmra.mxu1 %v5056_v26  ;;  %2665 = vmatmul.mubr.bf16.gmra.mxu0 %v5057_v27  ;;  %v5095_v26 = vld [vmem:[#allocation2 + $0x3c4] ss:$16 sps:$4 sm:$0xff]  }
 0x404   :  { %2833 = vmatprep.mubr.bf16.mxu1 %v5058_v45  ;;  %2672 = vmatprep.mubr.bf16.mxu0 %v5059_v46 }
 0x40b   :  { %2834 = vmatmul.mubr.bf16.gmra.mxu1 %v5060_v32  ;;  %2673 = vmatmul.mubr.bf16.gmra.mxu0 %v5061_v28  ;;  %v5096_v32 = vld [vmem:[#allocation2 + $0x1c8] ss:$16 sps:$4 sm:$0xff]   ;;  %v5097_v28 = vld [vmem:[#allocation2 + $0x3c0] ss:$16 sps:$4 sm:$0xff]  }
 0x40c   :  { %2841 = vmatprep.mubr.bf16.mxu1 %v5062_v31  ;;  %2680 = vmatprep.mubr.bf16.mxu0 %v5063_v35  ;;  %v5098_v35 = vld [vmem:[#allocation2 + $0x1ec] ss:$16 sps:$4 sm:$0xff]  }
 0x413   :  { %2842 = vmatmul.mubr.bf16.gmra.mxu1 %v5064_v61  ;;  %2681 = vmatmul.mubr.bf16.gmra.mxu0 %v5065_v62  ;;  %v5099_v61 = vld [vmem:[#allocation2 + $0x3e4] ss:$16 sps:$4 sm:$0xff]  }
 0x414   :  { %2849 = vmatprep.mubr.bf16.mxu1 %v5066_v38  ;;  %2688 = vmatprep.mubr.bf16.mxu0 %v5067_v47 }
 0x41b   :  { %2850 = vmatmul.mubr.bf16.gmra.mxu1 %v5068_v48  ;;  %2689 = vmatmul.mubr.bf16.gmra.mxu0 %v5069_v51  ;;  %v5100_v48 = vld [vmem:[#allocation2 + $0x1e8] ss:$16 sps:$4 sm:$0xff]   ;;  %v5101_v51 = vld [vmem:[#allocation2 + $0x3e0] ss:$16 sps:$4 sm:$0xff]  }
 0x41c   :  { %2857 = vmatprep.mubr.bf16.mxu1 %v5070_v52  ;;  %2696 = vmatprep.mubr.bf16.mxu0 %v5071_v37  ;;  %v5102_v37 = vld [vmem:[#allocation2 + $0x20c] ss:$16 sps:$4 sm:$0xff]  }
 0x423   :  { %2858 = vmatmul.mubr.bf16.gmra.mxu1 %v5072_v49  ;;  %2697 = vmatmul.mubr.bf16.gmra.mxu0 %v5073_v53  ;;  %v5740_v11 = vpop.f32.mrf.mxu0 }
 0x424   :  { %2865 = vmatprep.mubr.bf16.mxu1 %v5074_v12  ;;  %2704 = vmatprep.mubr.bf16.mxu0 %v5075_v21  ;;  %v5103_v21 = vld [vmem:[#allocation2 + $0x208] ss:$16 sps:$4 sm:$0xff]  }
 0x425   :  { %v2508_v6 = vpop.f32.mrf.mxu0 }
 0x426   :  { %v5104_v6 = vld [vmem:[#allocation2 + $0x22c] ss:$16 sps:$4 sm:$0xff]  }
 0x427   :  { %v5745_v17 = vpop.f32.mrf.mxu0 }
 0x429   :  { %v2511_v18 = vpop.f32.mrf.mxu0 }
 0x42b   :  { %2866 = vmatmul.mubr.bf16.gmra.mxu1 %v5076_v57  ;;  %2705 = vmatmul.mubr.bf16.gmra.mxu0 %v5077_v58  ;;  %v5750_v39 = vpop.f32.mrf.mxu0  ;;  %v5105_v58 = vld [vmem:[#allocation2 + $0x228] ss:$16 sps:$4 sm:$0xff]  }
 0x42c   :  { %2873 = vmatprep.mubr.bf16.mxu1 %v5078_v43  ;;  %2712 = vmatprep.mubr.bf16.mxu0 %v5079_v40  ;;  %v5106_v40 = vld [vmem:[#allocation2 + $0x24c] ss:$16 sps:$4 sm:$0xff]  }
 0x42d   :  { %v2516_v44 = vpop.f32.mrf.mxu0 }
 0x42f   :  { %v5755_v34 = vpop.f32.mrf.mxu0 }
 0x431   :  { %v2519_v50 = vpop.f32.mrf.mxu0 }
 0x433   :  { %2874 = vmatmul.mubr.bf16.gmra.mxu1 %v5080_v54  ;;  %2713 = vmatmul.mubr.bf16.gmra.mxu0 %v5081_v29  ;;  %v5757_v30 = vpop.f32.mrf.mxu0  ;;  %v5107_v54 = vld [vmem:[#allocation2 + $0x248] ss:$16 sps:$4 sm:$0xff]  }
 0x434   :  { %2881 = vmatprep.mubr.bf16.mxu1 %v5082_v41  ;;  %2720 = vmatprep.mubr.bf16.mxu0 %v5083_v42  ;;  %v5108_v41 = vld [vmem:[#allocation2 + $0x26c] ss:$16 sps:$4 sm:$0xff]  }
 0x435   :  { %v2524_v55 = vpop.f32.mrf.mxu0 }
 0x437   :  { %v5760_v56 = vpop.f32.mrf.mxu0 }
 0x439   :  { %v2527_v1 = vpop.f32.mrf.mxu0 }
 0x43b   :  { %2882 = vmatmul.mubr.bf16.gmra.mxu1 %v5084_v2  ;;  %2721 = vmatmul.mubr.bf16.gmra.mxu0 %v5085_v3  ;;  %v5762_v4 = vpop.f32.mrf.mxu0  ;;  %v5109_v2 = vld [vmem:[#allocation2 + $0x268] ss:$16 sps:$4 sm:$0xff]  }
 0x43c   :  { %2889 = vmatprep.mubr.bf16.mxu1 %v5086_v7  ;;  %2728 = vmatprep.mubr.bf16.mxu0 %v5087_v8  ;;  %v5110_v7 = vld [vmem:[#allocation2 + $0x28c] ss:$16 sps:$4 sm:$0xff]  }
 0x43d   :  { %v2532_v63 = vpop.f32.mrf.mxu0 }
 0x43f   :  { %v5764_v0 = vpop.f32.mrf.mxu0 }
 0x441   :  { %v2535_v10 = vpop.f32.mrf.mxu0 }
 0x443   :  { %2890 = vmatmul.mubr.bf16.gmra.mxu1 %v5088_v13  ;;  %2729 = vmatmul.mubr.bf16.gmra.mxu0 %v5089_v14  ;;  %v5766_v16 = vpop.f32.mrf.mxu0  ;;  %v5111_v13 = vld [vmem:[#allocation2 + $0x288] ss:$16 sps:$4 sm:$0xff]  }
 0x444   :  { %2897 = vmatprep.mubr.bf16.mxu1 %v5090_v59  ;;  %2736 = vmatprep.mubr.bf16.mxu0 %v5091_v60  ;;  %v5112_v59 = vld [vmem:[#allocation2 + $0x2ac] ss:$16 sps:$4 sm:$0xff]  }
 0x445   :  { %v2540_v19 = vpop.f32.mrf.mxu0 }
 0x447   :  { %v5768_v9 = vpop.f32.mrf.mxu0 }
 0x449   :  { %v2543_v15 = vpop.f32.mrf.mxu0 }
 0x44b   :  { %2898 = vmatmul.mubr.bf16.gmra.mxu1 %v5092_v20  ;;  %2737 = vmatmul.mubr.bf16.gmra.mxu0 %v5093_v23  ;;  %v5770_v24 = vpop.f32.mrf.mxu0  ;;  %v5113_v20 = vld [vmem:[#allocation2 + $0x2a8] ss:$16 sps:$4 sm:$0xff]  }
 0x44c   :  { %2905 = vmatprep.mubr.bf16.mxu1 %v5094_v25  ;;  %2744 = vmatprep.mubr.bf16.mxu0 %v5095_v26  ;;  %v5114_v25 = vld [vmem:[#allocation2 + $0x2cc] ss:$16 sps:$4 sm:$0xff]  }
 0x44d   :  { %v2548_v27 = vpop.f32.mrf.mxu0 }
 0x44f   :  { %v5772_v45 = vpop.f32.mrf.mxu0 }
 0x451   :  { %v2551_v46 = vpop.f32.mrf.mxu0 }
 0x453   :  { %2906 = vmatmul.mubr.bf16.gmra.mxu1 %v5096_v32  ;;  %2745 = vmatmul.mubr.bf16.gmra.mxu0 %v5097_v28  ;;  %v5774_v31 = vpop.f32.mrf.mxu0  ;;  %v5115_v32 = vld [vmem:[#allocation2 + $0x2c8] ss:$16 sps:$4 sm:$0xff]  }
 0x454   :  { %2913 = vmatprep.mubr.bf16.mxu1 %v5098_v35  ;;  %2752 = vmatprep.mubr.bf16.mxu0 %v5099_v61  ;;  %v5116_v35 = vld [vmem:[#allocation2 + $0x2ec] ss:$16 sps:$4 sm:$0xff]  }
 0x455   :  { %v2556_v62 = vpop.f32.mrf.mxu0 }
 0x457   :  { %v5776_v38 = vpop.f32.mrf.mxu0 }
 0x459   :  { %v2559_v47 = vpop.f32.mrf.mxu0 }
 0x45b   :  { %2914 = vmatmul.mubr.bf16.gmra.mxu1 %v5100_v48  ;;  %2753 = vmatmul.mubr.bf16.gmra.mxu0 %v5101_v51  ;;  %v5778_v52 = vpop.f32.mrf.mxu0  ;;  %v5117_v48 = vld [vmem:[#allocation2 + $0x2e8] ss:$16 sps:$4 sm:$0xff]  }
 0x45c   :  { %2921 = vmatprep.mubr.bf16.mxu1 %v5102_v37  ;;  %v5118_v37 = vld [vmem:[#allocation2 + $0x30c] ss:$16 sps:$4 sm:$0xff]  }
 0x45d   :  { %v2564_v49 = vpop.f32.mrf.mxu0 }
 0x45f   :  { %v5780_v53 = vpop.f32.mrf.mxu0 }
 0x461   :  { %v2567_v12 = vpop.f32.mrf.mxu0 }
 0x463   :  { %2922 = vmatmul.mubr.bf16.gmra.mxu1 %v5103_v21  ;;  %v5782_v5 = vpop.f32.mrf.mxu0 }
 0x464   :  { %2929 = vmatprep.mubr.bf16.mxu1 %v5104_v6 }
 0x465   :  { %v2572_v18 = vpop.f32.mrf.mxu0 }
 0x466   :  { %v5119_v18 = vld [vmem:[#allocation2 + $0x308] ss:$16 sps:$4 sm:$0xff]  }
 0x467   :  { %v5784_v22 = vpop.f32.mrf.mxu0 }
 0x469   :  { %v2575_v57 = vpop.f32.mrf.mxu0 }
 0x46b   :  { %2930 = vmatmul.mubr.bf16.gmra.mxu1 %v5105_v58  ;;  %v5786_v43 = vpop.f32.mrf.mxu0  ;;  %v5120_v58 = vld [vmem:[#allocation2 + $0x32c] ss:$16 sps:$4 sm:$0xff]  }
 0x46c   :  { %2937 = vmatprep.mubr.bf16.mxu1 %v5106_v40 }
 0x46d   :  { %v2580_v44 = vpop.f32.mrf.mxu0 }
 0x46f   :  { %v5788_v33 = vpop.f32.mrf.mxu0 }
 0x471   :  { %v2583_v50 = vpop.f32.mrf.mxu0 }
 0x473   :  { %2938 = vmatmul.mubr.bf16.gmra.mxu1 %v5107_v54  ;;  %v5790_v29 = vpop.f32.mrf.mxu0 }
 0x474   :  { %2945 = vmatprep.mubr.bf16.mxu1 %v5108_v41 }
 0x475   :  { %v2588_v42 = vpop.f32.mrf.mxu0 }
 0x477   :  { %v5792_v55 = vpop.f32.mrf.mxu0 }
 0x479   :  { %v2591_v1 = vpop.f32.mrf.mxu0 }
 0x47b   :  { %2946 = vmatmul.mubr.bf16.gmra.mxu1 %v5109_v2  ;;  %v5794_v3 = vpop.f32.mrf.mxu0 }
 0x47c   :  { %2953 = vmatprep.mubr.bf16.mxu1 %v5110_v7 }
 0x47d   :  { %v2596_v8 = vpop.f32.mrf.mxu0 }
 0x47f   :  { %v5796_v63 = vpop.f32.mrf.mxu0 }
 0x481   :  { %v2599_v10 = vpop.f32.mrf.mxu0 }
 0x482   :  { %v5121_v10 = vld [vmem:[#allocation2 + $0x328] ss:$16 sps:$4 sm:$0xff]  }
 0x483   :  { %2954 = vmatmul.mubr.bf16.gmra.mxu1 %v5111_v13  ;;  %v5798_v14 = vpop.f32.mrf.mxu0 }
 0x484   :  { %2961 = vmatprep.mubr.bf16.mxu1 %v5112_v59  ;;  %v5122_v59 = vld [vmem:[#allocation2 + $0x34c] ss:$16 sps:$4 sm:$0xff]  }
 0x485   :  { %v2604_v60 = vpop.f32.mrf.mxu0 }
 0x487   :  { %v5800_v19 = vpop.f32.mrf.mxu0 }
 0x489   :  { %v2607_v15 = vpop.f32.mrf.mxu0 }
 0x48b   :  { %2962 = vmatmul.mubr.bf16.gmra.mxu1 %v5113_v20  ;;  %v5802_v23 = vpop.f32.mrf.mxu0 }
 0x48c   :  { %2969 = vmatprep.mubr.bf16.mxu1 %v5114_v25 }
 0x48d   :  { %v2612_v26 = vpop.f32.mrf.mxu0 }
 0x48f   :  { %v5804_v27 = vpop.f32.mrf.mxu0 }
 0x491   :  { %v2615_v46 = vpop.f32.mrf.mxu0 }
 0x493   :  { %2970 = vmatmul.mubr.bf16.gmra.mxu1 %v5115_v32  ;;  %v5806_v28 = vpop.f32.mrf.mxu0 }
 0x494   :  { %2977 = vmatprep.mubr.bf16.mxu1 %v5116_v35 }
 0x495   :  { %v2620_v61 = vpop.f32.mrf.mxu0 }
 0x496   :  { %v5123_v61 = vld [vmem:[#allocation2 + $0x348] ss:$16 sps:$4 sm:$0xff]  }
 0x497   :  { %v5808_v62 = vpop.f32.mrf.mxu0 }
 0x499   :  { %v2623_v47 = vpop.f32.mrf.mxu0 }
 0x49b   :  { %2978 = vmatmul.mubr.bf16.gmra.mxu1 %v5117_v48  ;;  %v5810_v51 = vpop.f32.mrf.mxu0  ;;  %v5124_v48 = vld [vmem:[#allocation2 + $0x36c] ss:$16 sps:$4 sm:$0xff]  }
 0x49c   :  { %2985 = vmatprep.mubr.bf16.mxu1 %v5118_v37 }
 0x49d   :  { %v2628_v49 = vpop.f32.mrf.mxu0 }
 0x49f   :  { %v5812_v12 = vpop.f32.mrf.mxu0 }
 0x4a1   :  { %v2631_v21 = vpop.f32.mrf.mxu0 }
 0x4a3   :  { %v2795_v6 = vpop.f32.mrf.mxu1  ;;  %2986 = vmatmul.mubr.bf16.gmra.mxu1 %v5119_v18  ;;  %v5814_v57 = vpop.f32.mrf.mxu0 }
 0x4a4   :  { %2993 = vmatprep.mubr.bf16.mxu1 %v5120_v58  ;;  %v2796_v41 = vadd.f32 %v2795_v6, %v5740_v11 }
 0x4a5   :  { %v2797_v40 = vpop.f32.mrf.mxu1  ;;  %v2636_v44 = vpop.f32.mrf.mxu0 }
 0x4a7   :  { %v2798_v50 = vpop.f32.mrf.mxu1  ;;  %v5816_v54 = vpop.f32.mrf.mxu0 }
 0x4a8   :  { %v2799_v42 = vadd.f32 %v2798_v50, %v5745_v17  ;;  %v5125_v50 = vld [vmem:[#allocation2 + $0x368] ss:$16 sps:$4 sm:$0xff]  }
 0x4a9   :  { %v2800_v1 = vpop.f32.mrf.mxu1  ;;  %v2639_v2 = vpop.f32.mrf.mxu0 }
 0x4aa   :  { %v3050_v7 = vpack.c.bf16 %v2799_v42, %v2796_v41  ;;  %v5126_v42 = vld [vmem:[#allocation2 + $0x38c] ss:$16 sps:$4 sm:$0xff]  }
 0x4ab   :  { %v2803_v8 = vpop.f32.mrf.mxu1  ;;  %2994 = vmatmul.mubr.bf16.gmra.mxu1 %v5121_v10  ;;  %v5820_v13 = vpop.f32.mrf.mxu0 }
 0x4ac   :  { %4691 = vmatprep.mubr.msk.bf16.mxu0 %vm419_vm0, %v3050_v7  ;;  %3001 = vmatprep.mubr.bf16.mxu1 %v5122_v59  ;;  %v2804_v11 = vadd.f32 %v2803_v8, %v5750_v39 }
 0x4ad   :  { %v2805_v60 = vpop.f32.mrf.mxu1  ;;  %v2644_v15 = vpop.f32.mrf.mxu0 }
 0x4af   :  { %v2806_v20 = vpop.f32.mrf.mxu1  ;;  %v5823_v25 = vpop.f32.mrf.mxu0 }
 0x4b0   :  { %v2807_v17 = vadd.f32 %v2806_v20, %v5755_v34  ;;  %v5127_v20 = vld [vmem:[#allocation2 + $0x388] ss:$16 sps:$4 sm:$0xff]  }
 0x4b1   :  { %v2808_v26 = vpop.f32.mrf.mxu1  ;;  %v2647_v46 = vpop.f32.mrf.mxu0 }
 0x4b2   :  { %v3051_v32 = vpack.c.bf16 %v2807_v17, %v2804_v11  ;;  %v5128_v17 = vld [vmem:[#allocation2 + $0x3ac] ss:$16 sps:$4 sm:$0xff]  }
 0x4b3   :  { %v2811_v35 = vpop.f32.mrf.mxu1  ;;  %3002 = vmatmul.mubr.bf16.gmra.mxu1 %v5123_v61  ;;  %v5827_v47 = vpop.f32.mrf.mxu0 }
 0x4b4   :  { %4692 = vmatmul.mubr.msk.bf16.vlgmr.msra.gmra.mxu0 %vm419_vm0, %v3051_v32  ;;  %3009 = vmatprep.mubr.bf16.mxu1 %v5124_v48  ;;  %v2812_v39 = vadd.f32 %v2811_v35, %v5757_v30 }
 0x4b5   :  { %v2813_v37 = vpop.f32.mrf.mxu1  ;;  %v2652_v49 = vpop.f32.mrf.mxu0 }
 0x4b7   :  { %v2814_v21 = vpop.f32.mrf.mxu1  ;;  %v5830_v6 = vpop.f32.mrf.mxu0 }
 0x4b8   :  { %v2815_v34 = vadd.f32 %v2814_v21, %v5760_v56  ;;  %v5129_v21 = vld [vmem:[#allocation2 + $0x3a8] ss:$16 sps:$4 sm:$0xff]  }
 0x4b9   :  { %v2816_v18 = vpop.f32.mrf.mxu1  ;;  %v2655_v58 = vpop.f32.mrf.mxu0 }
 0x4ba   :  { %v3052_v40 = vpack.c.bf16 %v2815_v34, %v2812_v39  ;;  %v5130_v34 = vld [vmem:[#allocation2 + $0x3cc] ss:$16 sps:$4 sm:$0xff]  }
 0x4bb   :  { %v2819_v44 = vpop.f32.mrf.mxu1  ;;  %3010 = vmatmul.mubr.bf16.gmra.mxu1 %v5125_v50  ;;  %v5834_v41 = vpop.f32.mrf.mxu0 }
 0x4bc   :  { %4695 = vmatprep.mubr.msk.bf16.mxu0 %vm419_vm0, %v3052_v40  ;;  %3017 = vmatprep.mubr.bf16.mxu1 %v5126_v42  ;;  %v2820_v30 = vadd.f32 %v2819_v44, %v5762_v4 }
 0x4bd   :  { %v2821_v1 = vpop.f32.mrf.mxu1  ;;  %v2660_v2 = vpop.f32.mrf.mxu0 }
 0x4bf   :  { %v2822_v7 = vpop.f32.mrf.mxu1  ;;  %v5837_v8 = vpop.f32.mrf.mxu0 }
 0x4c0   :  { %v2823_v56 = vadd.f32 %v2822_v7, %v5764_v0  ;;  %v5131_v7 = vld [vmem:[#allocation2 + $0x3c8] ss:$16 sps:$4 sm:$0xff]  }
 0x4c1   :  { %v2824_v10 = vpop.f32.mrf.mxu1  ;;  %v2663_v59 = vpop.f32.mrf.mxu0 }
 0x4c2   :  { %v3053_v60 = vpack.c.bf16 %v2823_v56, %v2820_v30  ;;  %v5132_v56 = vld [vmem:[#allocation2 + $0x3ec] ss:$16 sps:$4 sm:$0xff]  }
 0x4c3   :  { %v2827_v15 = vpop.f32.mrf.mxu1  ;;  %3018 = vmatmul.mubr.bf16.gmra.mxu1 %v5127_v20  ;;  %v5841_v11 = vpop.f32.mrf.mxu0 }
 0x4c4   :  { %4696 = vmatmul.mubr.msk.bf16.gmra.mxu0 %vm419_vm0, %v3053_v60  ;;  %3025 = vmatprep.mubr.bf16.mxu1 %v5128_v17  ;;  %v2828_v4 = vadd.f32 %v2827_v15, %v5766_v16 }
 0x4c5   :  { %v2829_v26 = vpop.f32.mrf.mxu1  ;;  %v2668_v46 = vpop.f32.mrf.mxu0 }
 0x4c7   :  { %v2830_v32 = vpop.f32.mrf.mxu1  ;;  %v5844_v35 = vpop.f32.mrf.mxu0 }
 0x4c8   :  { %v2831_v0 = vadd.f32 %v2830_v32, %v5768_v9  ;;  %v5133_v32 = vld [vmem:[#allocation2 + $0x3e8] ss:$16 sps:$4 sm:$0xff]  }
 0x4c9   :  { %v2832_v61 = vpop.f32.mrf.mxu1  ;;  %v2671_v48 = vpop.f32.mrf.mxu0 }
 0x4ca   :  { %v3054_v37 = vpack.c.bf16 %v2831_v0, %v2828_v4  ;;  %v5134_v0 = vld [vmem:[#allocation2 + $0x4] ss:$16 sps:$4 sm:$0xff]  }
 0x4cb   :  { %v2835_v49 = vpop.f32.mrf.mxu1  ;;  %3026 = vmatmul.mubr.bf16.gmra.mxu1 %v5129_v21  ;;  %v5848_v39 = vpop.f32.mrf.mxu0 }
 0x4cc   :  { %4699 = vmatprep.mubr.msk.bf16.mxu0 %vm419_vm0, %v3054_v37  ;;  %3033 = vmatprep.mubr.bf16.mxu1 %v5130_v34  ;;  %v2836_v16 = vadd.f32 %v2835_v49, %v5770_v24 }
 0x4cd   :  { %v2837_v18 = vpop.f32.mrf.mxu1  ;;  %v2676_v58 = vpop.f32.mrf.mxu0 }
 0x4cf   :  { %v2838_v40 = vpop.f32.mrf.mxu1  ;;  %v5851_v44 = vpop.f32.mrf.mxu0 }
 0x4d0   :  { %v2839_v9 = vadd.f32 %v2838_v40, %v5772_v45 }
 0x4d1   :  { %v2840_v50 = vpop.f32.mrf.mxu1  ;;  %v2679_v42 = vpop.f32.mrf.mxu0 }
 0x4d2   :  { %v3055_v1 = vpack.c.bf16 %v2839_v9, %v2836_v16 }
 0x4d3   :  { %v2843_v2 = vpop.f32.mrf.mxu1  ;;  %3034 = vmatmul.mubr.bf16.gmra.mxu1 %v5131_v7  ;;  %v5855_v30 = vpop.f32.mrf.mxu0 }
 0x4d4   :  { %4700 = vmatmul.mubr.msk.bf16.gmra.mxu0 %vm419_vm0, %v3055_v1  ;;  %3041 = vmatprep.mubr.bf16.mxu1 %v5132_v56  ;;  %v2844_v24 = vadd.f32 %v2843_v2, %v5774_v31 }
 0x4d5   :  { %v2845_v10 = vpop.f32.mrf.mxu1  ;;  %v2684_v59 = vpop.f32.mrf.mxu0 }
 0x4d7   :  { %v2846_v60 = vpop.f32.mrf.mxu1  ;;  %v5858_v15 = vpop.f32.mrf.mxu0 }
 0x4d8   :  { %v2847_v45 = vadd.f32 %v2846_v60, %v5776_v38 }
 0x4d9   :  { %v2848_v20 = vpop.f32.mrf.mxu1  ;;  %v2687_v17 = vpop.f32.mrf.mxu0 }
 0x4da   :  { %v3056_v26 = vpack.c.bf16 %v2847_v45, %v2844_v24 }
 0x4db   :  { %v2851_v46 = vpop.f32.mrf.mxu1  ;;  %3042 = vmatmul.mubr.bf16.gmra.mxu1 %v5133_v32  ;;  %v5862_v4 = vpop.f32.mrf.mxu0 }
 0x4dc   :  { %4703 = vmatprep.mubr.msk.bf16.mxu0 %vm419_vm0, %v3056_v26  ;;  %3563 = vmatprep.mubr.bf16.mxu1 %v5134_v0  ;;  %v2852_v31 = vadd.f32 %v2851_v46, %v5778_v52 }
 0x4dd   :  { %v2853_v61 = vpop.f32.mrf.mxu1  ;;  %v2692_v48 = vpop.f32.mrf.mxu0 }
 0x4df   :  { %v2854_v37 = vpop.f32.mrf.mxu1  ;;  %v5865_v49 = vpop.f32.mrf.mxu0 }
 0x4e0   :  { %v2855_v38 = vadd.f32 %v2854_v37, %v5780_v53 }
 0x4e1   :  { %v2856_v21 = vpop.f32.mrf.mxu1  ;;  %v2695_v34 = vpop.f32.mrf.mxu0 }
 0x4e2   :  { %v3057_v18 = vpack.c.bf16 %v2855_v38, %v2852_v31 }
 0x4e3   :  { %v2859_v58 = vpop.f32.mrf.mxu1  ;;  %v5869_v40 = vpop.f32.mrf.mxu0 }
 0x4e4   :  { %4704 = vmatmul.mubr.msk.bf16.gmra.mxu0 %vm419_vm0, %v3057_v18  ;;  %v2860_v1 = vadd.f32 %v2859_v58, %v5782_v5 }
 0x4e5   :  { %v2861_v16 = vpop.f32.mrf.mxu1  ;;  %v2700_v9 = vpop.f32.mrf.mxu0 }
 0x4e7   :  { %v2862_v50 = vpop.f32.mrf.mxu1  ;;  %v5872_v42 = vpop.f32.mrf.mxu0 }
 0x4e8   :  { %v2863_v2 = vadd.f32 %v2862_v50, %v5784_v22 }
 0x4e9   :  { %v2864_v52 = vpop.f32.mrf.mxu1  ;;  %v2703_v7 = vpop.f32.mrf.mxu0 }
 0x4ea   :  { %v3058_v53 = vpack.c.bf16 %v2863_v2, %v2860_v1 }
 0x4eb   :  { %v2867_v56 = vpop.f32.mrf.mxu1  ;;  %v5876_v10 = vpop.f32.mrf.mxu0 }
 0x4ec   :  { %4707 = vmatprep.mubr.msk.bf16.mxu0 %vm419_vm0, %v3058_v53  ;;  %v2868_v20 = vadd.f32 %v2867_v56, %v5786_v43 }
 0x4ed   :  { %v2869_v59 = vpop.f32.mrf.mxu1  ;;  %v2708_v60 = vpop.f32.mrf.mxu0 }
 0x4ef   :  { %v2870_v24 = vpop.f32.mrf.mxu1  ;;  %v5879_v45 = vpop.f32.mrf.mxu0 }
 0x4f0   :  { %v2871_v17 = vadd.f32 %v2870_v24, %v5788_v33 }
 0x4f1   :  { %v2872_v5 = vpop.f32.mrf.mxu1  ;;  %v2711_v26 = vpop.f32.mrf.mxu0 }
 0x4f2   :  { %v3059_v22 = vpack.c.bf16 %v2871_v17, %v2868_v20 }
 0x4f3   :  { %v2875_v46 = vpop.f32.mrf.mxu1  ;;  %v5883_v32 = vpop.f32.mrf.mxu0 }
 0x4f4   :  { %4708 = vmatmul.mubr.msk.bf16.gmra.mxu0 %vm419_vm0, %v3059_v22  ;;  %v2876_v31 = vadd.f32 %v2875_v46, %v5790_v29 }
 0x4f5   :  { %v2877_v0 = vpop.f32.mrf.mxu1  ;;  %v2716_v61 = vpop.f32.mrf.mxu0 }
 0x4f7   :  { %v2878_v48 = vpop.f32.mrf.mxu1  ;;  %v5886_v37 = vpop.f32.mrf.mxu0 }
 0x4f8   :  { %v2879_v38 = vadd.f32 %v2878_v48, %v5792_v55 }
 0x4f9   :  { %v2880_v43 = vpop.f32.mrf.mxu1  ;;  %v2719_v21 = vpop.f32.mrf.mxu0 }
 0x4fa   :  { %v3060_v33 = vpack.c.bf16 %v2879_v38, %v2876_v31 }
 0x4fb   :  { %v2883_v34 = vpop.f32.mrf.mxu1  ;;  %v5890_v18 = vpop.f32.mrf.mxu0 }
 0x4fc   :  { %4711 = vmatprep.mubr.msk.bf16.mxu0 %vm419_vm0, %v3060_v33  ;;  %v2884_v1 = vadd.f32 %v2883_v34, %v5794_v3 }
 0x4fd   :  { %v2885_v58 = vpop.f32.mrf.mxu1  ;;  %v2724_v16 = vpop.f32.mrf.mxu0 }
 0x4ff   :  { %v2886_v9 = vpop.f32.mrf.mxu1  ;;  %v5893_v50 = vpop.f32.mrf.mxu0 }
 0x500   :  { %v2887_v2 = vadd.f32 %v2886_v9, %v5796_v63 }
 0x501   :  { %v2888_v29 = vpop.f32.mrf.mxu1  ;;  %v2727_v52 = vpop.f32.mrf.mxu0 }
 0x502   :  { %v3061_v55 = vpack.c.bf16 %v2887_v2, %v2884_v1 }
 0x503   :  { %v2891_v7 = vpop.f32.mrf.mxu1  ;;  %v5897_v53 = vpop.f32.mrf.mxu0 }
 0x504   :  { %4712 = vmatmul.mubr.msk.bf16.gmra.mxu0 %vm419_vm0, %v3061_v55  ;;  %v2892_v20 = vadd.f32 %v2891_v7, %v5798_v14 }
 0x505   :  { %v2893_v56 = vpop.f32.mrf.mxu1  ;;  %v2732_v59 = vpop.f32.mrf.mxu0 }
 0x507   :  { %v2894_v60 = vpop.f32.mrf.mxu1  ;;  %v5900_v24 = vpop.f32.mrf.mxu0 }
 0x508   :  { %v2895_v17 = vadd.f32 %v2894_v60, %v5800_v19 }
 0x509   :  { %v2896_v3 = vpop.f32.mrf.mxu1  ;;  %v2735_v5 = vpop.f32.mrf.mxu0 }
 0x50a   :  { %v3062_v63 = vpack.c.bf16 %v2895_v17, %v2892_v20 }
 0x50b   :  { %v2899_v26 = vpop.f32.mrf.mxu1  ;;  %v5904_v22 = vpop.f32.mrf.mxu0 }
 0x50c   :  { %4715 = vmatprep.mubr.msk.bf16.mxu0 %vm419_vm0, %v3062_v63  ;;  %v2900_v31 = vadd.f32 %v2899_v26, %v5802_v23 }
 0x50d   :  { %v2901_v46 = vpop.f32.mrf.mxu1  ;;  %v2740_v0 = vpop.f32.mrf.mxu0 }
 0x50f   :  { %v2902_v61 = vpop.f32.mrf.mxu1  ;;  %v5907_v48 = vpop.f32.mrf.mxu0 }
 0x510   :  { %v2903_v38 = vadd.f32 %v2902_v61, %v5804_v27 }
 0x511   :  { %v2904_v14 = vpop.f32.mrf.mxu1  ;;  %v2743_v43 = vpop.f32.mrf.mxu0 }
 0x512   :  { %v3063_v19 = vpack.c.bf16 %v2903_v38, %v2900_v31 }
 0x513   :  { %v2907_v21 = vpop.f32.mrf.mxu1  ;;  %v5911_v33 = vpop.f32.mrf.mxu0 }
 0x514   :  { %4716 = vmatmul.mubr.msk.bf16.gmra.mxu0 %vm419_vm0, %v3063_v19  ;;  %v2908_v1 = vadd.f32 %v2907_v21, %v5806_v28 }
 0x515   :  { %v2909_v34 = vpop.f32.mrf.mxu1  ;;  %v2748_v58 = vpop.f32.mrf.mxu0 }
 0x517   :  { %v2910_v16 = vpop.f32.mrf.mxu1  ;;  %v5914_v9 = vpop.f32.mrf.mxu0 }
 0x518   :  { %v2911_v2 = vadd.f32 %v2910_v16, %v5808_v62 }
 0x519   :  { %v2912_v23 = vpop.f32.mrf.mxu1  ;;  %v2751_v29 = vpop.f32.mrf.mxu0 }
 0x51a   :  { %v3064_v27 = vpack.c.bf16 %v2911_v2, %v2908_v1 }
 0x51b   :  { %v2915_v52 = vpop.f32.mrf.mxu1  ;;  %v5918_v55 = vpop.f32.mrf.mxu0 }
 0x51c   :  { %4719 = vmatprep.mubr.msk.bf16.mxu0 %vm419_vm0, %v3064_v27  ;;  %v2916_v20 = vadd.f32 %v2915_v52, %v5810_v51 }
 0x51d   :  { %v2917_v7 = vpop.f32.mrf.mxu1  ;;  %v2756_v56 = vpop.f32.mrf.mxu0 }
 0x51f   :  { %v2918_v59 = vpop.f32.mrf.mxu1  ;;  %v5921_v60 = vpop.f32.mrf.mxu0 }
 0x520   :  { %v2919_v17 = vadd.f32 %v2918_v59, %v5812_v12 }
 0x521   :  { %v2920_v28 = vpop.f32.mrf.mxu1  ;;  %v2759_v3 = vpop.f32.mrf.mxu0 }
 0x522   :  { %v3065_v62 = vpack.c.bf16 %v2919_v17, %v2916_v20 }
 0x523   :  { %v2923_v5 = vpop.f32.mrf.mxu1 }
 0x524   :  { %4720 = vmatmul.mubr.msk.bf16.gmra.mxu0 %vm419_vm0, %v3065_v62  ;;  %v2924_v46 = vadd.f32 %v2923_v5, %v5814_v57 }
 0x525   :  { %v2925_v63 = vpop.f32.mrf.mxu1 }
 0x527   :  { %v2926_v26 = vpop.f32.mrf.mxu1 }
 0x528   :  { %v2927_v0 = vadd.f32 %v2926_v26, %v5816_v54 }
 0x529   :  { %v2928_v61 = vpop.f32.mrf.mxu1 }
 0x52a   :  { %v3066_v31 = vpack.c.bf16 %v2927_v0, %v2924_v46 }
 0x52b   :  { %v2931_v38 = vpop.f32.mrf.mxu1 }
 0x52c   :  { %4723 = vmatprep.mubr.msk.bf16.mxu0 %vm419_vm0, %v3066_v31  ;;  %v2932_v12 = vadd.f32 %v2931_v38, %v5820_v13 }
 0x52d   :  { %v2933_v51 = vpop.f32.mrf.mxu1 }
 0x52f   :  { %v2934_v14 = vpop.f32.mrf.mxu1 }
 0x530   :  { %v2935_v43 = vadd.f32 %v2934_v14, %v5823_v25 }
 0x531   :  { %v2936_v19 = vpop.f32.mrf.mxu1 }
 0x532   :  { %v3067_v21 = vpack.c.bf16 %v2935_v43, %v2932_v12 }
 0x533   :  { %v2939_v34 = vpop.f32.mrf.mxu1 }
 0x534   :  { %4724 = vmatmul.mubr.msk.bf16.gmra.mxu0 %vm419_vm0, %v3067_v21  ;;  %v2940_v54 = vadd.f32 %v2939_v34, %v5827_v47 }
 0x535   :  { %v2941_v58 = vpop.f32.mrf.mxu1 }
 0x537   :  { %v2942_v57 = vpop.f32.mrf.mxu1 }
 0x538   :  { %v2943_v16 = vadd.f32 %v2942_v57, %v5830_v6 }
 0x539   :  { %v2944_v1 = vpop.f32.mrf.mxu1 }
 0x53a   :  { %v3068_v2 = vpack.c.bf16 %v2943_v16, %v2940_v54 }
 0x53b   :  { %v2947_v23 = vpop.f32.mrf.mxu1 }
 0x53c   :  { %4727 = vmatprep.mubr.msk.bf16.mxu0 %vm419_vm0, %v3068_v2  ;;  %v2948_v25 = vadd.f32 %v2947_v23, %v5834_v41 }
 0x53d   :  { %v2949_v29 = vpop.f32.mrf.mxu1 }
 0x53f   :  { %v2950_v13 = vpop.f32.mrf.mxu1 }
 0x540   :  { %v2951_v27 = vadd.f32 %v2950_v13, %v5837_v8 }
 0x541   :  { %v2952_v52 = vpop.f32.mrf.mxu1 }
 0x542   :  { %v3069_v7 = vpack.c.bf16 %v2951_v27, %v2948_v25 }
 0x543   :  { %v2955_v56 = vpop.f32.mrf.mxu1 }
 0x544   :  { %4728 = vmatmul.mubr.msk.bf16.gmra.mxu0 %vm419_vm0, %v3069_v7  ;;  %v2956_v6 = vadd.f32 %v2955_v56, %v5841_v11 }
 0x545   :  { %v2957_v59 = vpop.f32.mrf.mxu1 }
 0x547   :  { %v2958_v47 = vpop.f32.mrf.mxu1 }
 0x548   :  { %v2959_v20 = vadd.f32 %v2958_v47, %v5844_v35 }
 0x549   :  { %v2960_v17 = vpop.f32.mrf.mxu1 }
 0x54a   :  { %v3070_v28 = vpack.c.bf16 %v2959_v20, %v2956_v6 }
 0x54b   :  { %v2963_v3 = vpop.f32.mrf.mxu1 }
 0x54c   :  { %4731 = vmatprep.mubr.msk.bf16.mxu0 %vm419_vm0, %v3070_v28  ;;  %v2964_v8 = vadd.f32 %v2963_v3, %v5848_v39 }
 0x54d   :  { %v2965_v62 = vpop.f32.mrf.mxu1 }
 0x54f   :  { %v2966_v41 = vpop.f32.mrf.mxu1 }
 0x550   :  { %v2967_v5 = vadd.f32 %v2966_v41, %v5851_v44 }
 0x551   :  { %v2968_v63 = vpop.f32.mrf.mxu1 }
 0x552   :  { %v3071_v26 = vpack.c.bf16 %v2967_v5, %v2964_v8 }
 0x553   :  { %v2971_v46 = vpop.f32.mrf.mxu1 }
 0x554   :  { %4732 = vmatmul.mubr.msk.bf16.gmra.mxu0 %vm419_vm0, %v3071_v26  ;;  %v2972_v35 = vadd.f32 %v2971_v46, %v5855_v30 }
 0x555   :  { %v2973_v0 = vpop.f32.mrf.mxu1 }
 0x557   :  { %v2974_v11 = vpop.f32.mrf.mxu1 }
 0x558   :  { %v2975_v61 = vadd.f32 %v2974_v11, %v5858_v15 }
 0x559   :  { %v2976_v31 = vpop.f32.mrf.mxu1 }
 0x55a   :  { %v3072_v38 = vpack.c.bf16 %v2975_v61, %v2972_v35 }
 0x55b   :  { %v2979_v51 = vpop.f32.mrf.mxu1 }
 0x55c   :  { %4735 = vmatprep.mubr.msk.bf16.mxu0 %vm419_vm0, %v3072_v38  ;;  %v2980_v44 = vadd.f32 %v2979_v51, %v5862_v4 }
 0x55d   :  { %v2981_v14 = vpop.f32.mrf.mxu1 }
 0x55f   :  { %v2982_v39 = vpop.f32.mrf.mxu1 }
 0x560   :  { %v2983_v12 = vadd.f32 %v2982_v39, %v5865_v49 }
 0x561   :  { %v2984_v43 = vpop.f32.mrf.mxu1 }
 0x562   :  { %v3073_v19 = vpack.c.bf16 %v2983_v12, %v2980_v44 }
 0x563   :  { %v2987_v21 = vpop.f32.mrf.mxu1 }
 0x564   :  { %4736 = vmatmul.mubr.msk.bf16.gmra.mxu0 %vm419_vm0, %v3073_v19  ;;  %v2988_v15 = vadd.f32 %v2987_v21, %v5869_v40 }
 0x565   :  { %v2989_v34 = vpop.f32.mrf.mxu1 }
 0x567   :  { %v2990_v30 = vpop.f32.mrf.mxu1 }
 0x568   :  { %v2991_v58 = vadd.f32 %v2990_v30, %v5872_v42 }
 0x569   :  { %v2992_v57 = vpop.f32.mrf.mxu1 }
 0x56a   :  { %v3074_v54 = vpack.c.bf16 %v2991_v58, %v2988_v15 }
 0x56b   :  { %v2995_v16 = vpop.f32.mrf.mxu1 }
 0x56c   :  { %4739 = vmatprep.mubr.msk.bf16.mxu0 %vm419_vm0, %v3074_v54  ;;  %v2996_v49 = vadd.f32 %v2995_v16, %v5876_v10 }
 0x56d   :  { %v2997_v1 = vpop.f32.mrf.mxu1 }
 0x56f   :  { %v2998_v4 = vpop.f32.mrf.mxu1 }
 0x570   :  { %v2999_v2 = vadd.f32 %v2998_v4, %v5879_v45 }
 0x571   :  { %v3000_v23 = vpop.f32.mrf.mxu1 }
 0x572   :  { %v3075_v29 = vpack.c.bf16 %v2999_v2, %v2996_v49 }
 0x573   :  { %v3003_v13 = vpop.f32.mrf.mxu1 }
 0x574   :  { %4740 = vmatmul.mubr.msk.bf16.gmra.mxu0 %vm419_vm0, %v3075_v29  ;;  %v3004_v42 = vadd.f32 %v3003_v13, %v5883_v32  ;;  %v5958_v7 = vpop.f32.mrf.mxu0 }
 0x575   :  { %v3005_v25 = vpop.f32.mrf.mxu1 }
 0x576   :  { %v5961_v45 = vpop.f32.mrf.mxu0 }
 0x577   :  { %v3006_v40 = vpop.f32.mrf.mxu1 }
 0x578   :  { %v3007_v27 = vadd.f32 %v3006_v40, %v5886_v37  ;;  %v5965_v28 = vpop.f32.mrf.mxu0 }
 0x579   :  { %v3008_v52 = vpop.f32.mrf.mxu1 }
 0x57a   :  { %v3076_v56 = vpack.c.bf16 %v3007_v27, %v3004_v42  ;;  %v5968_v62 = vpop.f32.mrf.mxu0  ;;  %v3500_v27 = vpack.c.bf16 %v5965_v28, %v5958_v7 }
 0x57b   :  { %v3011_v59 = vpop.f32.mrf.mxu1 }
 0x57c   :  { %4743 = vmatprep.mubr.msk.bf16.mxu0 %vm419_vm0, %v3076_v56  ;;  %v3012_v6 = vadd.f32 %v3011_v59, %v5890_v18  ;;  %v3499_v56 = vpack.c.bf16 %v5968_v62, %v5961_v45 }
 0x57d   :  { %v3013_v10 = vpop.f32.mrf.mxu1 }
 0x57f   :  { %v3014_v47 = vpop.f32.mrf.mxu1 }
 0x580   :  { %v3015_v20 = vadd.f32 %v3014_v47, %v5893_v50 }
 0x581   :  { %v3016_v17 = vpop.f32.mrf.mxu1 }
 0x582   :  { %v3077_v32 = vpack.c.bf16 %v3015_v20, %v3012_v6 }
 0x583   :  { %v3019_v37 = vpop.f32.mrf.mxu1 }
 0x584   :  { %4744 = vmatmul.mubr.msk.bf16.gmra.mxu0 %vm419_vm0, %v3077_v32  ;;  %v3020_v8 = vadd.f32 %v3019_v37, %v5897_v53  ;;  %v4697_v5 = vpop.f32.mrf.mxu0 }
 0x585   :  { %v3021_v3 = vpop.f32.mrf.mxu1 }
 0x586   :  { %v3260_v50 = vpop.f32.mrf.mxu0 }
 0x587   :  { %v3022_v41 = vpop.f32.mrf.mxu1 }
 0x588   :  { %v3023_v63 = vadd.f32 %v3022_v41, %v5900_v24  ;;  %v4698_v35 = vpop.f32.mrf.mxu0 }
 0x589   :  { %v3024_v26 = vpop.f32.mrf.mxu1  ;;  %v3502_v13 = vpack.c.bf16 %v4698_v35, %v4697_v5 }
 0x58a   :  { %v3078_v18 = vpack.c.bf16 %v3023_v63, %v3020_v8  ;;  %v3263_v53 = vpop.f32.mrf.mxu0 }
 0x58b   :  { %v3027_v46 = vpop.f32.mrf.mxu1  ;;  %v3501_v40 = vpack.c.bf16 %v3263_v53, %v3260_v50 }
 0x58c   :  { %4747 = vmatprep.mubr.msk.bf16.mxu0 %vm419_vm0, %v3078_v18  ;;  %v3028_v61 = vadd.f32 %v3027_v46, %v5904_v22 }
 0x58d   :  { %v3029_v0 = vpop.f32.mrf.mxu1 }
 0x58f   :  { %v3030_v11 = vpop.f32.mrf.mxu1 }
 0x590   :  { %v3031_v31 = vadd.f32 %v3030_v11, %v5907_v48 }
 0x591   :  { %v3032_v38 = vpop.f32.mrf.mxu1 }
 0x592   :  { %v3079_v51 = vpack.c.bf16 %v3031_v31, %v3028_v61  ;;  %v5136_v38 = vld [vmem:[#allocation2] ss:$16 sps:$4 sm:$0xff]  }
 0x593   :  { %v3035_v14 = vpop.f32.mrf.mxu1 }
 0x594   :  { %4748 = vmatmul.mubr.msk.bf16.gmra.mxu0 %vm419_vm0, %v3079_v51  ;;  %v4701_v39 = vpop.f32.mrf.mxu0  ;;  %v3036_v12 = vadd.f32 %v3035_v14, %v5911_v33  ;;  %v5135_v33 = vld [vmem:[#allocation2 + $0xc] ss:$16 sps:$4 sm:$0xff]   ;;  %v5137_v51 = vld [vmem:[#allocation2 + $0x24] ss:$16 sps:$4 sm:$0xff]  }
 0x595   :  { %v3037_v24 = vpop.f32.mrf.mxu1 }
 0x596   :  { %v3276_v21 = vpop.f32.mrf.mxu0  ;;  %v5138_v24 = vld [vmem:[#allocation2 + $0x20] ss:$16 sps:$4 sm:$0xff]  }
 0x597   :  { %v3038_v44 = vpop.f32.mrf.mxu1 }
 0x598   :  { %v3039_v43 = vadd.f32 %v3038_v44, %v5914_v9  ;;  %v4702_v48 = vpop.f32.mrf.mxu0 }
 0x599   :  { %v3040_v19 = vpop.f32.mrf.mxu1 }
 0x59a   :  { %v3080_v34 = vpack.c.bf16 %v3039_v43, %v3036_v12  ;;  %v3279_v16 = vpop.f32.mrf.mxu0  ;;  %v5140_v19 = vld [vmem:[#allocation2 + $0x40] ss:$16 sps:$4 sm:$0xff]  }
 0x59b   :  { %v3043_v30 = vpop.f32.mrf.mxu1 }
 0x59c   :  { %4751 = vmatprep.mubr.msk.bf16.mxu0 %vm419_vm0, %v3080_v34  ;;  %v3044_v58 = vadd.f32 %v3043_v30, %v5918_v55  ;;  %v3504_v55 = vpack.c.bf16 %v4702_v48, %v4701_v39  ;;  %v5139_v39 = vld [vmem:[#allocation2 + $0x44] ss:$16 sps:$4 sm:$0xff]  }
 0x59d   :  { %v3045_v22 = vpop.f32.mrf.mxu1  ;;  %v5143_v48 = vld [vmem:[#allocation2 + $0x84] ss:$16 sps:$4 sm:$0xff]  }
 0x59e   :  { %v5142_v22 = vld [vmem:[#allocation2 + $0x60] ss:$16 sps:$4 sm:$0xff]  }
 0x59f   :  { %v3046_v15 = vpop.f32.mrf.mxu1 }
 0x5a0   :  { %v3047_v57 = vadd.f32 %v3046_v15, %v5921_v60  ;;  %v3503_v60 = vpack.c.bf16 %v3279_v16, %v3276_v21  ;;  %v5141_v21 = vld [vmem:[#allocation2 + $0x64] ss:$16 sps:$4 sm:$0xff]  }
 0x5a1   :  { %v3048_v54 = vpop.f32.mrf.mxu1 }
 0x5a2   :  { %v3081_v1 = vpack.c.bf16 %v3047_v57, %v3044_v58 }
 0x5a4   :  { %v4705_v4 = vpop.f32.mrf.mxu0  ;;  %4752 = vmatmul.mubr.msk.bf16.gmra.mxu0 %vm419_vm0, %v3081_v1  ;;  %v5144_v1 = vld [vmem:[#allocation2 + $0x80] ss:$16 sps:$4 sm:$0xff]  }
 0x5a5   :  { %3852 = vmatprep.mubr.bf16.mxu0 %v5135_v33 }
 0x5a6   :  { %v3292_v9 = vpop.f32.mrf.mxu0 }
 0x5a8   :  { %v4706_v49 = vpop.f32.mrf.mxu0 }
 0x5a9   :  { %v3506_v2 = vpack.c.bf16 %v4706_v49, %v4705_v4  ;;  %v5145_v4 = vld [vmem:[#allocation2 + $0xa4] ss:$16 sps:$4 sm:$0xff]   ;;  %v5146_v49 = vld [vmem:[#allocation2 + $0xa0] ss:$16 sps:$4 sm:$0xff]  }
 0x5aa   :  { %v3295_v23 = vpop.f32.mrf.mxu0 }
 0x5ab   :  { %3532 = vmatpush1.bf16.msra.mxu1 %v3506_v2  ;;  %v3505_v29 = vpack.c.bf16 %v3295_v23, %v3292_v9  ;;  %v5147_v2 = vld [vmem:[#allocation2 + $0xc4] ss:$16 sps:$4 sm:$0xff]  }
 0x5ac   :  { %3533 = vmatprep.subr.bf16.mxu1 %v5287_v36 }
 0x5af   :  { %3534 = vmatpush1.bf16.msra.mxu1 %v3505_v29 }
 0x5b0   :  { %3535 = vmatprep.subr.bf16.mxu1 %v5287_v36 }
 0x5b3   :  { %3536 = vmatpush1.bf16.msra.mxu1 %v3504_v55 }
 0x5b4   :  { %3537 = vmatprep.subr.bf16.mxu1 %v5287_v36  ;;  %v4709_v25 = vpop.f32.mrf.mxu0 }
 0x5b6   :  { %v3308_v42 = vpop.f32.mrf.mxu0 }
 0x5b7   :  { %3538 = vmatpush1.bf16.msra.mxu1 %v3503_v60  ;;  %v5148_v60 = vld [vmem:[#allocation2 + $0xc0] ss:$16 sps:$4 sm:$0xff]  }
 0x5b8   :  { %3539 = vmatprep.subr.bf16.mxu1 %v5287_v36  ;;  %v4710_v52 = vpop.f32.mrf.mxu0 }
 0x5b9   :  { %v3508_v0 = vpack.c.bf16 %v4710_v52, %v4709_v25  ;;  %v5150_v52 = vld [vmem:[#allocation2 + $0xe0] ss:$16 sps:$4 sm:$0xff]  }
 0x5ba   :  { %v3311_v59 = vpop.f32.mrf.mxu0 }
 0x5bb   :  { %3540 = vmatpush1.bf16.msra.mxu1 %v3502_v13  ;;  %v3507_v35 = vpack.c.bf16 %v3311_v59, %v3308_v42  ;;  %v5149_v13 = vld [vmem:[#allocation2 + $0xe4] ss:$16 sps:$4 sm:$0xff]  }
 0x5bc   :  { %3541 = vmatprep.subr.bf16.mxu1 %v5287_v36 }
 0x5bf   :  { %3542 = vmatpush1.bf16.msra.mxu1 %v3501_v40 }
 0x5c0   :  { %3543 = vmatprep.subr.bf16.mxu1 %v5287_v36 }
 0x5c3   :  { %3544 = vmatpush1.bf16.msra.mxu1 %v3500_v27 }
 0x5c4   :  { %3545 = vmatprep.subr.bf16.mxu1 %v5287_v36  ;;  %v4713_v10 = vpop.f32.mrf.mxu0 }
 0x5c6   :  { %v3324_v47 = vpop.f32.mrf.mxu0 }
 0x5c7   :  { %3546 = vmatpush1.bf16.msra.mxu1 %v3499_v56  ;;  %v5151_v56 = vld [vmem:[#allocation2 + $0x104] ss:$16 sps:$4 sm:$0xff]  }
 0x5c8   :  { %3547 = vmatprep.subr.bf16.mxu1 %v5287_v36  ;;  %v4714_v6 = vpop.f32.mrf.mxu0 }
 0x5c9   :  { %v3510_v26 = vpack.c.bf16 %v4714_v6, %v4713_v10  ;;  %v5152_v6 = vld [vmem:[#allocation2 + $0x100] ss:$16 sps:$4 sm:$0xff]  }
 0x5ca   :  { %v3327_v20 = vpop.f32.mrf.mxu0 }
 0x5cb   :  { %v3509_v46 = vpack.c.bf16 %v3327_v20, %v3324_v47  ;;  %v5153_v20 = vld [vmem:[#allocation2 + $0x124] ss:$16 sps:$4 sm:$0xff]  }
 0x5d4   :  { %v4717_v17 = vpop.f32.mrf.mxu0 }
 0x5d6   :  { %v3340_v32 = vpop.f32.mrf.mxu0 }
 0x5d8   :  { %v4718_v37 = vpop.f32.mrf.mxu0 }
 0x5d9   :  { %v3512_v62 = vpack.c.bf16 %v4718_v37, %v4717_v17  ;;  %v5154_v37 = vld [vmem:[#allocation2 + $0x120] ss:$16 sps:$4 sm:$0xff]  }
 0x5da   :  { %v3343_v3 = vpop.f32.mrf.mxu0 }
 0x5db   :  { %v3511_v63 = vpack.c.bf16 %v3343_v3, %v3340_v32  ;;  %v5155_v3 = vld [vmem:[#allocation2 + $0x144] ss:$16 sps:$4 sm:$0xff]  }
 0x5e4   :  { %v4721_v7 = vpop.f32.mrf.mxu0 }
 0x5e6   :  { %v3356_v28 = vpop.f32.mrf.mxu0 }
 0x5e8   :  { %v4722_v41 = vpop.f32.mrf.mxu0 }
 0x5e9   :  { %v3514_v8 = vpack.c.bf16 %v4722_v41, %v4721_v7 }
 0x5ea   :  { %v3359_v5 = vpop.f32.mrf.mxu0 }
 0x5eb   :  { %3548 = vmatpush2.bf16.msra.mxu1 %v3514_v8  ;;  %v3513_v45 = vpack.c.bf16 %v3359_v5, %v3356_v28  ;;  %v5156_v8 = vld [vmem:[#allocation2 + $0x140] ss:$16 sps:$4 sm:$0xff]   ;;  %v5157_v5 = vld [vmem:[#allocation2 + $0x164] ss:$16 sps:$4 sm:$0xff]  }
 0x5ec   :  { %3549 = vmatprep.subr.bf16.mxu1 %v5287_v36 }
 0x5ef   :  { %3550 = vmatpush2.bf16.msra.mxu1 %v3513_v45 }
 0x5f0   :  { %3551 = vmatprep.subr.bf16.mxu1 %v5287_v36 }
 0x5f3   :  { %3552 = vmatpush2.bf16.msra.mxu1 %v3512_v62 }
 0x5f4   :  { %3553 = vmatprep.subr.bf16.mxu1 %v5287_v36  ;;  %v5998_v18 = vpop.f32.mrf.mxu0 }
 0x5f6   :  { %v6001_v50 = vpop.f32.mrf.mxu0 }
 0x5f7   :  { %3554 = vmatpush2.bf16.msra.mxu1 %v3511_v63  ;;  %v5158_v63 = vld [vmem:[#allocation2 + $0x160] ss:$16 sps:$4 sm:$0xff]  }
 0x5f8   :  { %3555 = vmatprep.subr.bf16.mxu1 %v5287_v36  ;;  %v6004_v11 = vpop.f32.mrf.mxu0 }
 0x5f9   :  { %v3516_v42 = vpack.c.bf16 %v6004_v11, %v5998_v18 }
 0x5fa   :  { %v6007_v61 = vpop.f32.mrf.mxu0 }
 0x5fb   :  { %3556 = vmatpush2.bf16.msra.mxu1 %v3510_v26  ;;  %v3515_v59 = vpack.c.bf16 %v6007_v61, %v6001_v50  ;;  %v5159_v26 = vld [vmem:[#allocation2 + $0x184] ss:$16 sps:$4 sm:$0xff]  }
 0x5fc   :  { %3557 = vmatprep.subr.bf16.mxu1 %v5287_v36  ;;  %v5161_v61 = vld [vmem:[#allocation2 + $0x1a4] ss:$16 sps:$4 sm:$0xff]  }
 0x5ff   :  { %3558 = vmatpush2.bf16.msra.mxu1 %v3509_v46 }
 0x600   :  { %3559 = vmatprep.subr.bf16.mxu1 %v5287_v36 }
 0x603   :  { %3560 = vmatpush2.bf16.msra.mxu1 %v3508_v0 }
 0x604   :  { %3561 = vmatprep.subr.bf16.mxu1 %v5287_v36  ;;  %v4729_v31 = vpop.f32.mrf.mxu0 }
 0x606   :  { %v3388_v14 = vpop.f32.mrf.mxu0 }
 0x607   :  { %3562 = vmatpush2.bf16.msra.mxu1 %v3507_v35  ;;  %v5160_v35 = vld [vmem:[#allocation2 + $0x180] ss:$16 sps:$4 sm:$0xff]  }
 0x608   :  { %v4730_v53 = vpop.f32.mrf.mxu0 }
 0x609   :  { %v3518_v29 = vpack.c.bf16 %v4730_v53, %v4729_v31 }
 0x60a   :  { %3564 = vmatmul.mubr.bf16.vlgmr.msra.gmra.mxu1 %v5136_v38  ;;  %v3391_v44 = vpop.f32.mrf.mxu0 }
 0x60b   :  { %3571 = vmatprep.mubr.bf16.mxu1 %v5137_v51  ;;  %v3517_v25 = vpack.c.bf16 %v3391_v44, %v3388_v14  ;;  %v5162_v51 = vld [vmem:[#allocation2 + $0x1a0] ss:$16 sps:$4 sm:$0xff]   ;;  %v5163_v14 = vld [vmem:[#allocation2 + $0x1c4] ss:$16 sps:$4 sm:$0xff]  }
 0x60c   :  { %v5165_v44 = vld [vmem:[#allocation2 + $0x1e4] ss:$16 sps:$4 sm:$0xff]  }
 0x612   :  { %3572 = vmatmul.mubr.bf16.gmra.mxu1 %v5138_v24 }
 0x613   :  { %3579 = vmatprep.mubr.bf16.mxu1 %v5139_v39  ;;  %v5164_v39 = vld [vmem:[#allocation2 + $0x1c0] ss:$16 sps:$4 sm:$0xff]  }
 0x614   :  { %v4733_v12 = vpop.f32.mrf.mxu0 }
 0x616   :  { %v3404_v43 = vpop.f32.mrf.mxu0 }
 0x618   :  { %v4734_v34 = vpop.f32.mrf.mxu0 }
 0x619   :  { %v3520_v9 = vpack.c.bf16 %v4734_v34, %v4733_v12 }
 0x61a   :  { %3580 = vmatmul.mubr.bf16.gmra.mxu1 %v5140_v19  ;;  %v3407_v30 = vpop.f32.mrf.mxu0  ;;  %v5166_v19 = vld [vmem:[#allocation2 + $0x1e0] ss:$16 sps:$4 sm:$0xff]  }
 0x61b   :  { %3587 = vmatprep.mubr.bf16.mxu1 %v5141_v21  ;;  %v3519_v23 = vpack.c.bf16 %v3407_v30, %v3404_v43  ;;  %v5167_v21 = vld [vmem:[#allocation2 + $0x204] ss:$16 sps:$4 sm:$0xff]   ;;  %v5168_v30 = vld [vmem:[#allocation2 + $0x8] ss:$16 sps:$4 sm:$0xff]  }
 0x622   :  { %3588 = vmatmul.mubr.bf16.gmra.mxu1 %v5142_v22  ;;  %v5169_v22 = vld [vmem:[#allocation2 + $0x200] ss:$16 sps:$4 sm:$0xff]  }
 0x623   :  { %3595 = vmatprep.mubr.bf16.mxu1 %v5143_v48  ;;  %v5170_v48 = vld [vmem:[#allocation2 + $0x2c] ss:$16 sps:$4 sm:$0xff]  }
 0x624   :  { %v4737_v15 = vpop.f32.mrf.mxu0 }
 0x626   :  { %v3420_v58 = vpop.f32.mrf.mxu0 }
 0x628   :  { %v4738_v57 = vpop.f32.mrf.mxu0 }
 0x629   :  { %v3522_v54 = vpack.c.bf16 %v4738_v57, %v4737_v15  ;;  %v5171_v15 = vld [vmem:[#allocation2 + $0x224] ss:$16 sps:$4 sm:$0xff]   ;;  %v5173_v57 = vld [vmem:[#allocation2 + $0x220] ss:$16 sps:$4 sm:$0xff]  }
 0x62a   :  { %v3423_v16 = vpop.f32.mrf.mxu0  ;;  %3596 = vmatmul.mubr.bf16.gmra.mxu1 %v5144_v1  ;;  %v5177_v1 = vld [vmem:[#allocation2 + $0x240] ss:$16 sps:$4 sm:$0xff]  }
 0x62b   :  { %3821 = vmatpush1.bf16.msra.mxu0 %v3522_v54  ;;  %3603 = vmatprep.mubr.bf16.mxu1 %v5145_v4  ;;  %v3521_v33 = vpack.c.bf16 %v3423_v16, %v3420_v58  ;;  %v5172_v58 = vld [vmem:[#allocation2 + $0x28] ss:$16 sps:$4 sm:$0xff]   ;;  %v5174_v54 = vld [vmem:[#allocation2 + $0x4c] ss:$16 sps:$4 sm:$0xff]   ;;  %v5175_v16 = vld [vmem:[#allocation2 + $0x244] ss:$16 sps:$4 sm:$0xff]  }
 0x62c   :  { %3822 = vmatprep.subr.bf16.mxu0 %v5287_v36  ;;  %v5178_v4 = vld [vmem:[#allocation2 + $0x6c] ss:$16 sps:$4 sm:$0xff]  }
 0x62f   :  { %3823 = vmatpush1.bf16.msra.mxu0 %v3521_v33  ;;  %v5179_v33 = vld [vmem:[#allocation2 + $0x264] ss:$16 sps:$4 sm:$0xff]  }
 0x630   :  { %3824 = vmatprep.subr.bf16.mxu0 %v5287_v36 }
 0x632   :  { %3604 = vmatmul.mubr.bf16.gmra.mxu1 %v5146_v49  ;;  %v5181_v49 = vld [vmem:[#allocation2 + $0x260] ss:$16 sps:$4 sm:$0xff]  }
 0x633   :  { %3825 = vmatpush1.bf16.msra.mxu0 %v3520_v9  ;;  %3611 = vmatprep.mubr.bf16.mxu1 %v5147_v2  ;;  %v5180_v9 = vld [vmem:[#allocation2 + $0x68] ss:$16 sps:$4 sm:$0xff]   ;;  %v5182_v2 = vld [vmem:[#allocation2 + $0x8c] ss:$16 sps:$4 sm:$0xff]  }
 0x634   :  { %3826 = vmatprep.subr.bf16.mxu0 %v5287_v36  ;;  %v6013_v55 = vpop.f32.mrf.mxu0 }
 0x636   :  { %v6016_v40 = vpop.f32.mrf.mxu0 }
 0x637   :  { %3827 = vmatpush1.bf16.msra.mxu0 %v3519_v23  ;;  %v5183_v23 = vld [vmem:[#allocation2 + $0x284] ss:$16 sps:$4 sm:$0xff]  }
 0x638   :  { %3828 = vmatprep.subr.bf16.mxu0 %v5287_v36  ;;  %v6021_v27 = vpop.f32.mrf.mxu0 }
 0x639   :  { %v3524_v43 = vpack.c.bf16 %v6021_v27, %v6013_v55  ;;  %v5185_v55 = vld [vmem:[#allocation2 + $0x280] ss:$16 sps:$4 sm:$0xff]   ;;  %v5191_v27 = vld [vmem:[#allocation2 + $0x2c4] ss:$16 sps:$4 sm:$0xff]  }
 0x63a   :  { %3612 = vmatmul.mubr.bf16.gmra.mxu1 %v5148_v60  ;;  %v6026_v10 = vpop.f32.mrf.mxu0  ;;  %v5186_v60 = vld [vmem:[#allocation2 + $0xac] ss:$16 sps:$4 sm:$0xff]  }
 0x63b   :  { %3829 = vmatpush1.bf16.msra.mxu0 %v3518_v29  ;;  %3619 = vmatprep.mubr.bf16.mxu1 %v5149_v13  ;;  %v3523_v34 = vpack.c.bf16 %v6026_v10, %v6016_v40  ;;  %v5184_v29 = vld [vmem:[#allocation2 + $0x88] ss:$16 sps:$4 sm:$0xff]   ;;  %v5187_v13 = vld [vmem:[#allocation2 + $0x2a4] ss:$16 sps:$4 sm:$0xff]   ;;  %v5189_v40 = vld [vmem:[#allocation2 + $0x2a0] ss:$16 sps:$4 sm:$0xff]  }
 0x63c   :  { %3830 = vmatprep.subr.bf16.mxu0 %v5287_v36  ;;  %v5195_v10 = vld [vmem:[#allocation2 + $0x2e4] ss:$16 sps:$4 sm:$0xff]  }
 0x63f   :  { %3831 = vmatpush1.bf16.msra.mxu0 %v3517_v25  ;;  %v5188_v25 = vld [vmem:[#allocation2 + $0xa8] ss:$16 sps:$4 sm:$0xff]  }
 0x640   :  { %3832 = vmatprep.subr.bf16.mxu0 %v5287_v36 }
 0x642   :  { %3620 = vmatmul.mubr.bf16.gmra.mxu1 %v5150_v52  ;;  %v5192_v52 = vld [vmem:[#allocation2 + $0xc8] ss:$16 sps:$4 sm:$0xff]  }
 0x643   :  { %3833 = vmatpush1.bf16.msra.mxu0 %v3516_v42  ;;  %3627 = vmatprep.mubr.bf16.mxu1 %v5151_v56  ;;  %v5190_v42 = vld [vmem:[#allocation2 + $0xcc] ss:$16 sps:$4 sm:$0xff]   ;;  %v5193_v56 = vld [vmem:[#allocation2 + $0x2c0] ss:$16 sps:$4 sm:$0xff]  }
 0x644   :  { %3834 = vmatprep.subr.bf16.mxu0 %v5287_v36  ;;  %v4745_v47 = vpop.f32.mrf.mxu0 }
 0x646   :  { %v3452_v17 = vpop.f32.mrf.mxu0 }
 0x647   :  { %3835 = vmatpush1.bf16.msra.mxu0 %v3515_v59  ;;  %v5194_v59 = vld [vmem:[#allocation2 + $0xec] ss:$16 sps:$4 sm:$0xff]  }
 0x648   :  { %3836 = vmatprep.subr.bf16.mxu0 %v5287_v36  ;;  %v4746_v32 = vpop.f32.mrf.mxu0 }
 0x649   :  { %v3526_v24 = vpack.c.bf16 %v4746_v32, %v4745_v47  ;;  %v5196_v47 = vld [vmem:[#allocation2 + $0xe8] ss:$16 sps:$4 sm:$0xff]  }
 0x64a   :  { %3628 = vmatmul.mubr.bf16.gmra.mxu1 %v5152_v6  ;;  %v3455_v7 = vpop.f32.mrf.mxu0  ;;  %v5197_v6 = vld [vmem:[#allocation2 + $0x2e0] ss:$16 sps:$4 sm:$0xff]   ;;  %v5200_v32 = vld [vmem:[#allocation2 + $0x108] ss:$16 sps:$4 sm:$0xff]  }
 0x64b   :  { %3635 = vmatprep.mubr.bf16.mxu1 %v5153_v20  ;;  %v3525_v12 = vpack.c.bf16 %v3455_v7, %v3452_v17  ;;  %v5198_v20 = vld [vmem:[#allocation2 + $0x10c] ss:$16 sps:$4 sm:$0xff]   ;;  %v5199_v17 = vld [vmem:[#allocation2 + $0x304] ss:$16 sps:$4 sm:$0xff]  }
 0x64c   :  { %v5202_v7 = vld [vmem:[#allocation2 + $0x12c] ss:$16 sps:$4 sm:$0xff]  }
 0x652   :  { %3636 = vmatmul.mubr.bf16.gmra.mxu1 %v5154_v37 }
 0x653   :  { %3643 = vmatprep.mubr.bf16.mxu1 %v5155_v3  ;;  %v5201_v3 = vld [vmem:[#allocation2 + $0x300] ss:$16 sps:$4 sm:$0xff]  }
 0x654   :  { %v4749_v28 = vpop.f32.mrf.mxu0 }
 0x656   :  { %v3468_v41 = vpop.f32.mrf.mxu0 }
 0x658   :  { %v4750_v45 = vpop.f32.mrf.mxu0 }
 0x659   :  { %v3528_v38 = vpack.c.bf16 %v4750_v45, %v4749_v28  ;;  %v5203_v28 = vld [vmem:[#allocation2 + $0x324] ss:$16 sps:$4 sm:$0xff]   ;;  %v5204_v45 = vld [vmem:[#allocation2 + $0x128] ss:$16 sps:$4 sm:$0xff]  }
 0x65a   :  { %3644 = vmatmul.mubr.bf16.gmra.mxu1 %v5156_v8  ;;  %v3471_v62 = vpop.f32.mrf.mxu0 }
 0x65b   :  { %3651 = vmatprep.mubr.bf16.mxu1 %v5157_v5  ;;  %v3527_v53 = vpack.c.bf16 %v3471_v62, %v3468_v41 }
 0x662   :  { %3652 = vmatmul.mubr.bf16.gmra.mxu1 %v5158_v63  ;;  %v5205_v63 = vld [vmem:[#allocation2 + $0x320] ss:$16 sps:$4 sm:$0xff]  }
 0x663   :  { %3659 = vmatprep.mubr.bf16.mxu1 %v5159_v26  ;;  %v5206_v26 = vld [vmem:[#allocation2 + $0x14c] ss:$16 sps:$4 sm:$0xff]  }
 0x664   :  { %v4753_v18 = vpop.f32.mrf.mxu0 }
 0x666   :  { %v3484_v46 = vpop.f32.mrf.mxu0 }
 0x668   :  { %v4754_v50 = vpop.f32.mrf.mxu0 }
 0x669   :  { %v3530_v0 = vpack.c.bf16 %v4754_v50, %v4753_v18  ;;  %v5207_v18 = vld [vmem:[#allocation2 + $0x344] ss:$16 sps:$4 sm:$0xff]  }
 0x66a   :  { %v3487_v11 = vpop.f32.mrf.mxu0  ;;  %3660 = vmatmul.mubr.bf16.gmra.mxu1 %v5160_v35 }
 0x66b   :  { %3837 = vmatpush2.bf16.msra.mxu0 %v3530_v0  ;;  %3667 = vmatprep.mubr.bf16.mxu1 %v5161_v61  ;;  %v3529_v31 = vpack.c.bf16 %v3487_v11, %v3484_v46  ;;  %v5208_v11 = vld [vmem:[#allocation2 + $0x148] ss:$16 sps:$4 sm:$0xff]   ;;  %v5209_v61 = vld [vmem:[#allocation2 + $0x340] ss:$16 sps:$4 sm:$0xff]  }
 0x66c   :  { %3838 = vmatprep.subr.bf16.mxu0 %v5287_v36 }
 0x66f   :  { %3839 = vmatpush2.bf16.msra.mxu0 %v3529_v31  ;;  %v5210_v31 = vld [vmem:[#allocation2 + $0x16c] ss:$16 sps:$4 sm:$0xff]  }
 0x670   :  { %3840 = vmatprep.subr.bf16.mxu0 %v5287_v36 }
 0x672   :  { %3668 = vmatmul.mubr.bf16.gmra.mxu1 %v5162_v51 }
 0x673   :  { %3841 = vmatpush2.bf16.msra.mxu0 %v3528_v38  ;;  %3675 = vmatprep.mubr.bf16.mxu1 %v5163_v14  ;;  %v5211_v38 = vld [vmem:[#allocation2 + $0x364] ss:$16 sps:$4 sm:$0xff]  }
 0x674   :  { %3842 = vmatprep.subr.bf16.mxu0 %v5287_v36 }
 0x677   :  { %3843 = vmatpush2.bf16.msra.mxu0 %v3527_v53 }
 0x678   :  { %3844 = vmatprep.subr.bf16.mxu0 %v5287_v36 }
 0x67a   :  { %3676 = vmatmul.mubr.bf16.gmra.mxu1 %v5164_v39 }
 0x67b   :  { %3845 = vmatpush2.bf16.msra.mxu0 %v3526_v24  ;;  %3683 = vmatprep.mubr.bf16.mxu1 %v5165_v44  ;;  %v5212_v24 = vld [vmem:[#allocation2 + $0x168] ss:$16 sps:$4 sm:$0xff]   ;;  %v5213_v44 = vld [vmem:[#allocation2 + $0x360] ss:$16 sps:$4 sm:$0xff]  }
 0x67c   :  { %3846 = vmatprep.subr.bf16.mxu0 %v5287_v36 }
 0x67f   :  { %3847 = vmatpush2.bf16.msra.mxu0 %v3525_v12  ;;  %v5214_v12 = vld [vmem:[#allocation2 + $0x18c] ss:$16 sps:$4 sm:$0xff]  }
 0x680   :  { %3848 = vmatprep.subr.bf16.mxu0 %v5287_v36 }
 0x682   :  { %3684 = vmatmul.mubr.bf16.gmra.mxu1 %v5166_v19 }
 0x683   :  { %3849 = vmatpush2.bf16.msra.mxu0 %v3524_v43  ;;  %3691 = vmatprep.mubr.bf16.mxu1 %v5167_v21  ;;  %v5215_v43 = vld [vmem:[#allocation2 + $0x384] ss:$16 sps:$4 sm:$0xff]  }
 0x684   :  { %3850 = vmatprep.subr.bf16.mxu0 %v5287_v36  ;;  %v5176_v36 = vld [vmem:[#allocation2 + $0x48] ss:$16 sps:$4 sm:$0xff]  }
 0x687   :  { %3851 = vmatpush2.bf16.msra.mxu0 %v3523_v34 }
 0x68a   :  { %3853 = vmatmul.mubr.bf16.vlgmr.msra.gmra.mxu0 %v5168_v30  ;;  %3692 = vmatmul.mubr.bf16.gmra.mxu1 %v5169_v22  ;;  %v5216_v30 = vld [vmem:[#allocation2 + $0x188] ss:$16 sps:$4 sm:$0xff]  }
 0x68b   :  { %3860 = vmatprep.mubr.bf16.mxu0 %v5170_v48  ;;  %3699 = vmatprep.mubr.bf16.mxu1 %v5171_v15  ;;  %v5217_v48 = vld [vmem:[#allocation2 + $0x380] ss:$16 sps:$4 sm:$0xff]   ;;  %v5218_v15 = vld [vmem:[#allocation2 + $0x1ac] ss:$16 sps:$4 sm:$0xff]  }
 0x692   :  { %3861 = vmatmul.mubr.bf16.gmra.mxu0 %v5172_v58  ;;  %3700 = vmatmul.mubr.bf16.gmra.mxu1 %v5173_v57  ;;  %v5219_v58 = vld [vmem:[#allocation2 + $0x3a4] ss:$16 sps:$4 sm:$0xff]  }
 0x693   :  { %3868 = vmatprep.mubr.bf16.mxu0 %v5174_v54  ;;  %3707 = vmatprep.mubr.bf16.mxu1 %v5175_v16 }
 0x69a   :  { %3869 = vmatmul.mubr.bf16.gmra.mxu0 %v5176_v36  ;;  %3708 = vmatmul.mubr.bf16.gmra.mxu1 %v5177_v1  ;;  %v5220_v36 = vld [vmem:[#allocation2 + $0x1a8] ss:$16 sps:$4 sm:$0xff]  }
 0x69b   :  { %3876 = vmatprep.mubr.bf16.mxu0 %v5178_v4  ;;  %3715 = vmatprep.mubr.bf16.mxu1 %v5179_v33  ;;  %v5221_v4 = vld [vmem:[#allocation2 + $0x3a0] ss:$16 sps:$4 sm:$0xff]   ;;  %v5222_v33 = vld [vmem:[#allocation2 + $0x1cc] ss:$16 sps:$4 sm:$0xff]  }
 0x6a2   :  { %3877 = vmatmul.mubr.bf16.gmra.mxu0 %v5180_v9  ;;  %3716 = vmatmul.mubr.bf16.gmra.mxu1 %v5181_v49  ;;  %v5223_v9 = vld [vmem:[#allocation2 + $0x3c4] ss:$16 sps:$4 sm:$0xff]  }
 0x6a3   :  { %3884 = vmatprep.mubr.bf16.mxu0 %v5182_v2  ;;  %3723 = vmatprep.mubr.bf16.mxu1 %v5183_v23 }
 0x6aa   :  { %3885 = vmatmul.mubr.bf16.gmra.mxu0 %v5184_v29  ;;  %3724 = vmatmul.mubr.bf16.gmra.mxu1 %v5185_v55  ;;  %v5224_v29 = vld [vmem:[#allocation2 + $0x1c8] ss:$16 sps:$4 sm:$0xff]  }
 0x6ab   :  { %3892 = vmatprep.mubr.bf16.mxu0 %v5186_v60  ;;  %3731 = vmatprep.mubr.bf16.mxu1 %v5187_v13  ;;  %v5225_v60 = vld [vmem:[#allocation2 + $0x3c0] ss:$16 sps:$4 sm:$0xff]   ;;  %v5226_v13 = vld [vmem:[#allocation2 + $0x1ec] ss:$16 sps:$4 sm:$0xff]  }
 0x6b2   :  { %3893 = vmatmul.mubr.bf16.gmra.mxu0 %v5188_v25  ;;  %3732 = vmatmul.mubr.bf16.gmra.mxu1 %v5189_v40  ;;  %v5227_v25 = vld [vmem:[#allocation2 + $0x3e4] ss:$16 sps:$4 sm:$0xff]  }
 0x6b3   :  { %3900 = vmatprep.mubr.bf16.mxu0 %v5190_v42  ;;  %3739 = vmatprep.mubr.bf16.mxu1 %v5191_v27 }
 0x6ba   :  { %3901 = vmatmul.mubr.bf16.gmra.mxu0 %v5192_v52  ;;  %3740 = vmatmul.mubr.bf16.gmra.mxu1 %v5193_v56  ;;  %v5228_v52 = vld [vmem:[#allocation2 + $0x1e8] ss:$16 sps:$4 sm:$0xff]  }
 0x6bb   :  { %3908 = vmatprep.mubr.bf16.mxu0 %v5194_v59  ;;  %3747 = vmatprep.mubr.bf16.mxu1 %v5195_v10  ;;  %v5229_v59 = vld [vmem:[#allocation2 + $0x3e0] ss:$16 sps:$4 sm:$0xff]   ;;  %v5230_v10 = vld [vmem:[#allocation2 + $0x20c] ss:$16 sps:$4 sm:$0xff]  }
 0x6c2   :  { %3909 = vmatmul.mubr.bf16.gmra.mxu0 %v5196_v47  ;;  %3748 = vmatmul.mubr.bf16.gmra.mxu1 %v5197_v6 }
 0x6c3   :  { %3916 = vmatprep.mubr.bf16.mxu0 %v5198_v20  ;;  %3755 = vmatprep.mubr.bf16.mxu1 %v5199_v17  ;;  %v5231_v17 = vld [vmem:[#allocation2 + $0x208] ss:$16 sps:$4 sm:$0xff]  }
 0x6ca   :  { %3917 = vmatmul.mubr.bf16.gmra.mxu0 %v5200_v32  ;;  %v6040_v37 = vpop.f32.mrf.mxu1  ;;  %3756 = vmatmul.mubr.bf16.gmra.mxu1 %v5201_v3  ;;  %v5232_v3 = vld [vmem:[#allocation2 + $0x22c] ss:$16 sps:$4 sm:$0xff]  }
 0x6cb   :  { %3924 = vmatprep.mubr.bf16.mxu0 %v5202_v7  ;;  %3763 = vmatprep.mubr.bf16.mxu1 %v5203_v28 }
 0x6cc   :  { %v3567_v41 = vpop.f32.mrf.mxu1 }
 0x6ce   :  { %v6042_v8 = vpop.f32.mrf.mxu1 }
 0x6d0   :  { %v3570_v5 = vpop.f32.mrf.mxu1 }
 0x6d1   :  { %v5233_v5 = vld [vmem:[#allocation2 + $0x228] ss:$16 sps:$4 sm:$0xff]  }
 0x6d2   :  { %3925 = vmatmul.mubr.bf16.gmra.mxu0 %v5204_v45  ;;  %v6044_v62 = vpop.f32.mrf.mxu1  ;;  %3764 = vmatmul.mubr.bf16.gmra.mxu1 %v5205_v63  ;;  %v5234_v63 = vld [vmem:[#allocation2 + $0x24c] ss:$16 sps:$4 sm:$0xff]  }
 0x6d3   :  { %3932 = vmatprep.mubr.bf16.mxu0 %v5206_v26  ;;  %3771 = vmatprep.mubr.bf16.mxu1 %v5207_v18 }
 0x6d4   :  { %v3575_v46 = vpop.f32.mrf.mxu1 }
 0x6d6   :  { %v6046_v50 = vpop.f32.mrf.mxu1 }
 0x6d8   :  { %v3578_v0 = vpop.f32.mrf.mxu1 }
 0x6d9   :  { %v5235_v0 = vld [vmem:[#allocation2 + $0x248] ss:$16 sps:$4 sm:$0xff]  }
 0x6da   :  { %3933 = vmatmul.mubr.bf16.gmra.mxu0 %v5208_v11  ;;  %v6048_v35 = vpop.f32.mrf.mxu1  ;;  %3772 = vmatmul.mubr.bf16.gmra.mxu1 %v5209_v61  ;;  %v5236_v61 = vld [vmem:[#allocation2 + $0x26c] ss:$16 sps:$4 sm:$0xff]  }
 0x6db   :  { %3940 = vmatprep.mubr.bf16.mxu0 %v5210_v31  ;;  %3779 = vmatprep.mubr.bf16.mxu1 %v5211_v38 }
 0x6dc   :  { %v3583_v51 = vpop.f32.mrf.mxu1 }
 0x6de   :  { %v6050_v14 = vpop.f32.mrf.mxu1 }
 0x6e0   :  { %v3586_v53 = vpop.f32.mrf.mxu1 }
 0x6e1   :  { %v5237_v53 = vld [vmem:[#allocation2 + $0x268] ss:$16 sps:$4 sm:$0xff]  }
 0x6e2   :  { %3941 = vmatmul.mubr.bf16.gmra.mxu0 %v5212_v24  ;;  %v6052_v39 = vpop.f32.mrf.mxu1  ;;  %3780 = vmatmul.mubr.bf16.gmra.mxu1 %v5213_v44  ;;  %v5238_v44 = vld [vmem:[#allocation2 + $0x28c] ss:$16 sps:$4 sm:$0xff]  }
 0x6e3   :  { %3948 = vmatprep.mubr.bf16.mxu0 %v5214_v12  ;;  %3787 = vmatprep.mubr.bf16.mxu1 %v5215_v43 }
 0x6e4   :  { %v3591_v19 = vpop.f32.mrf.mxu1 }
 0x6e6   :  { %v6054_v21 = vpop.f32.mrf.mxu1 }
 0x6e8   :  { %v3594_v34 = vpop.f32.mrf.mxu1 }
 0x6e9   :  { %v5239_v34 = vld [vmem:[#allocation2 + $0x288] ss:$16 sps:$4 sm:$0xff]  }
 0x6ea   :  { %3949 = vmatmul.mubr.bf16.gmra.mxu0 %v5216_v30  ;;  %v6056_v22 = vpop.f32.mrf.mxu1  ;;  %3788 = vmatmul.mubr.bf16.gmra.mxu1 %v5217_v48  ;;  %v5240_v48 = vld [vmem:[#allocation2 + $0x2ac] ss:$16 sps:$4 sm:$0xff]  }
 0x6eb   :  { %3956 = vmatprep.mubr.bf16.mxu0 %v5218_v15  ;;  %3795 = vmatprep.mubr.bf16.mxu1 %v5219_v58 }
 0x6ec   :  { %v3599_v57 = vpop.f32.mrf.mxu1 }
 0x6ee   :  { %v6058_v54 = vpop.f32.mrf.mxu1 }
 0x6f0   :  { %v3602_v16 = vpop.f32.mrf.mxu1 }
 0x6f1   :  { %v5241_v16 = vld [vmem:[#allocation2 + $0x2a8] ss:$16 sps:$4 sm:$0xff]  }
 0x6f2   :  { %3957 = vmatmul.mubr.bf16.gmra.mxu0 %v5220_v36  ;;  %v6060_v1 = vpop.f32.mrf.mxu1  ;;  %3796 = vmatmul.mubr.bf16.gmra.mxu1 %v5221_v4  ;;  %v5242_v4 = vld [vmem:[#allocation2 + $0x2cc] ss:$16 sps:$4 sm:$0xff]  }
 0x6f3   :  { %3964 = vmatprep.mubr.bf16.mxu0 %v5222_v33  ;;  %3803 = vmatprep.mubr.bf16.mxu1 %v5223_v9 }
 0x6f4   :  { %v3607_v49 = vpop.f32.mrf.mxu1 }
 0x6f6   :  { %v6062_v2 = vpop.f32.mrf.mxu1 }
 0x6f8   :  { %v3610_v23 = vpop.f32.mrf.mxu1 }
 0x6f9   :  { %v5243_v23 = vld [vmem:[#allocation2 + $0x2c8] ss:$16 sps:$4 sm:$0xff]  }
 0x6fa   :  { %3965 = vmatmul.mubr.bf16.gmra.mxu0 %v5224_v29  ;;  %v6064_v55 = vpop.f32.mrf.mxu1  ;;  %3804 = vmatmul.mubr.bf16.gmra.mxu1 %v5225_v60  ;;  %v5244_v60 = vld [vmem:[#allocation2 + $0x2ec] ss:$16 sps:$4 sm:$0xff]  }
 0x6fb   :  { %3972 = vmatprep.mubr.bf16.mxu0 %v5226_v13  ;;  %3811 = vmatprep.mubr.bf16.mxu1 %v5227_v25 }
 0x6fc   :  { %v3615_v40 = vpop.f32.mrf.mxu1 }
 0x6fe   :  { %v6066_v42 = vpop.f32.mrf.mxu1 }
 0x700   :  { %v3618_v27 = vpop.f32.mrf.mxu1 }
 0x701   :  { %v5245_v27 = vld [vmem:[#allocation2 + $0x2e8] ss:$16 sps:$4 sm:$0xff]  }
 0x702   :  { %3973 = vmatmul.mubr.bf16.gmra.mxu0 %v5228_v52  ;;  %v6068_v56 = vpop.f32.mrf.mxu1  ;;  %3812 = vmatmul.mubr.bf16.gmra.mxu1 %v5229_v59  ;;  %v5246_v59 = vld [vmem:[#allocation2 + $0x30c] ss:$16 sps:$4 sm:$0xff]  }
 0x703   :  { %3980 = vmatprep.mubr.bf16.mxu0 %v5230_v10 }
 0x704   :  { %v3623_v47 = vpop.f32.mrf.mxu1 }
 0x706   :  { %v6070_v6 = vpop.f32.mrf.mxu1 }
 0x708   :  { %v3626_v20 = vpop.f32.mrf.mxu1 }
 0x70a   :  { %3981 = vmatmul.mubr.bf16.gmra.mxu0 %v5231_v17  ;;  %v6072_v32 = vpop.f32.mrf.mxu1 }
 0x70b   :  { %3988 = vmatprep.mubr.bf16.mxu0 %v5232_v3  ;;  %v5247_v3 = vld [vmem:[#allocation2 + $0x308] ss:$16 sps:$4 sm:$0xff]  }
 0x70c   :  { %v3631_v7 = vpop.f32.mrf.mxu1 }
 0x70e   :  { %v6074_v28 = vpop.f32.mrf.mxu1 }
 0x710   :  { %v3634_v41 = vpop.f32.mrf.mxu1 }
 0x712   :  { %3989 = vmatmul.mubr.bf16.gmra.mxu0 %v5233_v5  ;;  %v6076_v45 = vpop.f32.mrf.mxu1  ;;  %v5248_v5 = vld [vmem:[#allocation2 + $0x32c] ss:$16 sps:$4 sm:$0xff]  }
 0x713   :  { %3996 = vmatprep.mubr.bf16.mxu0 %v5234_v63 }
 0x714   :  { %v3639_v26 = vpop.f32.mrf.mxu1 }
 0x716   :  { %v6078_v18 = vpop.f32.mrf.mxu1 }
 0x718   :  { %v3642_v46 = vpop.f32.mrf.mxu1 }
 0x71a   :  { %3997 = vmatmul.mubr.bf16.gmra.mxu0 %v5235_v0  ;;  %v6080_v11 = vpop.f32.mrf.mxu1 }
 0x71b   :  { %4004 = vmatprep.mubr.bf16.mxu0 %v5236_v61 }
 0x71c   :  { %v3647_v31 = vpop.f32.mrf.mxu1 }
 0x71e   :  { %v6082_v38 = vpop.f32.mrf.mxu1 }
 0x720   :  { %v3650_v51 = vpop.f32.mrf.mxu1 }
 0x722   :  { %4005 = vmatmul.mubr.bf16.gmra.mxu0 %v5237_v53  ;;  %v6084_v24 = vpop.f32.mrf.mxu1  ;;  %v5249_v53 = vld [vmem:[#allocation2 + $0x328] ss:$16 sps:$4 sm:$0xff]  }
 0x723   :  { %4012 = vmatprep.mubr.bf16.mxu0 %v5238_v44 }
 0x724   :  { %v3655_v12 = vpop.f32.mrf.mxu1 }
 0x726   :  { %v6086_v43 = vpop.f32.mrf.mxu1 }
 0x728   :  { %v3658_v19 = vpop.f32.mrf.mxu1 }
 0x729   :  { %v5250_v19 = vld [vmem:[#allocation2 + $0x34c] ss:$16 sps:$4 sm:$0xff]  }
 0x72a   :  { %4013 = vmatmul.mubr.bf16.gmra.mxu0 %v5239_v34  ;;  %v6088_v30 = vpop.f32.mrf.mxu1 }
 0x72b   :  { %4020 = vmatprep.mubr.bf16.mxu0 %v5240_v48 }
 0x72c   :  { %v3663_v15 = vpop.f32.mrf.mxu1 }
 0x72e   :  { %v6090_v58 = vpop.f32.mrf.mxu1 }
 0x730   :  { %v3666_v57 = vpop.f32.mrf.mxu1 }
 0x732   :  { %4021 = vmatmul.mubr.bf16.gmra.mxu0 %v5241_v16  ;;  %v6092_v36 = vpop.f32.mrf.mxu1 }
 0x733   :  { %4028 = vmatprep.mubr.bf16.mxu0 %v5242_v4 }
 0x734   :  { %v3671_v33 = vpop.f32.mrf.mxu1 }
 0x735   :  { %v5251_v33 = vld [vmem:[#allocation2 + $0x348] ss:$16 sps:$4 sm:$0xff]  }
 0x736   :  { %v6094_v9 = vpop.f32.mrf.mxu1 }
 0x738   :  { %v3674_v49 = vpop.f32.mrf.mxu1 }
 0x73a   :  { %4029 = vmatmul.mubr.bf16.gmra.mxu0 %v5243_v23  ;;  %v6096_v29 = vpop.f32.mrf.mxu1 }
 0x73b   :  { %4036 = vmatprep.mubr.bf16.mxu0 %v5244_v60  ;;  %v5252_v60 = vld [vmem:[#allocation2 + $0x36c] ss:$16 sps:$4 sm:$0xff]  }
 0x73c   :  { %v3679_v13 = vpop.f32.mrf.mxu1 }
 0x73e   :  { %v6098_v25 = vpop.f32.mrf.mxu1 }
 0x740   :  { %v3682_v40 = vpop.f32.mrf.mxu1 }
 0x742   :  { %4037 = vmatmul.mubr.bf16.gmra.mxu0 %v5245_v27  ;;  %v6100_v52 = vpop.f32.mrf.mxu1 }
 0x743   :  { %4044 = vmatprep.mubr.bf16.mxu0 %v5246_v59 }
 0x744   :  { %v3687_v10 = vpop.f32.mrf.mxu1 }
 0x746   :  { %v6102_v47 = vpop.f32.mrf.mxu1 }
 0x748   :  { %v3690_v20 = vpop.f32.mrf.mxu1 }
 0x74a   :  { %v3854_v17 = vpop.f32.mrf.mxu0  ;;  %4045 = vmatmul.mubr.bf16.gmra.mxu0 %v5247_v3  ;;  %v6104_v7 = vpop.f32.mrf.mxu1 }
 0x74b   :  { %v3855_v41 = vadd.f32 %v3854_v17, %v6040_v37  ;;  %4052 = vmatprep.mubr.bf16.mxu0 %v5248_v5  ;;  %v5253_v17 = vld [vmem:[#allocation2 + $0x368] ss:$16 sps:$4 sm:$0xff]   ;;  %v5254_v5 = vld [vmem:[#allocation2 + $0x38c] ss:$16 sps:$4 sm:$0xff]  }
 0x74c   :  { %v3856_v63 = vpop.f32.mrf.mxu0  ;;  %v3695_v26 = vpop.f32.mrf.mxu1 }
 0x74d   :  { %4110 = vst.msk [vmem:[%s6493_s5] sm:$0xff] %vm4109_vm1, %v3855_v41 }
 0x74e   :  { %v3857_v46 = vpop.f32.mrf.mxu0  ;;  %v6111_v0 = vpop.f32.mrf.mxu1 }
 0x74f   :  { %v3858_v61 = vadd.f32 %v3857_v46, %v6042_v8 }
 0x750   :  { %v3859_v31 = vpop.f32.mrf.mxu0  ;;  %v3698_v51 = vpop.f32.mrf.mxu1 }
 0x751   :  { %4111 = vst.msk [vmem:[%s6493_s5 + $0x8] sm:$0xff] %vm4109_vm1, %v3858_v61 }
 0x752   :  { %v3862_v37 = vpop.f32.mrf.mxu0  ;;  %4053 = vmatmul.mubr.bf16.gmra.mxu0 %v5249_v53  ;;  %v6118_v44 = vpop.f32.mrf.mxu1 }
 0x753   :  { %v3863_v12 = vadd.f32 %v3862_v37, %v6044_v62  ;;  %4060 = vmatprep.mubr.bf16.mxu0 %v5250_v19  ;;  %v5255_v37 = vld [vmem:[#allocation2 + $0x388] ss:$16 sps:$4 sm:$0xff]   ;;  %v5256_v19 = vld [vmem:[#allocation2 + $0x3ac] ss:$16 sps:$4 sm:$0xff]  }
 0x754   :  { %v3864_v34 = vpop.f32.mrf.mxu0  ;;  %v3703_v48 = vpop.f32.mrf.mxu1 }
 0x755   :  { %4112 = vst.msk [vmem:[%s6493_s5 + $0x10] sm:$0xff] %vm4109_vm1, %v3863_v12 }
 0x756   :  { %v3865_v8 = vpop.f32.mrf.mxu0  ;;  %v6125_v15 = vpop.f32.mrf.mxu1 }
 0x757   :  { %v3866_v57 = vadd.f32 %v3865_v8, %v6046_v50 }
 0x758   :  { %v3867_v16 = vpop.f32.mrf.mxu0  ;;  %v3706_v4 = vpop.f32.mrf.mxu1 }
 0x759   :  { %4113 = vst.msk [vmem:[%s6493_s5 + $0x18] sm:$0xff] %vm4109_vm1, %v3866_v57 }
 0x75a   :  { %v3870_v62 = vpop.f32.mrf.mxu0  ;;  %4061 = vmatmul.mubr.bf16.gmra.mxu0 %v5251_v33  ;;  %v6132_v49 = vpop.f32.mrf.mxu1 }
 0x75b   :  { %v3871_v23 = vadd.f32 %v3870_v62, %v6048_v35  ;;  %4068 = vmatprep.mubr.bf16.mxu0 %v5252_v60  ;;  %v5257_v62 = vld [vmem:[#allocation2 + $0x3a8] ss:$16 sps:$4 sm:$0xff]   ;;  %v5258_v60 = vld [vmem:[#allocation2 + $0x3cc] ss:$16 sps:$4 sm:$0xff]  }
 0x75c   :  { %v3872_v13 = vpop.f32.mrf.mxu0  ;;  %v3711_v40 = vpop.f32.mrf.mxu1 }
 0x75d   :  { %4114 = vst.msk [vmem:[%s6493_s5 + $0x20] sm:$0xff] %vm4109_vm1, %v3871_v23 }
 0x75e   :  { %v3873_v50 = vpop.f32.mrf.mxu0  ;;  %v6139_v27 = vpop.f32.mrf.mxu1 }
 0x75f   :  { %v3874_v59 = vadd.f32 %v3873_v50, %v6050_v14 }
 0x760   :  { %v3875_v10 = vpop.f32.mrf.mxu0  ;;  %v3714_v20 = vpop.f32.mrf.mxu1 }
 0x761   :  { %4115 = vst.msk [vmem:[%s6493_s5 + $0x28] sm:$0xff] %vm4109_vm1, %v3874_v59 }
 0x762   :  { %v3878_v35 = vpop.f32.mrf.mxu0  ;;  %4069 = vmatmul.mubr.bf16.gmra.mxu0 %v5253_v17  ;;  %v6146_v3 = vpop.f32.mrf.mxu1 }
 0x763   :  { %v3879_v41 = vadd.f32 %v3878_v35, %v6052_v39  ;;  %4076 = vmatprep.mubr.bf16.mxu0 %v5254_v5  ;;  %v5259_v35 = vld [vmem:[#allocation2 + $0x3c8] ss:$16 sps:$4 sm:$0xff]   ;;  %v5260_v5 = vld [vmem:[#allocation2 + $0x3ec] ss:$16 sps:$4 sm:$0xff]  }
 0x764   :  { %v3880_v63 = vpop.f32.mrf.mxu0  ;;  %v3719_v26 = vpop.f32.mrf.mxu1 }
 0x765   :  { %4116 = vst.msk [vmem:[%s6493_s5 + $0x30] sm:$0xff] %vm4109_vm1, %v3879_v41 }
 0x766   :  { %v3881_v14 = vpop.f32.mrf.mxu0  ;;  %v6153_v46 = vpop.f32.mrf.mxu1 }
 0x767   :  { %v3882_v61 = vadd.f32 %v3881_v14, %v6054_v21 }
 0x768   :  { %v3883_v31 = vpop.f32.mrf.mxu0  ;;  %v3722_v51 = vpop.f32.mrf.mxu1 }
 0x769   :  { %4117 = vst.msk [vmem:[%s6493_s5 + $0x38] sm:$0xff] %vm4109_vm1, %v3882_v61 }
 0x76a   :  { %v3886_v39 = vpop.f32.mrf.mxu0  ;;  %4077 = vmatmul.mubr.bf16.gmra.mxu0 %v5255_v37  ;;  %v6160_v53 = vpop.f32.mrf.mxu1 }
 0x76b   :  { %v3887_v12 = vadd.f32 %v3886_v39, %v6056_v22  ;;  %4084 = vmatprep.mubr.bf16.mxu0 %v5256_v19  ;;  %v5261_v39 = vld [vmem:[#allocation2 + $0x3e8] ss:$16 sps:$4 sm:$0xff]  }
 0x76c   :  { %v3888_v34 = vpop.f32.mrf.mxu0  ;;  %v3727_v48 = vpop.f32.mrf.mxu1 }
 0x76d   :  { %4118 = vst.msk [vmem:[%s6493_s5 + $0x40] sm:$0xff] %vm4109_vm1, %v3887_v12 }
 0x76e   :  { %v3889_v21 = vpop.f32.mrf.mxu0  ;;  %v6167_v8 = vpop.f32.mrf.mxu1 }
 0x76f   :  { %v3890_v57 = vadd.f32 %v3889_v21, %v6058_v54 }
 0x770   :  { %v3891_v16 = vpop.f32.mrf.mxu0  ;;  %v3730_v4 = vpop.f32.mrf.mxu1 }
 0x771   :  { %4119 = vst.msk [vmem:[%s6493_s5 + $0x48] sm:$0xff] %vm4109_vm1, %v3890_v57 }
 0x772   :  { %v3894_v22 = vpop.f32.mrf.mxu0  ;;  %4085 = vmatmul.mubr.bf16.gmra.mxu0 %v5257_v62  ;;  %v6174_v33 = vpop.f32.mrf.mxu1 }
 0x773   :  { %v3895_v23 = vadd.f32 %v3894_v22, %v6060_v1  ;;  %4092 = vmatprep.mubr.bf16.mxu0 %v5258_v60 }
 0x774   :  { %v3896_v13 = vpop.f32.mrf.mxu0  ;;  %v3735_v40 = vpop.f32.mrf.mxu1 }
 0x775   :  { %4120 = vst.msk [vmem:[%s6493_s5 + $0x50] sm:$0xff] %vm4109_vm1, %v3895_v23 }
 0x776   :  { %v3897_v54 = vpop.f32.mrf.mxu0  ;;  %v6181_v50 = vpop.f32.mrf.mxu1 }
 0x777   :  { %v3898_v59 = vadd.f32 %v3897_v54, %v6062_v2 }
 0x778   :  { %v3899_v10 = vpop.f32.mrf.mxu0  ;;  %v3738_v20 = vpop.f32.mrf.mxu1 }
 0x779   :  { %4121 = vst.msk [vmem:[%s6493_s5 + $0x58] sm:$0xff] %vm4109_vm1, %v3898_v59 }
 0x77a   :  { %v3902_v1 = vpop.f32.mrf.mxu0  ;;  %4093 = vmatmul.mubr.bf16.gmra.mxu0 %v5259_v35  ;;  %v6188_v17 = vpop.f32.mrf.mxu1 }
 0x77b   :  { %v3903_v41 = vadd.f32 %v3902_v1, %v6064_v55  ;;  %4100 = vmatprep.mubr.bf16.mxu0 %v5260_v5 }
 0x77c   :  { %v3904_v63 = vpop.f32.mrf.mxu0  ;;  %v3743_v26 = vpop.f32.mrf.mxu1 }
 0x77d   :  { %4122 = vst.msk [vmem:[%s6493_s5 + $0x60] sm:$0xff] %vm4109_vm1, %v3903_v41 }
 0x77e   :  { %v3905_v2 = vpop.f32.mrf.mxu0  ;;  %v6195_v14 = vpop.f32.mrf.mxu1 }
 0x77f   :  { %v3906_v61 = vadd.f32 %v3905_v2, %v6066_v42 }
 0x780   :  { %v3907_v31 = vpop.f32.mrf.mxu0  ;;  %v3746_v51 = vpop.f32.mrf.mxu1 }
 0x781   :  { %4123 = vst.msk [vmem:[%s6493_s5 + $0x68] sm:$0xff] %vm4109_vm1, %v3906_v61 }
 0x782   :  { %v3910_v55 = vpop.f32.mrf.mxu0  ;;  %4101 = vmatmul.mubr.bf16.gmra.mxu0 %v5261_v39  ;;  %v6202_v37 = vpop.f32.mrf.mxu1 }
 0x783   :  { %v3911_v12 = vadd.f32 %v3910_v55, %v6068_v56 }
 0x784   :  { %v3912_v19 = vpop.f32.mrf.mxu0  ;;  %v3751_v34 = vpop.f32.mrf.mxu1 }
 0x785   :  { %4124 = vst.msk [vmem:[%s6493_s5 + $0x70] sm:$0xff] %vm4109_vm1, %v3911_v12 }
 0x786   :  { %v3913_v42 = vpop.f32.mrf.mxu0  ;;  %v6209_v48 = vpop.f32.mrf.mxu1 }
 0x787   :  { %v3914_v21 = vadd.f32 %v3913_v42, %v6070_v6 }
 0x788   :  { %v3915_v57 = vpop.f32.mrf.mxu0  ;;  %v3754_v16 = vpop.f32.mrf.mxu1 }
 0x789   :  { %4125 = vst.msk [vmem:[%s6493_s5 + $0x78] sm:$0xff] %vm4109_vm1, %v3914_v21 }
 0x78a   :  { %v3918_v56 = vpop.f32.mrf.mxu0  ;;  %v6216_v4 = vpop.f32.mrf.mxu1 }
 0x78b   :  { %v3919_v22 = vadd.f32 %v3918_v56, %v6072_v32 }
 0x78c   :  { %v3920_v62 = vpop.f32.mrf.mxu0  ;;  %v3759_v23 = vpop.f32.mrf.mxu1 }
 0x78d   :  { %4126 = vst.msk [vmem:[%s6493_s5 + $0x80] sm:$0xff] %vm4109_vm1, %v3919_v22 }
 0x78e   :  { %v3921_v6 = vpop.f32.mrf.mxu0  ;;  %v6223_v60 = vpop.f32.mrf.mxu1 }
 0x78f   :  { %v3922_v13 = vadd.f32 %v3921_v6, %v6074_v28 }
 0x790   :  { %v3923_v40 = vpop.f32.mrf.mxu0  ;;  %v3762_v54 = vpop.f32.mrf.mxu1 }
 0x791   :  { %4127 = vst.msk [vmem:[%s6493_s5 + $0x88] sm:$0xff] %vm4109_vm1, %v3922_v13 }
 0x792   :  { %v3926_v32 = vpop.f32.mrf.mxu0  ;;  %v6230_v59 = vpop.f32.mrf.mxu1 }
 0x793   :  { %v3927_v10 = vadd.f32 %v3926_v32, %v6076_v45 }
 0x794   :  { %v3928_v20 = vpop.f32.mrf.mxu0  ;;  %v3767_v1 = vpop.f32.mrf.mxu1 }
 0x795   :  { %4128 = vst.msk [vmem:[%s6493_s5 + $0x90] sm:$0xff] %vm4109_vm1, %v3927_v10 }
 0x796   :  { %v3929_v28 = vpop.f32.mrf.mxu0  ;;  %v6237_v35 = vpop.f32.mrf.mxu1 }
 0x797   :  { %v3930_v41 = vadd.f32 %v3929_v28, %v6078_v18 }
 0x798   :  { %v3931_v5 = vpop.f32.mrf.mxu0  ;;  %v3770_v63 = vpop.f32.mrf.mxu1 }
 0x799   :  { %4129 = vst.msk [vmem:[%s6493_s5 + $0x98] sm:$0xff] %vm4109_vm1, %v3930_v41 }
 0x79a   :  { %v3934_v45 = vpop.f32.mrf.mxu0  ;;  %v6244_v26 = vpop.f32.mrf.mxu1 }
 0x79b   :  { %v3935_v2 = vadd.f32 %v3934_v45, %v6080_v11 }
 0x79c   :  { %v3936_v61 = vpop.f32.mrf.mxu0  ;;  %v3775_v31 = vpop.f32.mrf.mxu1 }
 0x79d   :  { %4130 = vst.msk [vmem:[%s6493_s5 + $0xa0] sm:$0xff] %vm4109_vm1, %v3935_v2 }
 0x79e   :  { %v3937_v18 = vpop.f32.mrf.mxu0  ;;  %v6251_v51 = vpop.f32.mrf.mxu1 }
 0x79f   :  { %v3938_v55 = vadd.f32 %v3937_v18, %v6082_v38 }
 0x7a0   :  { %v3939_v39 = vpop.f32.mrf.mxu0  ;;  %v3778_v12 = vpop.f32.mrf.mxu1 }
 0x7a1   :  { %4131 = vst.msk [vmem:[%s6493_s5 + $0xa8] sm:$0xff] %vm4109_vm1, %v3938_v55 }
 0x7a2   :  { %v3942_v11 = vpop.f32.mrf.mxu0  ;;  %v6258_v19 = vpop.f32.mrf.mxu1 }
 0x7a3   :  { %v3943_v34 = vadd.f32 %v3942_v11, %v6084_v24 }
 0x7a4   :  { %v3944_v42 = vpop.f32.mrf.mxu0  ;;  %v3783_v21 = vpop.f32.mrf.mxu1 }
 0x7a5   :  { %4132 = vst.msk [vmem:[%s6493_s5 + $0xb0] sm:$0xff] %vm4109_vm1, %v3943_v34 }
 0x7a6   :  { %v3945_v38 = vpop.f32.mrf.mxu0  ;;  %v6265_v57 = vpop.f32.mrf.mxu1 }
 0x7a7   :  { %v3946_v16 = vadd.f32 %v3945_v38, %v6086_v43 }
 0x7a8   :  { %v3947_v56 = vpop.f32.mrf.mxu0  ;;  %v3786_v22 = vpop.f32.mrf.mxu1 }
 0x7a9   :  { %4133 = vst.msk [vmem:[%s6493_s5 + $0xb8] sm:$0xff] %vm4109_vm1, %v3946_v16 }
 0x7aa   :  { %v3950_v24 = vpop.f32.mrf.mxu0  ;;  %v6272_v62 = vpop.f32.mrf.mxu1 }
 0x7ab   :  { %v3951_v23 = vadd.f32 %v3950_v24, %v6088_v30 }
 0x7ac   :  { %v3952_v6 = vpop.f32.mrf.mxu0  ;;  %v3791_v13 = vpop.f32.mrf.mxu1 }
 0x7ad   :  { %4134 = vst.msk [vmem:[%s6493_s5 + $0xc0] sm:$0xff] %vm4109_vm1, %v3951_v23 }
 0x7ae   :  { %v3953_v43 = vpop.f32.mrf.mxu0  ;;  %v6279_v40 = vpop.f32.mrf.mxu1 }
 0x7af   :  { %v3954_v54 = vadd.f32 %v3953_v43, %v6090_v58 }
 0x7b0   :  { %v3955_v32 = vpop.f32.mrf.mxu0  ;;  %v3794_v10 = vpop.f32.mrf.mxu1 }
 0x7b1   :  { %4135 = vst.msk [vmem:[%s6493_s5 + $0xc8] sm:$0xff] %vm4109_vm1, %v3954_v54 }
 0x7b2   :  { %v3958_v30 = vpop.f32.mrf.mxu0  ;;  %v6286_v20 = vpop.f32.mrf.mxu1 }
 0x7b3   :  { %v3959_v1 = vadd.f32 %v3958_v30, %v6092_v36 }
 0x7b4   :  { %v3960_v28 = vpop.f32.mrf.mxu0  ;;  %v3799_v41 = vpop.f32.mrf.mxu1 }
 0x7b5   :  { %4136 = vst.msk [vmem:[%s6493_s5 + $0xd0] sm:$0xff] %vm4109_vm1, %v3959_v1 }
 0x7b6   :  { %v3961_v58 = vpop.f32.mrf.mxu0  ;;  %v6293_v5 = vpop.f32.mrf.mxu1 }
 0x7b7   :  { %v3962_v63 = vadd.f32 %v3961_v58, %v6094_v9 }
 0x7b8   :  { %v3963_v45 = vpop.f32.mrf.mxu0  ;;  %v3802_v2 = vpop.f32.mrf.mxu1 }
 0x7b9   :  { %4137 = vst.msk [vmem:[%s6493_s5 + $0xd8] sm:$0xff] %vm4109_vm1, %v3962_v63 }
 0x7ba   :  { %v3966_v36 = vpop.f32.mrf.mxu0  ;;  %v6300_v61 = vpop.f32.mrf.mxu1 }
 0x7bb   :  { %v3967_v31 = vadd.f32 %v3966_v36, %v6096_v29 }
 0x7bc   :  { %v3968_v18 = vpop.f32.mrf.mxu0  ;;  %v3807_v55 = vpop.f32.mrf.mxu1 }
 0x7bd   :  { %4138 = vst.msk [vmem:[%s6493_s5 + $0xe0] sm:$0xff] %vm4109_vm1, %v3967_v31 }
 0x7be   :  { %v3969_v9 = vpop.f32.mrf.mxu0  ;;  %v6307_v39 = vpop.f32.mrf.mxu1 }
 0x7bf   :  { %v3970_v12 = vadd.f32 %v3969_v9, %v6098_v25 }
 0x7c0   :  { %v3971_v11 = vpop.f32.mrf.mxu0  ;;  %v3810_v34 = vpop.f32.mrf.mxu1 }
 0x7c1   :  { %4139 = vst.msk [vmem:[%s6493_s5 + $0xe8] sm:$0xff] %vm4109_vm1, %v3970_v12 }
 0x7c2   :  { %v3974_v29 = vpop.f32.mrf.mxu0  ;;  %v6314_v42 = vpop.f32.mrf.mxu1 }
 0x7c3   :  { %v3975_v21 = vadd.f32 %v3974_v29, %v6100_v52 }
 0x7c4   :  { %v3976_v38 = vpop.f32.mrf.mxu0  ;;  %v3815_v16 = vpop.f32.mrf.mxu1 }
 0x7c5   :  { %4140 = vst.msk [vmem:[%s6493_s5 + $0xf0] sm:$0xff] %vm4109_vm1, %v3975_v21 }
 0x7c6   :  { %v3977_v25 = vpop.f32.mrf.mxu0  ;;  %v6321_v56 = vpop.f32.mrf.mxu1 }
 0x7c7   :  { %v3978_v22 = vadd.f32 %v3977_v25, %v6102_v47 }
 0x7c8   :  { %v3979_v24 = vpop.f32.mrf.mxu0  ;;  %v3818_v23 = vpop.f32.mrf.mxu1 }
 0x7c9   :  { %4141 = vst.msk [vmem:[%s6493_s5 + $0xf8] sm:$0xff] %vm4109_vm1, %v3978_v22 }
 0x7ca   :  { %v3982_v52 = vpop.f32.mrf.mxu0 }
 0x7cb   :  { %v3983_v6 = vadd.f32 %v3982_v52, %v6104_v7 }
 0x7cc   :  { %v3984_v13 = vpop.f32.mrf.mxu0 }
 0x7cd   :  { %4142 = vst.msk [vmem:[%s6493_s5 + $0x100] sm:$0xff] %vm4109_vm1, %v3983_v6 }
 0x7ce   :  { %v3985_v43 = vpop.f32.mrf.mxu0 }
 0x7cf   :  { %v3986_v54 = vadd.f32 %v3985_v43, %v6111_v0 }
 0x7d0   :  { %v3987_v47 = vpop.f32.mrf.mxu0 }
 0x7d1   :  { %4143 = vst.msk [vmem:[%s6493_s5 + $0x108] sm:$0xff] %vm4109_vm1, %v3986_v54 }
 0x7d2   :  { %v3990_v32 = vpop.f32.mrf.mxu0 }
 0x7d3   :  { %v3991_v10 = vadd.f32 %v3990_v32, %v6118_v44 }
 0x7d4   :  { %v3992_v30 = vpop.f32.mrf.mxu0 }
 0x7d5   :  { %4144 = vst.msk [vmem:[%s6493_s5 + $0x110] sm:$0xff] %vm4109_vm1, %v3991_v10 }
 0x7d6   :  { %v3993_v7 = vpop.f32.mrf.mxu0 }
 0x7d7   :  { %v3994_v1 = vadd.f32 %v3993_v7, %v6125_v15 }
 0x7d8   :  { %v3995_v28 = vpop.f32.mrf.mxu0 }
 0x7d9   :  { %4145 = vst.msk [vmem:[%s6493_s5 + $0x118] sm:$0xff] %vm4109_vm1, %v3994_v1 }
 0x7da   :  { %v3998_v0 = vpop.f32.mrf.mxu0 }
 0x7db   :  { %v3999_v41 = vadd.f32 %v3998_v0, %v6132_v49 }
 0x7dc   :  { %v4000_v58 = vpop.f32.mrf.mxu0 }
 0x7dd   :  { %4146 = vst.msk [vmem:[%s6493_s5 + $0x120] sm:$0xff] %vm4109_vm1, %v3999_v41 }
 0x7de   :  { %v4001_v44 = vpop.f32.mrf.mxu0 }
 0x7df   :  { %v4002_v63 = vadd.f32 %v4001_v44, %v6139_v27 }
 0x7e0   :  { %v4003_v45 = vpop.f32.mrf.mxu0 }
 0x7e1   :  { %4147 = vst.msk [vmem:[%s6493_s5 + $0x128] sm:$0xff] %vm4109_vm1, %v4002_v63 }
 0x7e2   :  { %v4006_v15 = vpop.f32.mrf.mxu0 }
 0x7e3   :  { %v4007_v2 = vadd.f32 %v4006_v15, %v6146_v3 }
 0x7e4   :  { %v4008_v36 = vpop.f32.mrf.mxu0 }
 0x7e5   :  { %4148 = vst.msk [vmem:[%s6493_s5 + $0x130] sm:$0xff] %vm4109_vm1, %v4007_v2 }
 0x7e6   :  { %v4009_v49 = vpop.f32.mrf.mxu0 }
 0x7e7   :  { %v4010_v31 = vadd.f32 %v4009_v49, %v6153_v46 }
 0x7e8   :  { %v4011_v18 = vpop.f32.mrf.mxu0 }
 0x7e9   :  { %4149 = vst.msk [vmem:[%s6493_s5 + $0x138] sm:$0xff] %vm4109_vm1, %v4010_v31 }
 0x7ea   :  { %v4014_v27 = vpop.f32.mrf.mxu0 }
 0x7eb   :  { %v4015_v55 = vadd.f32 %v4014_v27, %v6160_v53 }
 0x7ec   :  { %v4016_v9 = vpop.f32.mrf.mxu0 }
 0x7ed   :  { %4150 = vst.msk [vmem:[%s6493_s5 + $0x140] sm:$0xff] %vm4109_vm1, %v4015_v55 }
 0x7ee   :  { %v4017_v3 = vpop.f32.mrf.mxu0 }
 0x7ef   :  { %v4018_v12 = vadd.f32 %v4017_v3, %v6167_v8 }
 0x7f0   :  { %v4019_v11 = vpop.f32.mrf.mxu0 }
 0x7f1   :  { %4151 = vst.msk [vmem:[%s6493_s5 + $0x148] sm:$0xff] %vm4109_vm1, %v4018_v12 }
 0x7f2   :  { %v4022_v46 = vpop.f32.mrf.mxu0 }
 0x7f3   :  { %v4023_v34 = vadd.f32 %v4022_v46, %v6174_v33 }
 0x7f4   :  { %v4024_v29 = vpop.f32.mrf.mxu0 }
 0x7f5   :  { %4152 = vst.msk [vmem:[%s6493_s5 + $0x150] sm:$0xff] %vm4109_vm1, %v4023_v34 }
 0x7f6   :  { %v4025_v53 = vpop.f32.mrf.mxu0 }
 0x7f7   :  { %v4026_v21 = vadd.f32 %v4025_v53, %v6181_v50 }
 0x7f8   :  { %v4027_v38 = vpop.f32.mrf.mxu0 }
 0x7f9   :  { %4153 = vst.msk [vmem:[%s6493_s5 + $0x158] sm:$0xff] %vm4109_vm1, %v4026_v21 }
 0x7fa   :  { %v4030_v8 = vpop.f32.mrf.mxu0 }
 0x7fb   :  { %v4031_v16 = vadd.f32 %v4030_v8, %v6188_v17 }
 0x7fc   :  { %v4032_v25 = vpop.f32.mrf.mxu0 }
 0x7fd   :  { %4154 = vst.msk [vmem:[%s6493_s5 + $0x160] sm:$0xff] %vm4109_vm1, %v4031_v16 }
 0x7fe   :  { %v4033_v33 = vpop.f32.mrf.mxu0 }
 0x7ff   :  { %v4034_v22 = vadd.f32 %v4033_v33, %v6195_v14 }
 0x800   :  { %v4035_v24 = vpop.f32.mrf.mxu0 }
 0x801   :  { %4155 = vst.msk [vmem:[%s6493_s5 + $0x168] sm:$0xff] %vm4109_vm1, %v4034_v22 }
 0x802   :  { %v4038_v50 = vpop.f32.mrf.mxu0 }
 0x803   :  { %v4039_v23 = vadd.f32 %v4038_v50, %v6202_v37 }
 0x804   :  { %v4040_v52 = vpop.f32.mrf.mxu0 }
 0x805   :  { %4156 = vst.msk [vmem:[%s6493_s5 + $0x170] sm:$0xff] %vm4109_vm1, %v4039_v23 }
 0x806   :  { %v4041_v17 = vpop.f32.mrf.mxu0 }
 0x807   :  { %v4042_v6 = vadd.f32 %v4041_v17, %v6209_v48 }
 0x808   :  { %v4043_v13 = vpop.f32.mrf.mxu0 }
 0x809   :  { %4157 = vst.msk [vmem:[%s6493_s5 + $0x178] sm:$0xff] %vm4109_vm1, %v4042_v6 }
 0x80a   :  { %v4046_v14 = vpop.f32.mrf.mxu0 }
 0x80b   :  { %v4047_v43 = vadd.f32 %v4046_v14, %v6216_v4 }
 0x80c   :  { %v4048_v54 = vpop.f32.mrf.mxu0 }
 0x80d   :  { %4158 = vst.msk [vmem:[%s6493_s5 + $0x180] sm:$0xff] %vm4109_vm1, %v4047_v43 }
 0x80e   :  { %v4049_v37 = vpop.f32.mrf.mxu0 }
 0x80f   :  { %v4050_v47 = vadd.f32 %v4049_v37, %v6223_v60 }
 0x810   :  { %v4051_v32 = vpop.f32.mrf.mxu0 }
 0x811   :  { %4159 = vst.msk [vmem:[%s6493_s5 + $0x188] sm:$0xff] %vm4109_vm1, %v4050_v47 }
 0x812   :  { %v4054_v48 = vpop.f32.mrf.mxu0 }
 0x813   :  { %v4055_v10 = vadd.f32 %v4054_v48, %v6230_v59 }
 0x814   :  { %v4056_v30 = vpop.f32.mrf.mxu0 }
 0x815   :  { %4160 = vst.msk [vmem:[%s6493_s5 + $0x190] sm:$0xff] %vm4109_vm1, %v4055_v10 }
 0x816   :  { %v4057_v4 = vpop.f32.mrf.mxu0 }
 0x817   :  { %v4058_v7 = vadd.f32 %v4057_v4, %v6237_v35 }
 0x818   :  { %v4059_v1 = vpop.f32.mrf.mxu0 }
 0x819   :  { %4161 = vst.msk [vmem:[%s6493_s5 + $0x198] sm:$0xff] %vm4109_vm1, %v4058_v7 }
 0x81a   :  { %v4062_v60 = vpop.f32.mrf.mxu0 }
 0x81b   :  { %v4063_v28 = vadd.f32 %v4062_v60, %v6244_v26 }
 0x81c   :  { %v4064_v0 = vpop.f32.mrf.mxu0 }
 0x81d   :  { %4162 = vst.msk [vmem:[%s6493_s5 + $0x1a0] sm:$0xff] %vm4109_vm1, %v4063_v28 }
 0x81e   :  { %v4065_v59 = vpop.f32.mrf.mxu0 }
 0x81f   :  { %v4066_v41 = vadd.f32 %v4065_v59, %v6251_v51 }
 0x820   :  { %v4067_v58 = vpop.f32.mrf.mxu0 }
 0x821   :  { %4163 = vst.msk [vmem:[%s6493_s5 + $0x1a8] sm:$0xff] %vm4109_vm1, %v4066_v41 }
 0x822   :  { %v4070_v35 = vpop.f32.mrf.mxu0 }
 0x823   :  { %v4071_v44 = vadd.f32 %v4070_v35, %v6258_v19 }
 0x824   :  { %v4072_v63 = vpop.f32.mrf.mxu0 }
 0x825   :  { %4164 = vst.msk [vmem:[%s6493_s5 + $0x1b0] sm:$0xff] %vm4109_vm1, %v4071_v44 }
 0x826   :  { %v4073_v26 = vpop.f32.mrf.mxu0 }
 0x827   :  { %v4074_v45 = vadd.f32 %v4073_v26, %v6265_v57 }
 0x828   :  { %v4075_v15 = vpop.f32.mrf.mxu0 }
 0x829   :  { %4165 = vst.msk [vmem:[%s6493_s5 + $0x1b8] sm:$0xff] %vm4109_vm1, %v4074_v45 }
 0x82a   :  { %v4078_v51 = vpop.f32.mrf.mxu0 }
 0x82b   :  { %v4079_v2 = vadd.f32 %v4078_v51, %v6272_v62 }
 0x82c   :  { %v4080_v36 = vpop.f32.mrf.mxu0 }
 0x82d   :  { %4166 = vst.msk [vmem:[%s6493_s5 + $0x1c0] sm:$0xff] %vm4109_vm1, %v4079_v2 }
 0x82e   :  { %v4081_v19 = vpop.f32.mrf.mxu0 }
 0x82f   :  { %v4082_v49 = vadd.f32 %v4081_v19, %v6279_v40 }
 0x830   :  { %v4083_v31 = vpop.f32.mrf.mxu0 }
 0x831   :  { %4167 = vst.msk [vmem:[%s6493_s5 + $0x1c8] sm:$0xff] %vm4109_vm1, %v4082_v49 }
 0x832   :  { %v4086_v57 = vpop.f32.mrf.mxu0 }
 0x833   :  { %v4087_v18 = vadd.f32 %v4086_v57, %v6286_v20 }
 0x834   :  { %v4088_v27 = vpop.f32.mrf.mxu0 }
 0x835   :  { %4168 = vst.msk [vmem:[%s6493_s5 + $0x1d0] sm:$0xff] %vm4109_vm1, %v4087_v18 }
 0x836   :  { %v4089_v62 = vpop.f32.mrf.mxu0 }
 0x837   :  { %v4090_v55 = vadd.f32 %v4089_v62, %v6293_v5 }
 0x838   :  { %v4091_v9 = vpop.f32.mrf.mxu0 }
 0x839   :  { %4169 = vst.msk [vmem:[%s6493_s5 + $0x1d8] sm:$0xff] %vm4109_vm1, %v4090_v55 }
 0x83a   :  { %v4094_v40 = vpop.f32.mrf.mxu0 }
 0x83b   :  { %v4095_v3 = vadd.f32 %v4094_v40, %v6300_v61 }
 0x83c   :  { %v4096_v12 = vpop.f32.mrf.mxu0 }
 0x83d   :  { %4170 = vst.msk [vmem:[%s6493_s5 + $0x1e0] sm:$0xff] %vm4109_vm1, %v4095_v3 }
 0x83e   :  { %v4097_v20 = vpop.f32.mrf.mxu0 }
 0x83f   :  { %v4098_v11 = vadd.f32 %v4097_v20, %v6307_v39 }
 0x840   :  { %v4099_v46 = vpop.f32.mrf.mxu0 }
 0x841   :  { %4171 = vst.msk [vmem:[%s6493_s5 + $0x1e8] sm:$0xff] %vm4109_vm1, %v4098_v11 }
 0x842   :  { %v4102_v5 = vpop.f32.mrf.mxu0 }
 0x843   :  { %v4103_v34 = vadd.f32 %v4102_v5, %v6314_v42 }
 0x844   :  { %v4104_v29 = vpop.f32.mrf.mxu0 }
 0x845   :  { %4172 = vst.msk [vmem:[%s6493_s5 + $0x1f0] sm:$0xff] %vm4109_vm1, %v4103_v34 }
 0x846   :  { %v4105_v61 = vpop.f32.mrf.mxu0 }
 0x847   :  { %v4106_v53 = vadd.f32 %v4105_v61, %v6321_v56 }
 0x848   :  { %v4107_v21 = vpop.f32.mrf.mxu0 }
 0x849   :  { %4173 = vst.msk [vmem:[%s6493_s5 + $0x1f8] sm:$0xff] %vm4109_vm1, %v4106_v53 }
 0x84a   :  { %4178 = vsyncpa [#allocation3], 1 }

</bundles_post_ra>
